<compile_context>
chip_gen: v5e
topology: v5e:2x2
jax: 0.10.0
libtpu: 0.0.40
codegen_flags: <defaults>
</compile_context>

<pallas_src>
import math

import jax
import jax.numpy as jnp
from jax import lax
from jax.experimental import pallas as pl
from jax.experimental.pallas import tpu as pltpu


def _make_kernel(num_heads, d_head, tq):
    H, dh = num_heads, d_head

    def kernel(x_ref, k1_ref, v1_ref, k2_ref, v2_ref,
               wq1, bq1, wo1, bo1, g1, be1,
               wq2, bq2, wo2, bo2, g2, be2,
               w1, b1, w2, b2, g3, be3,
               out_ref):
        x_bf = x_ref[0]                         # (tq, D) bf16 query tile of trg
        x = x_bf.astype(jnp.float32)            # f32 copy for the residual
        s_self = k1_ref.shape[2]                # S_t (self-attn key length)

        # Causal-mask bias for this query tile; built once, shared by all heads.
        # Finite constant (not -inf): the diagonal is always unmasked, no NaN hazard.
        q0 = pl.program_id(1) * tq
        rows = lax.broadcasted_iota(jnp.int32, (tq, s_self), 0) + q0
        cols = lax.broadcasted_iota(jnp.int32, (tq, s_self), 1)
        causal_bias = jnp.where(cols > rows, -1e30, 0.0).astype(jnp.float32)[None]

        def layernorm(y, g, b):                 # f32, eps matches nn.LayerNorm default
            mu = jnp.mean(y, axis=-1, keepdims=True)
            yc = y - mu
            var = jnp.mean(yc * yc, axis=-1, keepdims=True)
            return yc * lax.rsqrt(var + 1e-5) * g[...] + b[...]

        def attention(q_in_bf, kh, vh, wq, bq, wo, bo, bias):
            sq = q_in_bf.shape[0]
            # Dense lane-dense Q projection (1/sqrt(dh) pre-folded into wq/bq).
            qd = jnp.dot(q_in_bf, wq[...],
                         preferred_element_type=jnp.float32) + bq[...]
            # Split heads: (sq, H*dh) -> (H, sq, dh).
            qh = jnp.transpose(qd.reshape(sq, H, dh), (1, 0, 2)).astype(jnp.bfloat16)
            # Scores (H, sq, sk) with f32 accumulation (leading-batch MXU matmul).
            s = jnp.einsum('hqd,hkd->hqk', qh, kh,
                           preferred_element_type=jnp.float32)
            if bias is not None:
                s = s + bias
            # Softmax over keys, f32. Exact reciprocal kept for validation accuracy;
            # on hardware pl.reciprocal(..., approx=True) can replace the divide.
            m = jnp.max(s, axis=-1, keepdims=True)
            e = jnp.exp(s - m)
            p = e / jnp.sum(e, axis=-1, keepdims=True)
            # Context (H, sq, dh); merge heads lane-dense and do ONE dense output
            # projection (== concat(heads) @ Wo).
            ctx = jnp.einsum('hqk,hkd->hqd', p.astype(jnp.bfloat16), vh,
                             preferred_element_type=jnp.float32)
            ctx2d = jnp.transpose(ctx, (1, 0, 2)).reshape(sq, H * dh)
            return jnp.dot(ctx2d.astype(jnp.bfloat16), wo[...],
                           preferred_element_type=jnp.float32) + bo[...]

        # Residual(MultiHeadAttention(mask=True)): masked self-attention.
        a1 = layernorm(
            x + attention(x_bf, k1_ref[0], v1_ref[0], wq1, bq1, wo1, bo1, causal_bias),
            g1, be1)
        # Residual(MultiHeadAttention(mask=False)): cross-attention over memory.
        a2 = layernorm(
            a1 + attention(a1.astype(jnp.bfloat16), k2_ref[0], v2_ref[0],
                           wq2, bq2, wo2, bo2, None),
            g2, be2)
        # Residual(FeedForward): Linear -> ReLU -> Linear.
        hdn = jnp.maximum(
            jnp.dot(a2.astype(jnp.bfloat16), w1[...],
                    preferred_element_type=jnp.float32) + b1[...], 0.0)
        ffo = jnp.dot(hdn.astype(jnp.bfloat16), w2[...],
                      preferred_element_type=jnp.float32) + b2[...]
        out_ref[0] = layernorm(a2 + ffo, g3, be3).astype(out_ref.dtype)

    return kernel


def init_params(key, d_in, num_heads, hidden_size):
    """Deterministic parameter init mimicking nn.Linear / nn.LayerNorm defaults."""
    d_head = d_in // num_heads
    keys = iter(jax.random.split(key, 64))

    def linear(in_f, out_f):
        bound = 1.0 / math.sqrt(in_f)
        w = jax.random.uniform(next(keys), (in_f, out_f), jnp.float32, -bound, bound)
        b = jax.random.uniform(next(keys), (1, out_f), jnp.float32, -bound, bound)
        return w, b

    def mha_params():
        wq, bq = linear(d_in, num_heads * d_head)
        wk, bk = linear(d_in, num_heads * d_head)
        wv, bv = linear(d_in, num_heads * d_head)
        wo, bo = linear(num_heads * d_head, d_in)
        return [wq, bq, wk, bk, wv, bv, wo, bo]

    def ln_params():
        return [jnp.ones((1, d_in), jnp.float32), jnp.zeros((1, d_in), jnp.float32)]

    params = []
    params += mha_params() + ln_params()   # attention_1 (masked self-attn)
    params += mha_params() + ln_params()   # attention_2 (cross-attn)
    w1, b1 = linear(d_in, hidden_size)
    w2, b2 = linear(hidden_size, d_in)
    params += [w1, b1, w2, b2] + ln_params()
    return params


def _pick_q_tile(seq_len, max_tile, batch):
    """Largest divisor of seq_len <= max_tile, preferring multiples of 128, then 8.

    Falls back to splitting further so batch * num_q_tiles >= 2 when possible
    (keeps both v7x TensorCores / both megacore halves busy)."""
    limit = min(seq_len, max_tile)
    mult128 = [t for t in range(128, limit + 1, 128) if seq_len % t == 0]
    mult8 = [t for t in range(8, limit + 1, 8) if seq_len % t == 0]
    tq = max(mult128) if mult128 else (max(mult8) if mult8 else seq_len)
    if batch * (seq_len // tq) < 2:
        for t in range(tq - 8, 7, -8):
            if seq_len % t == 0:
                tq = t
                break
    return tq


def decoder_block(trg, memory, params, num_heads, *, max_q_tile=256,
                  out_dtype=jnp.float32):
    """Pallas forward pass of decoderBlock. trg: (B, S_t, D); memory: (B, S_m, D)."""
    B, S_t, D = trg.shape
    _, S_m, _ = memory.shape
    assert D % num_heads == 0
    dh = D // num_heads
    # NOTE: keep D and hidden_size multiples of 128 for lane-dense MXU work/stores.

    (wq1, bq1, wk1, bk1, wv1, bv1, wo1, bo1, g1, be1,
     wq2, bq2, wk2, bk2, wv2, bv2, wo2, bo2, g2, be2,
     w1, b1, w2, b2, g3, be3) = params

    f32, bf16 = jnp.float32, jnp.bfloat16
    inv_scale = 1.0 / math.sqrt(dh)

    # K/V projections depend only on the full trg / memory blocks, never on the
    # query tile -> hoist them out of the per-tile grid (computed once here, in
    # XLA, as dense matmuls) and hand the kernel head-major bf16 (B, H, S, dh).
    def kv_heads(x, w, b):
        y = jnp.einsum('bsd,de->bse', x, w) + b
        y = y.reshape(x.shape[0], x.shape[1], num_heads, dh)
        return jnp.transpose(y, (0, 2, 1, 3)).astype(bf16)

    k1 = kv_heads(trg, wk1, bk1)
    v1 = kv_heads(trg, wv1, bv1)
    k2 = kv_heads(memory, wk2, bk2)
    v2 = kv_heads(memory, wv2, bv2)

    # 1/sqrt(dh) folded into the Q projection weights/bias.
    kweights = [
        (wq1 * inv_scale).astype(bf16), (bq1 * inv_scale).astype(f32),
        wo1.astype(bf16), bo1.astype(f32), g1.astype(f32), be1.astype(f32),
        (wq2 * inv_scale).astype(bf16), (bq2 * inv_scale).astype(f32),
        wo2.astype(bf16), bo2.astype(f32), g2.astype(f32), be2.astype(f32),
        w1.astype(bf16), b1.astype(f32), w2.astype(bf16), b2.astype(f32),
        g3.astype(f32), be3.astype(f32),
    ]

    tq = _pick_q_tile(S_t, max_q_tile, B)
    grid = (B, S_t // tq)

    # Build operands and their BlockSpecs together so they can never go out of sync.
    operands, in_specs = [], []

    def add(arr, spec):
        operands.append(arr)
        in_specs.append(spec)

    add(trg.astype(bf16), pl.BlockSpec((1, tq, D), lambda b, q: (b, q, 0)))
    add(k1, pl.BlockSpec((1, num_heads, S_t, dh), lambda b, q: (b, 0, 0, 0)))
    add(v1, pl.BlockSpec((1, num_heads, S_t, dh), lambda b, q: (b, 0, 0, 0)))
    add(k2, pl.BlockSpec((1, num_heads, S_m, dh), lambda b, q: (b, 0, 0, 0)))
    add(v2, pl.BlockSpec((1, num_heads, S_m, dh), lambda b, q: (b, 0, 0, 0)))
    # Weights / biases / LayerNorm params: small, constant index map, VMEM resident.
    for p in kweights:
        add(p, pl.BlockSpec(p.shape, lambda b, q, nd=p.ndim: (0,) * nd))

    kernel = _make_kernel(num_heads, dh, tq)
    return pl.pallas_call(
        kernel,
        out_shape=jax.ShapeDtypeStruct((B, S_t, D), out_dtype),
        grid=grid,
        in_specs=in_specs,
        out_specs=pl.BlockSpec((1, tq, D), lambda b, q: (b, q, 0)),
        compiler_params=pltpu.CompilerParams(
            dimension_semantics=("parallel", "parallel"),
            # Headroom below v7x's 64 MiB physical VMEM; also fine on v5e/v6e.
            vmem_limit_bytes=48 * 1024 * 1024),
    )(*operands)


def reference_decoder_block(trg, memory, params, num_heads):
    """Pure-JAX f32 reference mirroring the PyTorch decoderBlock (eval mode)."""
    (wq1, bq1, wk1, bk1, wv1, bv1, wo1, bo1, g1, be1,
     wq2, bq2, wk2, bk2, wv2, bv2, wo2, bo2, g2, be2,
     w1, b1, w2, b2, g3, be3) = params
    D = trg.shape[-1]
    dh = D // num_heads

    def ln(y, g, b):
        mu = jnp.mean(y, axis=-1, keepdims=True)
        var = jnp.mean((y - mu) ** 2, axis=-1, keepdims=True)
        return (y - mu) / jnp.sqrt(var + 1e-5) * g + b

    def mha(q_in, kv_in, wq, bq, wk, bk, wv, bv, wo, bo, causal):
        B, sq, _ = q_in.shape
        sk = kv_in.shape[1]
        Q = (q_in @ wq + bq).reshape(B, sq, num_heads, dh)
        K = (kv_in @ wk + bk).reshape(B, sk, num_heads, dh)
        V = (kv_in @ wv + bv).reshape(B, sk, num_heads, dh)
        s = jnp.einsum('bqhd,bkhd->bhqk', Q, K) / math.sqrt(dh)
        if causal:
            i = jnp.arange(sq)[:, None]
            j = jnp.arange(sk)[None, :]
            s = jnp.where(j > i, -jnp.inf, s)
        p = jax.nn.softmax(s, axis=-1)
        ctx = jnp.einsum('bhqk,bkhd->bqhd', p, V).reshape(B, sq, num_heads * dh)
        return ctx @ wo + bo

    a1 = ln(trg + mha(trg, trg, wq1, bq1, wk1, bk1, wv1, bv1, wo1, bo1, True), g1, be1)
    a2 = ln(a1 + mha(a1, memory, wq2, bq2, wk2, bk2, wv2, bv2, wo2, bo2, False), g2, be2)
    ff = jnp.maximum(a2 @ w1 + b1, 0.0) @ w2 + b2
    return ln(a2 + ff, g3, be3)


if __name__ == "__main__":
    B, S_T, S_M, D, HEADS, HIDDEN = 2, 32, 24, 128, 4, 256
    key = jax.random.PRNGKey(0)
    k_trg, k_mem, k_par = jax.random.split(key, 3)
    trg = jax.random.normal(k_trg, (B, S_T, D), jnp.float32)
    memory = jax.random.normal(k_mem, (B, S_M, D), jnp.float32)
    params = init_params(k_par, D, HEADS, HIDDEN)

    # max_q_tile=16 -> grid (B=2, S_T//16=2): exercises query tiling, the causal-mask
    # offset and both "parallel" grid axes at this toy size (bf16-native 16-row tiles).
    out = decoder_block(trg, memory, params, HEADS, max_q_tile=16)
    jax.block_until_ready(out)
    assert out.shape == (B, S_T, D)
    assert bool(jnp.all(jnp.isfinite(out)))

    ref = reference_decoder_block(trg, memory, params, HEADS)
    err = float(jnp.max(jnp.abs(out - ref)))
    # bf16 MXU inputs give ~1e-2-level deviations vs the pure-f32 reference.
    assert err < 0.2, f"kernel vs f32 reference mismatch: max abs err = {err}"
    print("KERNEL_OK")
</pallas_src>

<mosaic_0001>
module attributes {stable_mosaic.version = 11 : i64} {
  func.func @kernel(%arg0: i32, %arg1: i32, %arg2: memref<1x16x128xbf16, #tpu.memory_space<vmem>>, %arg3: memref<1x4x32x32xbf16, #tpu.memory_space<vmem>>, %arg4: memref<1x4x32x32xbf16, #tpu.memory_space<vmem>>, %arg5: memref<1x4x24x32xbf16, #tpu.memory_space<vmem>>, %arg6: memref<1x4x24x32xbf16, #tpu.memory_space<vmem>>, %arg7: memref<128x128xbf16, #tpu.memory_space<vmem>>, %arg8: memref<1x128xf32, #tpu.memory_space<vmem>>, %arg9: memref<128x128xbf16, #tpu.memory_space<vmem>>, %arg10: memref<1x128xf32, #tpu.memory_space<vmem>>, %arg11: memref<1x128xf32, #tpu.memory_space<vmem>>, %arg12: memref<1x128xf32, #tpu.memory_space<vmem>>, %arg13: memref<128x128xbf16, #tpu.memory_space<vmem>>, %arg14: memref<1x128xf32, #tpu.memory_space<vmem>>, %arg15: memref<128x128xbf16, #tpu.memory_space<vmem>>, %arg16: memref<1x128xf32, #tpu.memory_space<vmem>>, %arg17: memref<1x128xf32, #tpu.memory_space<vmem>>, %arg18: memref<1x128xf32, #tpu.memory_space<vmem>>, %arg19: memref<128x256xbf16, #tpu.memory_space<vmem>>, %arg20: memref<1x256xf32, #tpu.memory_space<vmem>>, %arg21: memref<256x128xbf16, #tpu.memory_space<vmem>>, %arg22: memref<1x128xf32, #tpu.memory_space<vmem>>, %arg23: memref<1x128xf32, #tpu.memory_space<vmem>>, %arg24: memref<1x128xf32, #tpu.memory_space<vmem>>, %arg25: memref<1x16x128xf32, #tpu.memory_space<vmem>>) attributes {dimension_semantics = [#tpu.dimension_semantics<parallel>, #tpu.dimension_semantics<parallel>], iteration_bounds = array<i64: 2, 2>, scalar_prefetch = 0 : i64, scratch_operands = 0 : i64, tpu.core_type = #tpu.core_type<tc>, window_params = [{transform_indices = @transform_0, window_bounds = array<i64: 1, 16, 128>}, {transform_indices = @transform_1, window_bounds = array<i64: 1, 4, 32, 32>}, {transform_indices = @transform_2, window_bounds = array<i64: 1, 4, 32, 32>}, {transform_indices = @transform_3, window_bounds = array<i64: 1, 4, 24, 32>}, {transform_indices = @transform_4, window_bounds = array<i64: 1, 4, 24, 32>}, {pipeline_mode = #tpu.pipeline_mode<synchronous>, transform_indices = @transform_5, window_bounds = array<i64: 128, 128>}, {pipeline_mode = #tpu.pipeline_mode<synchronous>, transform_indices = @transform_6, window_bounds = array<i64: 1, 128>}, {pipeline_mode = #tpu.pipeline_mode<synchronous>, transform_indices = @transform_7, window_bounds = array<i64: 128, 128>}, {pipeline_mode = #tpu.pipeline_mode<synchronous>, transform_indices = @transform_8, window_bounds = array<i64: 1, 128>}, {pipeline_mode = #tpu.pipeline_mode<synchronous>, transform_indices = @transform_9, window_bounds = array<i64: 1, 128>}, {pipeline_mode = #tpu.pipeline_mode<synchronous>, transform_indices = @transform_10, window_bounds = array<i64: 1, 128>}, {pipeline_mode = #tpu.pipeline_mode<synchronous>, transform_indices = @transform_11, window_bounds = array<i64: 128, 128>}, {pipeline_mode = #tpu.pipeline_mode<synchronous>, transform_indices = @transform_12, window_bounds = array<i64: 1, 128>}, {pipeline_mode = #tpu.pipeline_mode<synchronous>, transform_indices = @transform_13, window_bounds = array<i64: 128, 128>}, {pipeline_mode = #tpu.pipeline_mode<synchronous>, transform_indices = @transform_14, window_bounds = array<i64: 1, 128>}, {pipeline_mode = #tpu.pipeline_mode<synchronous>, transform_indices = @transform_15, window_bounds = array<i64: 1, 128>}, {pipeline_mode = #tpu.pipeline_mode<synchronous>, transform_indices = @transform_16, window_bounds = array<i64: 1, 128>}, {pipeline_mode = #tpu.pipeline_mode<synchronous>, transform_indices = @transform_17, window_bounds = array<i64: 128, 256>}, {pipeline_mode = #tpu.pipeline_mode<synchronous>, transform_indices = @transform_18, window_bounds = array<i64: 1, 256>}, {pipeline_mode = #tpu.pipeline_mode<synchronous>, transform_indices = @transform_19, window_bounds = array<i64: 256, 128>}, {pipeline_mode = #tpu.pipeline_mode<synchronous>, transform_indices = @transform_20, window_bounds = array<i64: 1, 128>}, {pipeline_mode = #tpu.pipeline_mode<synchronous>, transform_indices = @transform_21, window_bounds = array<i64: 1, 128>}, {pipeline_mode = #tpu.pipeline_mode<synchronous>, transform_indices = @transform_22, window_bounds = array<i64: 1, 128>}, {transform_indices = @transform_23, window_bounds = array<i64: 1, 16, 128>}]} {
    %c0 = arith.constant 0 : index
    %c0_0 = arith.constant 0 : index
    %c0_1 = arith.constant 0 : index
    %0 = vector.load %arg2[%c0, %c0_0, %c0_1] : memref<1x16x128xbf16, #tpu.memory_space<vmem>>, vector<1x16x128xbf16>
    %1 = vector.shape_cast %0 : vector<1x16x128xbf16> to vector<16x128xbf16>
    %2 = arith.extf %1 : vector<16x128xbf16> to vector<16x128xf32>
    %c16_i32 = arith.constant 16 : i32
    %3 = arith.muli %arg1, %c16_i32 : i32
    %4 = tpu.iota {dimensions = array<i32: 0>} : vector<16x32xi32>
    %5 = vector.broadcast %3 : i32 to vector<16x32xi32>
    %6 = arith.addi %4, %5 : vector<16x32xi32>
    %7 = tpu.iota {dimensions = array<i32: 1>} : vector<16x32xi32>
    %8 = arith.cmpi sgt, %7, %6 : vector<16x32xi32>
    %cst = arith.constant -1.000000e+30 : f32
    %cst_2 = arith.constant 0.000000e+00 : f32
    %9 = vector.broadcast %cst : f32 to vector<16x32xf32>
    %10 = vector.broadcast %cst_2 : f32 to vector<16x32xf32>
    %11 = arith.select %8, %9, %10 : vector<16x32xi1>, vector<16x32xf32>
    %12 = vector.shape_cast %11 : vector<16x32xf32> to vector<1x16x32xf32>
    %c0_3 = arith.constant 0 : index
    %c0_4 = arith.constant 0 : index
    %c0_5 = arith.constant 0 : index
    %c0_6 = arith.constant 0 : index
    %13 = vector.load %arg3[%c0_3, %c0_4, %c0_5, %c0_6] : memref<1x4x32x32xbf16, #tpu.memory_space<vmem>>, vector<1x4x32x32xbf16>
    %14 = vector.shape_cast %13 : vector<1x4x32x32xbf16> to vector<4x32x32xbf16>
    %c0_7 = arith.constant 0 : index
    %c0_8 = arith.constant 0 : index
    %c0_9 = arith.constant 0 : index
    %c0_10 = arith.constant 0 : index
    %15 = vector.load %arg4[%c0_7, %c0_8, %c0_9, %c0_10] : memref<1x4x32x32xbf16, #tpu.memory_space<vmem>>, vector<1x4x32x32xbf16>
    %16 = vector.shape_cast %15 : vector<1x4x32x32xbf16> to vector<4x32x32xbf16>
    %c0_11 = arith.constant 0 : index
    %c0_12 = arith.constant 0 : index
    %17 = vector.load %arg7[%c0_11, %c0_12] : memref<128x128xbf16, #tpu.memory_space<vmem>>, vector<128x128xbf16>
    %cst_13 = arith.constant dense<0.000000e+00> : vector<16x128xf32>
    %18 = tpu.matmul %1, %17, %cst_13 {dimension_numbers = #tpu.dot_dimension_numbers<[1], [0], [0], [1], [0, 0, 1, 1], [], []>} : vector<16x128xbf16>, vector<128x128xbf16>, vector<16x128xf32> -> vector<16x128xf32>
    %c0_14 = arith.constant 0 : index
    %c0_15 = arith.constant 0 : index
    %19 = vector.load %arg8[%c0_14, %c0_15] : memref<1x128xf32, #tpu.memory_space<vmem>>, vector<1x128xf32>
    %20 = vector.broadcast %19 : vector<1x128xf32> to vector<16x128xf32>
    %21 = arith.addf %18, %20 : vector<16x128xf32>
    %22 = vector.shape_cast %21 : vector<16x128xf32> to vector<16x4x32xf32>
    %23 = tpu.transpose %22, [1, 0, 2] : vector<16x4x32xf32> -> vector<4x16x32xf32>
    %24 = arith.truncf %23 : vector<4x16x32xf32> to vector<4x16x32xbf16>
    "tpu.trace_start"() <{level = 10 : i32, message = "hqd,hkd->hqk"}> : () -> ()
    %cst_16 = arith.constant dense<0.000000e+00> : vector<4x16x32xf32>
    %25 = tpu.matmul %24, %14, %cst_16 {dimension_numbers = #tpu.dot_dimension_numbers<[2], [2], [1], [1], [0, 0, 0, 1, 1, 1], [0], [0]>} : vector<4x16x32xbf16>, vector<4x32x32xbf16>, vector<4x16x32xf32> -> vector<4x16x32xf32>
    "tpu.trace_stop"() : () -> ()
    %26 = vector.broadcast %12 : vector<1x16x32xf32> to vector<4x16x32xf32>
    %27 = arith.addf %25, %26 : vector<4x16x32xf32>
    %cst_17 = arith.constant dense<0xFF800000> : vector<4x16xf32>
    %28 = vector.multi_reduction <maximumf>, %27, %cst_17 [2] : vector<4x16x32xf32> to vector<4x16xf32>
    %29 = vector.shape_cast %28 : vector<4x16xf32> to vector<4x16x1xf32>
    %30 = vector.broadcast %29 : vector<4x16x1xf32> to vector<4x16x32xf32>
    %31 = arith.subf %27, %30 : vector<4x16x32xf32>
    %32 = math.exp %31 : vector<4x16x32xf32>
    %cst_18 = arith.constant dense<0.000000e+00> : vector<4x16xf32>
    %33 = vector.multi_reduction <add>, %32, %cst_18 [2] : vector<4x16x32xf32> to vector<4x16xf32>
    %34 = vector.shape_cast %33 : vector<4x16xf32> to vector<4x16x1xf32>
    %35 = vector.broadcast %34 : vector<4x16x1xf32> to vector<4x16x32xf32>
    %36 = arith.divf %32, %35 : vector<4x16x32xf32>
    %37 = arith.truncf %36 : vector<4x16x32xf32> to vector<4x16x32xbf16>
    "tpu.trace_start"() <{level = 10 : i32, message = "hqk,hkd->hqd"}> : () -> ()
    %cst_19 = arith.constant dense<0.000000e+00> : vector<4x16x32xf32>
    %38 = tpu.matmul %37, %16, %cst_19 {dimension_numbers = #tpu.dot_dimension_numbers<[2], [1], [1], [2], [0, 0, 0, 1, 1, 2], [0], [0]>} : vector<4x16x32xbf16>, vector<4x32x32xbf16>, vector<4x16x32xf32> -> vector<4x16x32xf32>
    "tpu.trace_stop"() : () -> ()
    %39 = tpu.transpose %38, [1, 0, 2] : vector<4x16x32xf32> -> vector<16x4x32xf32>
    %40 = vector.shape_cast %39 : vector<16x4x32xf32> to vector<16x128xf32>
    %41 = arith.truncf %40 : vector<16x128xf32> to vector<16x128xbf16>
    %c0_20 = arith.constant 0 : index
    %c0_21 = arith.constant 0 : index
    %42 = vector.load %arg9[%c0_20, %c0_21] : memref<128x128xbf16, #tpu.memory_space<vmem>>, vector<128x128xbf16>
    %cst_22 = arith.constant dense<0.000000e+00> : vector<16x128xf32>
    %43 = tpu.matmul %41, %42, %cst_22 {dimension_numbers = #tpu.dot_dimension_numbers<[1], [0], [0], [1], [0, 0, 1, 1], [], []>} : vector<16x128xbf16>, vector<128x128xbf16>, vector<16x128xf32> -> vector<16x128xf32>
    %c0_23 = arith.constant 0 : index
    %c0_24 = arith.constant 0 : index
    %44 = vector.load %arg10[%c0_23, %c0_24] : memref<1x128xf32, #tpu.memory_space<vmem>>, vector<1x128xf32>
    %45 = vector.broadcast %44 : vector<1x128xf32> to vector<16x128xf32>
    %46 = arith.addf %43, %45 : vector<16x128xf32>
    %47 = arith.addf %2, %46 : vector<16x128xf32>
    %cst_25 = arith.constant dense<0.000000e+00> : vector<16xf32>
    %48 = vector.multi_reduction <add>, %47, %cst_25 [1] : vector<16x128xf32> to vector<16xf32>
    %49 = vector.shape_cast %48 : vector<16xf32> to vector<16x1xf32>
    %cst_26 = arith.constant 1.280000e+02 : f32
    %50 = vector.broadcast %cst_26 : f32 to vector<16x1xf32>
    %51 = arith.divf %49, %50 : vector<16x1xf32>
    %52 = vector.broadcast %51 : vector<16x1xf32> to vector<16x128xf32>
    %53 = arith.subf %47, %52 : vector<16x128xf32>
    %54 = arith.mulf %53, %53 : vector<16x128xf32>
    %cst_27 = arith.constant dense<0.000000e+00> : vector<16xf32>
    %55 = vector.multi_reduction <add>, %54, %cst_27 [1] : vector<16x128xf32> to vector<16xf32>
    %56 = vector.shape_cast %55 : vector<16xf32> to vector<16x1xf32>
    %cst_28 = arith.constant 1.280000e+02 : f32
    %57 = vector.broadcast %cst_28 : f32 to vector<16x1xf32>
    %58 = arith.divf %56, %57 : vector<16x1xf32>
    %cst_29 = arith.constant 9.99999974E-6 : f32
    %59 = vector.broadcast %cst_29 : f32 to vector<16x1xf32>
    %60 = arith.addf %58, %59 : vector<16x1xf32>
    %61 = math.rsqrt %60 : vector<16x1xf32>
    %62 = vector.broadcast %61 : vector<16x1xf32> to vector<16x128xf32>
    %63 = arith.mulf %53, %62 : vector<16x128xf32>
    %c0_30 = arith.constant 0 : index
    %c0_31 = arith.constant 0 : index
    %64 = vector.load %arg11[%c0_30, %c0_31] : memref<1x128xf32, #tpu.memory_space<vmem>>, vector<1x128xf32>
    %65 = vector.broadcast %64 : vector<1x128xf32> to vector<16x128xf32>
    %66 = arith.mulf %63, %65 : vector<16x128xf32>
    %c0_32 = arith.constant 0 : index
    %c0_33 = arith.constant 0 : index
    %67 = vector.load %arg12[%c0_32, %c0_33] : memref<1x128xf32, #tpu.memory_space<vmem>>, vector<1x128xf32>
    %68 = vector.broadcast %67 : vector<1x128xf32> to vector<16x128xf32>
    %69 = arith.addf %66, %68 : vector<16x128xf32>
    %70 = arith.truncf %69 : vector<16x128xf32> to vector<16x128xbf16>
    %c0_34 = arith.constant 0 : index
    %c0_35 = arith.constant 0 : index
    %c0_36 = arith.constant 0 : index
    %c0_37 = arith.constant 0 : index
    %71 = vector.load %arg5[%c0_34, %c0_35, %c0_36, %c0_37] : memref<1x4x24x32xbf16, #tpu.memory_space<vmem>>, vector<1x4x24x32xbf16>
    %72 = vector.shape_cast %71 : vector<1x4x24x32xbf16> to vector<4x24x32xbf16>
    %c0_38 = arith.constant 0 : index
    %c0_39 = arith.constant 0 : index
    %c0_40 = arith.constant 0 : index
    %c0_41 = arith.constant 0 : index
    %73 = vector.load %arg6[%c0_38, %c0_39, %c0_40, %c0_41] : memref<1x4x24x32xbf16, #tpu.memory_space<vmem>>, vector<1x4x24x32xbf16>
    %74 = vector.shape_cast %73 : vector<1x4x24x32xbf16> to vector<4x24x32xbf16>
    %c0_42 = arith.constant 0 : index
    %c0_43 = arith.constant 0 : index
    %75 = vector.load %arg13[%c0_42, %c0_43] : memref<128x128xbf16, #tpu.memory_space<vmem>>, vector<128x128xbf16>
    %cst_44 = arith.constant dense<0.000000e+00> : vector<16x128xf32>
    %76 = tpu.matmul %70, %75, %cst_44 {dimension_numbers = #tpu.dot_dimension_numbers<[1], [0], [0], [1], [0, 0, 1, 1], [], []>} : vector<16x128xbf16>, vector<128x128xbf16>, vector<16x128xf32> -> vector<16x128xf32>
    %c0_45 = arith.constant 0 : index
    %c0_46 = arith.constant 0 : index
    %77 = vector.load %arg14[%c0_45, %c0_46] : memref<1x128xf32, #tpu.memory_space<vmem>>, vector<1x128xf32>
    %78 = vector.broadcast %77 : vector<1x128xf32> to vector<16x128xf32>
    %79 = arith.addf %76, %78 : vector<16x128xf32>
    %80 = vector.shape_cast %79 : vector<16x128xf32> to vector<16x4x32xf32>
    %81 = tpu.transpose %80, [1, 0, 2] : vector<16x4x32xf32> -> vector<4x16x32xf32>
    %82 = arith.truncf %81 : vector<4x16x32xf32> to vector<4x16x32xbf16>
    "tpu.trace_start"() <{level = 10 : i32, message = "hqd,hkd->hqk"}> : () -> ()
    %cst_47 = arith.constant dense<0.000000e+00> : vector<4x16x24xf32>
    %83 = tpu.matmul %82, %72, %cst_47 {dimension_numbers = #tpu.dot_dimension_numbers<[2], [2], [1], [1], [0, 0, 0, 1, 1, 1], [0], [0]>} : vector<4x16x32xbf16>, vector<4x24x32xbf16>, vector<4x16x24xf32> -> vector<4x16x24xf32>
    "tpu.trace_stop"() : () -> ()
    %cst_48 = arith.constant dense<0xFF800000> : vector<4x16xf32>
    %84 = vector.multi_reduction <maximumf>, %83, %cst_48 [2] : vector<4x16x24xf32> to vector<4x16xf32>
    %85 = vector.shape_cast %84 : vector<4x16xf32> to vector<4x16x1xf32>
    %86 = vector.broadcast %85 : vector<4x16x1xf32> to vector<4x16x24xf32>
    %87 = arith.subf %83, %86 : vector<4x16x24xf32>
    %88 = math.exp %87 : vector<4x16x24xf32>
    %cst_49 = arith.constant dense<0.000000e+00> : vector<4x16xf32>
    %89 = vector.multi_reduction <add>, %88, %cst_49 [2] : vector<4x16x24xf32> to vector<4x16xf32>
    %90 = vector.shape_cast %89 : vector<4x16xf32> to vector<4x16x1xf32>
    %91 = vector.broadcast %90 : vector<4x16x1xf32> to vector<4x16x24xf32>
    %92 = arith.divf %88, %91 : vector<4x16x24xf32>
    %93 = arith.truncf %92 : vector<4x16x24xf32> to vector<4x16x24xbf16>
    "tpu.trace_start"() <{level = 10 : i32, message = "hqk,hkd->hqd"}> : () -> ()
    %cst_50 = arith.constant dense<0.000000e+00> : vector<4x16x32xf32>
    %94 = tpu.matmul %93, %74, %cst_50 {dimension_numbers = #tpu.dot_dimension_numbers<[2], [1], [1], [2], [0, 0, 0, 1, 1, 2], [0], [0]>} : vector<4x16x24xbf16>, vector<4x24x32xbf16>, vector<4x16x32xf32> -> vector<4x16x32xf32>
    "tpu.trace_stop"() : () -> ()
    %95 = tpu.transpose %94, [1, 0, 2] : vector<4x16x32xf32> -> vector<16x4x32xf32>
    %96 = vector.shape_cast %95 : vector<16x4x32xf32> to vector<16x128xf32>
    %97 = arith.truncf %96 : vector<16x128xf32> to vector<16x128xbf16>
    %c0_51 = arith.constant 0 : index
    %c0_52 = arith.constant 0 : index
    %98 = vector.load %arg15[%c0_51, %c0_52] : memref<128x128xbf16, #tpu.memory_space<vmem>>, vector<128x128xbf16>
    %cst_53 = arith.constant dense<0.000000e+00> : vector<16x128xf32>
    %99 = tpu.matmul %97, %98, %cst_53 {dimension_numbers = #tpu.dot_dimension_numbers<[1], [0], [0], [1], [0, 0, 1, 1], [], []>} : vector<16x128xbf16>, vector<128x128xbf16>, vector<16x128xf32> -> vector<16x128xf32>
    %c0_54 = arith.constant 0 : index
    %c0_55 = arith.constant 0 : index
    %100 = vector.load %arg16[%c0_54, %c0_55] : memref<1x128xf32, #tpu.memory_space<vmem>>, vector<1x128xf32>
    %101 = vector.broadcast %100 : vector<1x128xf32> to vector<16x128xf32>
    %102 = arith.addf %99, %101 : vector<16x128xf32>
    %103 = arith.addf %69, %102 : vector<16x128xf32>
    %cst_56 = arith.constant dense<0.000000e+00> : vector<16xf32>
    %104 = vector.multi_reduction <add>, %103, %cst_56 [1] : vector<16x128xf32> to vector<16xf32>
    %105 = vector.shape_cast %104 : vector<16xf32> to vector<16x1xf32>
    %cst_57 = arith.constant 1.280000e+02 : f32
    %106 = vector.broadcast %cst_57 : f32 to vector<16x1xf32>
    %107 = arith.divf %105, %106 : vector<16x1xf32>
    %108 = vector.broadcast %107 : vector<16x1xf32> to vector<16x128xf32>
    %109 = arith.subf %103, %108 : vector<16x128xf32>
    %110 = arith.mulf %109, %109 : vector<16x128xf32>
    %cst_58 = arith.constant dense<0.000000e+00> : vector<16xf32>
    %111 = vector.multi_reduction <add>, %110, %cst_58 [1] : vector<16x128xf32> to vector<16xf32>
    %112 = vector.shape_cast %111 : vector<16xf32> to vector<16x1xf32>
    %cst_59 = arith.constant 1.280000e+02 : f32
    %113 = vector.broadcast %cst_59 : f32 to vector<16x1xf32>
    %114 = arith.divf %112, %113 : vector<16x1xf32>
    %cst_60 = arith.constant 9.99999974E-6 : f32
    %115 = vector.broadcast %cst_60 : f32 to vector<16x1xf32>
    %116 = arith.addf %114, %115 : vector<16x1xf32>
    %117 = math.rsqrt %116 : vector<16x1xf32>
    %118 = vector.broadcast %117 : vector<16x1xf32> to vector<16x128xf32>
    %119 = arith.mulf %109, %118 : vector<16x128xf32>
    %c0_61 = arith.constant 0 : index
    %c0_62 = arith.constant 0 : index
    %120 = vector.load %arg17[%c0_61, %c0_62] : memref<1x128xf32, #tpu.memory_space<vmem>>, vector<1x128xf32>
    %121 = vector.broadcast %120 : vector<1x128xf32> to vector<16x128xf32>
    %122 = arith.mulf %119, %121 : vector<16x128xf32>
    %c0_63 = arith.constant 0 : index
    %c0_64 = arith.constant 0 : index
    %123 = vector.load %arg18[%c0_63, %c0_64] : memref<1x128xf32, #tpu.memory_space<vmem>>, vector<1x128xf32>
    %124 = vector.broadcast %123 : vector<1x128xf32> to vector<16x128xf32>
    %125 = arith.addf %122, %124 : vector<16x128xf32>
    %126 = arith.truncf %125 : vector<16x128xf32> to vector<16x128xbf16>
    %c0_65 = arith.constant 0 : index
    %c0_66 = arith.constant 0 : index
    %127 = vector.load %arg19[%c0_65, %c0_66] : memref<128x256xbf16, #tpu.memory_space<vmem>>, vector<128x256xbf16>
    %cst_67 = arith.constant dense<0.000000e+00> : vector<16x256xf32>
    %128 = tpu.matmul %126, %127, %cst_67 {dimension_numbers = #tpu.dot_dimension_numbers<[1], [0], [0], [1], [0, 0, 1, 1], [], []>} : vector<16x128xbf16>, vector<128x256xbf16>, vector<16x256xf32> -> vector<16x256xf32>
    %c0_68 = arith.constant 0 : index
    %c0_69 = arith.constant 0 : index
    %129 = vector.load %arg20[%c0_68, %c0_69] : memref<1x256xf32, #tpu.memory_space<vmem>>, vector<1x256xf32>
    %130 = vector.broadcast %129 : vector<1x256xf32> to vector<16x256xf32>
    %131 = arith.addf %128, %130 : vector<16x256xf32>
    %cst_70 = arith.constant 0.000000e+00 : f32
    %132 = vector.broadcast %cst_70 : f32 to vector<16x256xf32>
    %133 = arith.maximumf %131, %132 : vector<16x256xf32>
    %134 = arith.truncf %133 : vector<16x256xf32> to vector<16x256xbf16>
    %c0_71 = arith.constant 0 : index
    %c0_72 = arith.constant 0 : index
    %135 = vector.load %arg21[%c0_71, %c0_72] : memref<256x128xbf16, #tpu.memory_space<vmem>>, vector<256x128xbf16>
    %cst_73 = arith.constant dense<0.000000e+00> : vector<16x128xf32>
    %136 = tpu.matmul %134, %135, %cst_73 {dimension_numbers = #tpu.dot_dimension_numbers<[1], [0], [0], [1], [0, 0, 1, 1], [], []>} : vector<16x256xbf16>, vector<256x128xbf16>, vector<16x128xf32> -> vector<16x128xf32>
    %c0_74 = arith.constant 0 : index
    %c0_75 = arith.constant 0 : index
    %137 = vector.load %arg22[%c0_74, %c0_75] : memref<1x128xf32, #tpu.memory_space<vmem>>, vector<1x128xf32>
    %138 = vector.broadcast %137 : vector<1x128xf32> to vector<16x128xf32>
    %139 = arith.addf %136, %138 : vector<16x128xf32>
    %140 = arith.addf %125, %139 : vector<16x128xf32>
    %cst_76 = arith.constant dense<0.000000e+00> : vector<16xf32>
    %141 = vector.multi_reduction <add>, %140, %cst_76 [1] : vector<16x128xf32> to vector<16xf32>
    %142 = vector.shape_cast %141 : vector<16xf32> to vector<16x1xf32>
    %cst_77 = arith.constant 1.280000e+02 : f32
    %143 = vector.broadcast %cst_77 : f32 to vector<16x1xf32>
    %144 = arith.divf %142, %143 : vector<16x1xf32>
    %145 = vector.broadcast %144 : vector<16x1xf32> to vector<16x128xf32>
    %146 = arith.subf %140, %145 : vector<16x128xf32>
    %147 = arith.mulf %146, %146 : vector<16x128xf32>
    %cst_78 = arith.constant dense<0.000000e+00> : vector<16xf32>
    %148 = vector.multi_reduction <add>, %147, %cst_78 [1] : vector<16x128xf32> to vector<16xf32>
    %149 = vector.shape_cast %148 : vector<16xf32> to vector<16x1xf32>
    %cst_79 = arith.constant 1.280000e+02 : f32
    %150 = vector.broadcast %cst_79 : f32 to vector<16x1xf32>
    %151 = arith.divf %149, %150 : vector<16x1xf32>
    %cst_80 = arith.constant 9.99999974E-6 : f32
    %152 = vector.broadcast %cst_80 : f32 to vector<16x1xf32>
    %153 = arith.addf %151, %152 : vector<16x1xf32>
    %154 = math.rsqrt %153 : vector<16x1xf32>
    %155 = vector.broadcast %154 : vector<16x1xf32> to vector<16x128xf32>
    %156 = arith.mulf %146, %155 : vector<16x128xf32>
    %c0_81 = arith.constant 0 : index
    %c0_82 = arith.constant 0 : index
    %157 = vector.load %arg23[%c0_81, %c0_82] : memref<1x128xf32, #tpu.memory_space<vmem>>, vector<1x128xf32>
    %158 = vector.broadcast %157 : vector<1x128xf32> to vector<16x128xf32>
    %159 = arith.mulf %156, %158 : vector<16x128xf32>
    %c0_83 = arith.constant 0 : index
    %c0_84 = arith.constant 0 : index
    %160 = vector.load %arg24[%c0_83, %c0_84] : memref<1x128xf32, #tpu.memory_space<vmem>>, vector<1x128xf32>
    %161 = vector.broadcast %160 : vector<1x128xf32> to vector<16x128xf32>
    %162 = arith.addf %159, %161 : vector<16x128xf32>
    %c0_85 = arith.constant 0 : index
    %c0_86 = arith.constant 0 : index
    %c0_87 = arith.constant 0 : index
    %163 = vector.load %arg25[%c0_85, %c0_86, %c0_87] : memref<1x16x128xf32, #tpu.memory_space<vmem>>, vector<1x16x128xf32>
    %164 = vector.shape_cast %163 : vector<1x16x128xf32> to vector<16x128xf32>
    %165 = vector.shape_cast %162 : vector<16x128xf32> to vector<1x16x128xf32>
    tpu.vector_store %arg25[%c0_85, %c0_86, %c0_87], %165 {strides = array<i32>} : memref<1x16x128xf32, #tpu.memory_space<vmem>>, vector<1x16x128xf32>,
    return
  }
  func.func @transform_0(%arg0: i32, %arg1: i32) -> (i32, i32, i32) {
    %c0_i32 = arith.constant 0 : i32
    %c0_i32_0 = arith.constant 0 : i32
    return %arg0, %arg1, %c0_i32 : i32, i32, i32
  }
  func.func @transform_1(%arg0: i32, %arg1: i32) -> (i32, i32, i32, i32) {
    %c0_i32 = arith.constant 0 : i32
    %c0_i32_0 = arith.constant 0 : i32
    %c0_i32_1 = arith.constant 0 : i32
    %c0_i32_2 = arith.constant 0 : i32
    return %arg0, %c0_i32, %c0_i32_0, %c0_i32_1 : i32, i32, i32, i32
  }
  func.func @transform_2(%arg0: i32, %arg1: i32) -> (i32, i32, i32, i32) {
    %c0_i32 = arith.constant 0 : i32
    %c0_i32_0 = arith.constant 0 : i32
    %c0_i32_1 = arith.constant 0 : i32
    %c0_i32_2 = arith.constant 0 : i32
    return %arg0, %c0_i32, %c0_i32_0, %c0_i32_1 : i32, i32, i32, i32
  }
  func.func @transform_3(%arg0: i32, %arg1: i32) -> (i32, i32, i32, i32) {
    %c0_i32 = arith.constant 0 : i32
    %c0_i32_0 = arith.constant 0 : i32
    %c0_i32_1 = arith.constant 0 : i32
    %c0_i32_2 = arith.constant 0 : i32
    return %arg0, %c0_i32, %c0_i32_0, %c0_i32_1 : i32, i32, i32, i32
  }
  func.func @transform_4(%arg0: i32, %arg1: i32) -> (i32, i32, i32, i32) {
    %c0_i32 = arith.constant 0 : i32
    %c0_i32_0 = arith.constant 0 : i32
    %c0_i32_1 = arith.constant 0 : i32
    %c0_i32_2 = arith.constant 0 : i32
    return %arg0, %c0_i32, %c0_i32_0, %c0_i32_1 : i32, i32, i32, i32
  }
  func.func @transform_5(%arg0: i32, %arg1: i32) -> (i32, i32) {
    %c0_i32 = arith.constant 0 : i32
    %c0_i32_0 = arith.constant 0 : i32
    %c0_i32_1 = arith.constant 0 : i32
    return %c0_i32, %c0_i32_0 : i32, i32
  }
  func.func @transform_6(%arg0: i32, %arg1: i32) -> (i32, i32) {
    %c0_i32 = arith.constant 0 : i32
    %c0_i32_0 = arith.constant 0 : i32
    %c0_i32_1 = arith.constant 0 : i32
    return %c0_i32, %c0_i32_0 : i32, i32
  }
  func.func @transform_7(%arg0: i32, %arg1: i32) -> (i32, i32) {
    %c0_i32 = arith.constant 0 : i32
    %c0_i32_0 = arith.constant 0 : i32
    %c0_i32_1 = arith.constant 0 : i32
    return %c0_i32, %c0_i32_0 : i32, i32
  }
  func.func @transform_8(%arg0: i32, %arg1: i32) -> (i32, i32) {
    %c0_i32 = arith.constant 0 : i32
    %c0_i32_0 = arith.constant 0 : i32
    %c0_i32_1 = arith.constant 0 : i32
    return %c0_i32, %c0_i32_0 : i32, i32
  }
  func.func @transform_9(%arg0: i32, %arg1: i32) -> (i32, i32) {
    %c0_i32 = arith.constant 0 : i32
    %c0_i32_0 = arith.constant 0 : i32
    %c0_i32_1 = arith.constant 0 : i32
    return %c0_i32, %c0_i32_0 : i32, i32
  }
  func.func @transform_10(%arg0: i32, %arg1: i32) -> (i32, i32) {
    %c0_i32 = arith.constant 0 : i32
    %c0_i32_0 = arith.constant 0 : i32
    %c0_i32_1 = arith.constant 0 : i32
    return %c0_i32, %c0_i32_0 : i32, i32
  }
  func.func @transform_11(%arg0: i32, %arg1: i32) -> (i32, i32) {
    %c0_i32 = arith.constant 0 : i32
    %c0_i32_0 = arith.constant 0 : i32
    %c0_i32_1 = arith.constant 0 : i32
    return %c0_i32, %c0_i32_0 : i32, i32
  }
  func.func @transform_12(%arg0: i32, %arg1: i32) -> (i32, i32) {
    %c0_i32 = arith.constant 0 : i32
    %c0_i32_0 = arith.constant 0 : i32
    %c0_i32_1 = arith.constant 0 : i32
    return %c0_i32, %c0_i32_0 : i32, i32
  }
  func.func @transform_13(%arg0: i32, %arg1: i32) -> (i32, i32) {
    %c0_i32 = arith.constant 0 : i32
    %c0_i32_0 = arith.constant 0 : i32
    %c0_i32_1 = arith.constant 0 : i32
    return %c0_i32, %c0_i32_0 : i32, i32
  }
  func.func @transform_14(%arg0: i32, %arg1: i32) -> (i32, i32) {
    %c0_i32 = arith.constant 0 : i32
    %c0_i32_0 = arith.constant 0 : i32
    %c0_i32_1 = arith.constant 0 : i32
    return %c0_i32, %c0_i32_0 : i32, i32
  }
  func.func @transform_15(%arg0: i32, %arg1: i32) -> (i32, i32) {
    %c0_i32 = arith.constant 0 : i32
    %c0_i32_0 = arith.constant 0 : i32
    %c0_i32_1 = arith.constant 0 : i32
    return %c0_i32, %c0_i32_0 : i32, i32
  }
  func.func @transform_16(%arg0: i32, %arg1: i32) -> (i32, i32) {
    %c0_i32 = arith.constant 0 : i32
    %c0_i32_0 = arith.constant 0 : i32
    %c0_i32_1 = arith.constant 0 : i32
    return %c0_i32, %c0_i32_0 : i32, i32
  }
  func.func @transform_17(%arg0: i32, %arg1: i32) -> (i32, i32) {
    %c0_i32 = arith.constant 0 : i32
    %c0_i32_0 = arith.constant 0 : i32
    %c0_i32_1 = arith.constant 0 : i32
    return %c0_i32, %c0_i32_0 : i32, i32
  }
  func.func @transform_18(%arg0: i32, %arg1: i32) -> (i32, i32) {
    %c0_i32 = arith.constant 0 : i32
    %c0_i32_0 = arith.constant 0 : i32
    %c0_i32_1 = arith.constant 0 : i32
    return %c0_i32, %c0_i32_0 : i32, i32
  }
  func.func @transform_19(%arg0: i32, %arg1: i32) -> (i32, i32) {
    %c0_i32 = arith.constant 0 : i32
    %c0_i32_0 = arith.constant 0 : i32
    %c0_i32_1 = arith.constant 0 : i32
    return %c0_i32, %c0_i32_0 : i32, i32
  }
  func.func @transform_20(%arg0: i32, %arg1: i32) -> (i32, i32) {
    %c0_i32 = arith.constant 0 : i32
    %c0_i32_0 = arith.constant 0 : i32
    %c0_i32_1 = arith.constant 0 : i32
    return %c0_i32, %c0_i32_0 : i32, i32
  }
  func.func @transform_21(%arg0: i32, %arg1: i32) -> (i32, i32) {
    %c0_i32 = arith.constant 0 : i32
    %c0_i32_0 = arith.constant 0 : i32
    %c0_i32_1 = arith.constant 0 : i32
    return %c0_i32, %c0_i32_0 : i32, i32
  }
  func.func @transform_22(%arg0: i32, %arg1: i32) -> (i32, i32) {
    %c0_i32 = arith.constant 0 : i32
    %c0_i32_0 = arith.constant 0 : i32
    %c0_i32_1 = arith.constant 0 : i32
    return %c0_i32, %c0_i32_0 : i32, i32
  }
  func.func @transform_23(%arg0: i32, %arg1: i32) -> (i32, i32, i32) {
    %c0_i32 = arith.constant 0 : i32
    %c0_i32_0 = arith.constant 0 : i32
    return %arg0, %arg1, %c0_i32 : i32, i32, i32
  }
}

</mosaic_0001>

<bundles_post_ra>
// kernel: tpu_custom_call.1
= control target key start
LH: loop header
LB: loop body
LE: loop exit
PB: predicated region body
PF: predicated region fallthrough
CT: control target
= control target key end

     0   :  { %s6615_s0 = inlined_call_operand.hbm [shape: bf16[2,32,128], index: 0, kind: input, shape index: {}]   ;;  %s6616_s1 = inlined_call_operand.hbm [shape: bf16[2,4,32,32], index: 1, kind: input, shape index: {}]   ;;  %s6617_s2 = inlined_call_operand.hbm [shape: bf16[2,4,32,32], index: 2, kind: input, shape index: {}]   ;;  %s6618_s3 = inlined_call_operand.hbm [shape: bf16[2,4,24,32], index: 3, kind: input, shape index: {}]   ;;  %s6619_s4 = inlined_call_operand.hbm [shape: bf16[2,4,24,32], index: 4, kind: input, shape index: {}]   ;;  %s6620_s5 = inlined_call_operand.hbm [shape: bf16[128,128], index: 5, kind: input, shape index: {}]   ;;  %s6621_s6 = inlined_call_operand.vmem [shape: f32[1,128], index: 6, kind: input, shape index: {}]   ;;  %s6622_s7 = inlined_call_operand.hbm [shape: bf16[128,128], index: 7, kind: input, shape index: {}]   ;;  %s6623_s8 = inlined_call_operand.vmem [shape: f32[1,128], index: 8, kind: input, shape index: {}]   ;;  %s6624_s9 = inlined_call_operand.vmem [shape: f32[1,128], index: 9, kind: input, shape index: {}]   ;;  %s6625_s10 = inlined_call_operand.vmem [shape: f32[1,128], index: 10, kind: input, shape index: {}]   ;;  %s6626_s11 = inlined_call_operand.hbm [shape: bf16[128,128], index: 11, kind: input, shape index: {}]   ;;  %s6627_s12 = inlined_call_operand.vmem [shape: f32[1,128], index: 12, kind: input, shape index: {}]   ;;  %s6628_s13 = inlined_call_operand.hbm [shape: bf16[128,128], index: 13, kind: input, shape index: {}]   ;;  %s6629_s14 = inlined_call_operand.vmem [shape: f32[1,128], index: 14, kind: input, shape index: {}]   ;;  %s6630_s15 = inlined_call_operand.vmem [shape: f32[1,128], index: 15, kind: input, shape index: {}]   ;;  %s6631_s16 = inlined_call_operand.vmem [shape: f32[1,128], index: 16, kind: input, shape index: {}]   ;;  %s6632_s17 = inlined_call_operand.hbm [shape: bf16[128,256], index: 17, kind: input, shape index: {}]   ;;  %s6633_s18 = inlined_call_operand.vmem [shape: f32[1,256], index: 18, kind: input, shape index: {}]   ;;  %s6634_s19 = inlined_call_operand.hbm [shape: bf16[256,128], index: 19, kind: input, shape index: {}]   ;;  %s6635_s20 = inlined_call_operand.vmem [shape: f32[1,128], index: 20, kind: input, shape index: {}]   ;;  %s6636_s21 = inlined_call_operand.vmem [shape: f32[1,128], index: 21, kind: input, shape index: {}]   ;;  %s6637_s22 = inlined_call_operand.vmem [shape: f32[1,128], index: 22, kind: input, shape index: {}]   ;;  %s6638_s23 = inlined_call_operand.hbm [shape: f32[2,32,128], index: 23, kind: output, shape index: {}]  }
   0x1   :  { %6659 = sst [smem:[#allocation42_spill]] %s6615_s0 }
   0x2   :  { %6660 = sst [smem:[#allocation43_spill]] %s6616_s1 }
   0x3   :  { %6661 = sst [smem:[#allocation44_spill]] %s6617_s2 }
   0x4   :  { %6662 = sst [smem:[#allocation45_spill]] %s6618_s3 }
   0x5   :  { %6663 = sst [smem:[#allocation46_spill]] %s6619_s4 }
   0x6   :  { %6664 = sst [smem:[#allocation47_spill]] %s6620_s5 }
   0x7   :  { %6665 = sst [smem:[#allocation48_spill]] %s6621_s6 }
   0x8   :  { %6666 = sst [smem:[#allocation49_spill]] %s6622_s7 }
   0x9   :  { %6667 = sst [smem:[#allocation50_spill]] %s6623_s8 }
   0xa   :  { %6668 = sst [smem:[#allocation51_spill]] %s6624_s9 }
   0xb   :  { %6669 = sst [smem:[#allocation52_spill]] %s6625_s10 }
   0xc   :  { %6670 = sst [smem:[#allocation53_spill]] %s6626_s11 }
   0xd   :  { %6671 = sst [smem:[#allocation54_spill]] %s6627_s12 }
   0xe   :  { %6672 = sst [smem:[#allocation55_spill]] %s6628_s13 }
   0xf   :  { %6673 = sst [smem:[#allocation56_spill]] %s6629_s14 }
  0x10   :  { %6674 = sst [smem:[#allocation57_spill]] %s6630_s15 }
  0x11   :  { %6675 = sst [smem:[#allocation58_spill]] %s6631_s16 }
  0x12   :  { %6676 = sst [smem:[#allocation59_spill]] %s6632_s17 }
  0x13   :  { %6677 = sst [smem:[#allocation60_spill]] %s6633_s18 }
  0x14   :  { %6678 = sst [smem:[#allocation61_spill]] %s6634_s19 }
  0x15   :  { %6679 = sst [smem:[#allocation62_spill]] %s6635_s20 }
  0x16   :  { %6680 = sst [smem:[#allocation63_spill]] %s6636_s21 }
  0x17   :  { %6681 = sst [smem:[#allocation64_spill]] %s6637_s22 }
  0x18   :  { %6682 = sst [smem:[#allocation65_spill]] %s6638_s23 }
  0x19   :  { %28 = vsyncpa [#allocation3], 0 }
  0x1a   :  { %30 = vsyncpa [#allocation3 + $0x1], 0 }
  0x1b   :  { %31 = vsyncpa [#allocation6], 0 }
  0x1c   :  { %33 = vsyncpa [#allocation6 + $0x1], 0 }
  0x1d   :  { %34 = vsyncpa [#allocation9], 0 }
  0x1e   :  { %36 = vsyncpa [#allocation9 + $0x1], 0 }
  0x1f   :  { %37 = vsyncpa [#allocation12], 0 }
  0x20   :  { %38 = vsyncpa [#allocation15], 0 }
  0x21   :  { %39 = vsyncpa [#allocation18], 0 }
  0x22   :  { %40 = vsyncpa [#allocation4], 0 }
  0x23   :  { %42 = vsyncpa [#allocation4 + $0x1], 0  ;;  %s5578_s4 = smov 0   ;;  %s5580_s30 = smov 0  }
  0x24   :  { %s5582_s24 = smov 0   ;;  %s5584_s25 = smov 0  }
  0x25   :  { %s5586_s5 = smov 0   ;;  %s5588_s1 = smov 0  }
  0x26   :  { %s5590_s26 = smov 0   ;;  %s5592_s2 = smov 0  }
  0x27   :  { %s5594_s6 = smov 0   ;;  %s5596_s27 = smov 0  }
  0x28   :  { %s5598_s7 = smov 0  }
  0x29 LB: > { %6683 = sst [smem:[#allocation28_spill]] %s5401_s30  ;;  %s5634_s28 = sadd.s32 4294967295, %s5437_s7   ;;  %s5437_s7 = sphi %s5598_s7, %s48_s7   ;;  %s5433_s27 = sphi %s5596_s27, %s6779_s27   ;;  %s5429_s6 = sphi %s5594_s6, %s6778_s6   ;;  %s5425_s2 = sphi %s5592_s2, %s6777_s2   ;;  %s5421_s26 = sphi %s5590_s26, %s6776_s26   ;;  %s5417_s1 = sphi %s5588_s1, %s6775_s1   ;;  %s5413_s5 = sphi %s5586_s5, %s6774_s5   ;;  %s5409_s25 = sphi %s5584_s25, %s6773_s25   ;;  %s5405_s24 = sphi %s5582_s24, %s6772_s24   ;;  %s5401_s30 = sphi %s5580_s30, %s6771_s30   ;;  %s5397_s4 = sphi %s5578_s4, %s6766_s4  }
  0x2a   : > { %6684 = sst [smem:[#allocation29_spill]] %s5409_s25  ;;  %p4114_p0 = scmp.ge.s32.totalorder %s5437_s7, 1 }
  0x2b   : > { %6685 = sst [smem:[#allocation30_spill]] %s5421_s26  ;;  %p6650_p1 = scmp.eq.s32.totalorder %s5634_s28, 0 }
  0x2c   : > { %6686 = sst [smem:[#allocation31_spill]] %s5425_s2  ;;  %p603_p2 = scmp.lt.s32.totalorder %s5437_s7, 5 }
  0x2d   : > { %s6687_s0 = sld [smem:[#allocation47_spill]]  ;;  %s5439_s21 = smov [#allocation11]  }
  0x2e   : > { %p5642_p3 = pnand %p4114_p0, %p603_p2  ;;  %s616_s2 = sshll.u32 %s5439_s21, 4  ;;  %s617_s2 = int_to_ptr.vmem [resolvable:$true] %s616_s2 }
  0x2f   : > { %s6691_s11 = sld [smem:[#allocation53_spill]]  ;;  %s6640_s3 = smov 64  }
  0x30   : > { %s6688_s22 = scalar_select %p5642_p3, 1, 0 }
  0x31   : > { %p4656_p4 = pneg %p5642_p3  ;;  %s5442_s21 = smov [#allocation14]  }
  0x32   : > { %6689 = sst [smem:[#allocation32_spill]] %s6688_s22  ;;  %s656_s16 = sshll.u32 %s5442_s21, 4  ;;  %s657_s16 = int_to_ptr.vmem [resolvable:$true] %s656_s16 }
  0x33   : > { %s614_s23 = sshll.u32 %s6687_s0, 4  ;;  %p5650_p5 = pnand %p4656_p4, %p6650_p1  ;;  %s615_s23 = int_to_ptr.hbm [resolvable:$true] %s614_s23 }
  0x34   : > { %s6642_s0 = smov 4   ;;  %s6692_s17 = sld [smem:[#allocation59_spill]] }
  0x35   : > { %s654_s29 = sshll.u32 %s6691_s11, 4  ;;  %s5444_s21 = smov 128   ;;  %s655_s29 = int_to_ptr.hbm [resolvable:$true] %s654_s29 }
  0x36   : > { %4659 = dma.hbm_to_vmem [thread:$0]  (!%p5650_p5), %s615_s23, 1024, %s617_s2, [#allocation12], %s6640_s3, %s6640_s3, %s6642_s0  }
  0x37   : > { %4665 = dma.hbm_to_vmem [thread:$0]  (!%p5650_p5), %s655_s29, 1024, %s657_s16, [#allocation15], %s6640_s3, %s6640_s3, %s6642_s0  }
  0x38   : > { %s5443_s23 = smov [#allocation17]   ;;  %s5445_s14 = smov 8  }
  0x39   : > { %s696_s2 = sshll.u32 %s5443_s23, 4  ;;  %p77_p6 = scmp.eq.s32.totalorder %s5437_s7, 0  ;;  %s697_s2 = int_to_ptr.vmem [resolvable:$true] %s696_s2 }
  0x3a   : > { %s694_s15 = sshll.u32 %s6692_s17, 4  ;;  %p102_p7 = scmp.ne.s32.totalorder %s5405_s24, %s5401_s30  ;;  %s695_s15 = int_to_ptr.hbm [resolvable:$true] %s694_s15 }
  0x3b   : > { %4671 = dma.hbm_to_vmem [thread:$0]  (!%p5650_p5), %s695_s15, 2048, %s697_s2, [#allocation18], %s5444_s21, %s5444_s21, %s5445_s14  }
  0x3c   : > { %p108_p8 = scmp.ne.s32.totalorder %s5401_s30, %s5397_s4  ;;  %p6651_p9 = scmp.lt.s32.totalorder %s5437_s7, 4 }
  0x3d   : > { %p104_p10 = por %p102_p7, %p77_p6  ;;  %s762_s16 = sand.u32 1, %s5405_s24  }
  0x3e   : > { %p5684_p11 = por %p108_p8, %p6650_p1  ;;  %s4524_s23 = sshll.u32 %s5433_s27, 6 }
  0x3f   : > { %s4126_s3 = sshll.u32 %s762_s16, 6  ;;  %s6695_s15 = sld [smem:[#allocation43_spill]] }
  0x40   : > { %s6693_s29 = scalar_select %p5684_p11, 1, 0 }
  0x41   : > { %s764_s4 = scalar_lea.vmem [#allocation5], %s4126_s3  ;;  %p5695_p12 = pnand %p6651_p9, %p104_p10 }
  0x42   : > { %6694 = sst [smem:[#allocation33_spill]] %s6693_s29  ;;  %s772_s11 = sshll.u32 %s764_s4, 4  ;;  %s773_s11 = int_to_ptr.vmem [resolvable:$true] %s772_s11 }
  0x43   : > { %s6697_s10 = sld [smem:[#allocation44_spill]]  ;;  %s6698_s0 = sand.u32 1, %s5437_s7  }
  0x44   : > { %s5704_s14 = scalar_lea.sflag [#allocation6], %s6698_s0  ;;  %s786_s4 = scalar_lea.vmem [#allocation7], %s4126_s3 }
  0x45   : > { %s769_s2 = scalar_lea.hbm %s6695_s15, %s4524_s23  ;;  %s6699_s15 = smov 4  }
  0x46   : > { %s770_s21 = sshll.u32 %s769_s2, 4  ;;  %s6700_s2 = smov 64   ;;  %s771_s21 = int_to_ptr.hbm [resolvable:$true] %s770_s21 }
  0x47   : > { %4681 = dma.hbm_to_vmem [thread:$0]  (!%p5695_p12), %s771_s21, 1024, %s773_s11, %s5704_s14, %s6700_s2, %s6700_s2, %s6699_s15  }
  0x48   : > { %s5714_s26 = sshll.u32 %s786_s4, 4  ;;  %s6703_s17 = sld [smem:[#allocation49_spill]] }
  0x49   : > { %s791_s9 = scalar_lea.hbm %s6697_s10, %s4524_s23  ;;  %6702 = sst [smem:[#allocation35_spill]] %s5714_s26 }
  0x4a   : > { %s792_s8 = sshll.u32 %s791_s9, 4  ;;  %s5717_s10 = smul.u32 48, %s762_s16  ;;  %s5712_s8 = int_to_ptr.hbm [resolvable:$true] %s792_s8 }
  0x4b   : > { %6701 = sst [smem:[#allocation34_spill]] %s5712_s8  ;;  %s6652_s0 = smul.u32 48, %s5433_s27 }
  0x4c   : > { %s6704_s29 = sld [smem:[#allocation45_spill]]  ;;  %s808_s30 = scalar_lea.vmem [#allocation8], %s5717_s10 }
  0x4d   : > { %s816_s4 = sshll.u32 %s808_s30, 4  ;;  %s5446_s16 = smov [#allocation13]   ;;  %s817_s4 = int_to_ptr.vmem [resolvable:$true] %s816_s4 }
  0x4e   : > { %s631_s23 = sshll.u32 %s6703_s17, 4  ;;  %s633_s26 = sshll.u32 %s5446_s16, 4  ;;  %s632_s23 = int_to_ptr.hbm [resolvable:$true] %s631_s23  ;;  %s634_s26 = int_to_ptr.vmem [resolvable:$true] %s633_s26 }
  0x4f   : > { %s6705_s8 = sand.u32 1, %s5437_s7   ;;  %s6706_s13 = sld [smem:[#allocation55_spill]] }
  0x50   : > { %s5731_s9 = scalar_lea.sflag [#allocation9], %s6705_s8  ;;  %s5447_s8 = smov [#allocation16]  }
  0x51   : > { %4662 = dma.hbm_to_vmem [thread:$0]  (!%p5650_p5), %s632_s23, 1024, %s634_s26, [#allocation12], %s6700_s2, %s6700_s2, %s6699_s15  }
  0x52   : > { %s813_s3 = scalar_lea.hbm %s6704_s29, %s6652_s0  ;;  %s6707_s19 = sld [smem:[#allocation61_spill]] }
  0x53   : > { %s814_s22 = sshll.u32 %s813_s3, 4  ;;  %s5448_s26 = smov [#allocation19]   ;;  %s815_s22 = int_to_ptr.hbm [resolvable:$true] %s814_s22 }
  0x54   : > { %4687 = dma.hbm_to_vmem [thread:$0]  (!%p5695_p12), %s815_s22, 768, %s817_s4, %s5731_s9, %s6700_s2, %s6700_s2, %s6699_s15  }
  0x55   : > { %s671_s12 = sshll.u32 %s6706_s13, 4  ;;  %s673_s22 = sshll.u32 %s5447_s8, 4  ;;  %s672_s12 = int_to_ptr.hbm [resolvable:$true] %s671_s12  ;;  %s674_s22 = int_to_ptr.vmem [resolvable:$true] %s673_s22 }
  0x56   : > { %4668 = dma.hbm_to_vmem [thread:$0]  (!%p5650_p5), %s672_s12, 1024, %s674_s22, [#allocation15], %s6700_s2, %s6700_s2, %s6699_s15  }
  0x57   : > { %s713_s23 = sshll.u32 %s5448_s26, 4  ;;  %s4113_s3 = sadd.s32 4294967294, %s5437_s7   ;;  %s714_s23 = int_to_ptr.vmem [resolvable:$true] %s713_s23 }
  0x58   : > { %s711_s21 = sshll.u32 %s6707_s19, 4  ;;  %s57_s4 = sadd.s32 1, %s5429_s6  ;;  %s712_s21 = int_to_ptr.hbm [resolvable:$true] %s711_s21 }
  0x59   : > { %4674 = dma.hbm_to_vmem [thread:$0]  (!%p5650_p5), %s712_s21, 2048, %s714_s23, [#allocation18], %s6700_s2, %s6700_s2, %s6699_s15  }
  0x5a   : > { %s60_s16 = sadd.s32 1, %s5433_s27  ;;  %p58_p13 = scmp.ge.s32.totalorder %s57_s4, 2 }
  0x5b   : > { %s69_s30 = sadd.s32 1, %s5417_s1  ;;  %p76_p0 = scmp.ne.s32.totalorder %s5417_s1, %s5413_s5 }
  0x5c   : > { %p82_p2 = scmp.ne.s32.totalorder %s5413_s5, %s5409_s25  ;;  %s6781_s4 = smov (%p58_p13, %s57_s4), 0 }
  0x5d   : > { %6708 = sst [smem:[#allocation36_spill]] %s6781_s4  ;;  %s6783_s16 = smov (!%p58_p13, %s60_s16), %s5433_s27 }
  0x5e   : > { %s65_s20 = ssub.s32 %s5429_s6, %s6781_s4  ;;  %p5775_p4 = por %p77_p6, %p76_p0 }
  0x5f   : > { %p62_p5 = scmp.ge.s32.totalorder %s6783_s16, 2  ;;  %p5781_p7 = por %p6650_p1, %p82_p2 }
  0x60   : > { %p590_p8 = scmp.eq.s32.totalorder %s5634_s28, 3  ;;  %p596_p10 = scmp.eq.s32.totalorder %s4113_s3, 3 }
  0x61   : > { %s6785_s16 = smov (%p62_p5, %s6783_s16), 0  ;;  %s736_s11 = sand.u32 1, %s5417_s1  }
  0x62   : > { %6711 = sst [smem:[#allocation37_spill]] %s6785_s16  ;;  %p5788_p13 = por %p590_p8, %p76_p0 }
  0x63   : > { %p5792_p6 = por %p596_p10, %p82_p2  ;;  %s64_s17 = ssub.s32 %s5433_s27, %s6785_s16 }
  0x64   : > { %s6712_s8 = scalar_select %p5788_p13, 1, 0 }
  0x65   : > { %s6714_s22 = scalar_select %p5792_p6, 1, 0 }
  0x66   : > { %6713 = sst [smem:[#allocation38_spill]] %s6712_s8  ;;  %s66_s21 = sor.u32 %s65_s20, %s64_s17 }
  0x67   : > { %6715 = sst [smem:[#allocation39_spill]] %s6714_s22  ;;  %p93_p1 = scmp.eq.s32.totalorder %s64_s17, 0 }
  0x68   : > { %p67_p9 = scmp.eq.s32.totalorder %s66_s21, 0  ;;  %s6716_s26 = sadd.s32 1, %s5405_s24 }
  0x69   : > { %s5802_s23 = scalar_select %p93_p1, %s5405_s24, %s6716_s26  }
  0x6a   : > { %s6718_s3 = sld [smem:[#allocation35_spill]]  ;;  %s4122_s19 = sshll.u32 %s736_s11, 3 }
  0x6b   : > { %6717 = sst [smem:[#allocation40_spill]] %s5802_s23  ;;  %s4123_s4 = sshll.u32 %s5429_s6, 1 }
  0x6c   : > { %s6719_s0 = sld [smem:[#allocation34_spill]]  ;;  %s4124_s16 = sshll.u32 %s5433_s27, 2 }
  0x6d   : > { %s5805_s13 = scalar_select %p67_p9, %s5417_s1, %s69_s30  }
  0x6e   : > { %s745_s22 = sadd.s32 %s4124_s16, %s4123_s4  ;;  %s740_s25 = scalar_lea.vmem [#allocation2], %s4122_s19 }
  0x6f   : > { %6720 = sst [smem:[#allocation41_spill]] %s5805_s13  ;;  %s750_s8 = sshll.u32 %s740_s25, 4  ;;  %s751_s8 = int_to_ptr.vmem [resolvable:$true] %s750_s8 }
  0x70   : > { %s4125_s20 = sshll.u32 %s745_s22, 2  ;;  %s6721_s26 = sld [smem:[#allocation42_spill]] }
  0x71   : > { %p6722_p1 = scmp.lt.s32.totalorder %s5437_s7, 4  ;;  %s737_s13 = scalar_lea.sflag [#allocation3], %s736_s11 }
  0x72   : > { %s6723_s19 = int_to_ptr.vmem [resolvable:$true] %s6718_s3  ;;  %s6724_s25 = smul.u32 48, %s5433_s27 }
  0x73   : > { %p4676_p9 = pnand %p6722_p1, %p5775_p4  ;;  %s6725_s22 = sld [smem:[#allocation46_spill]] }
  0x74   : > { %4684 = dma.hbm_to_vmem [thread:$0]  (!%p5695_p12), %s6719_s0, 1024, %s6723_s19, %s5704_s14, %s6700_s2, %s6700_s2, %s6699_s15  }
  0x75   : > { %s5843_s14 = sand.u32 (!%p5642_p3), 1, %s5413_s5  }
  0x76   : > { %s747_s23 = scalar_lea.hbm %s6721_s26, %s4125_s20  ;;  %s830_s20 = scalar_lea.vmem [#allocation10], %s5717_s10 }
  0x77   : > { %s748_s30 = sshll.u32 %s747_s23, 4  ;;  %s838_s17 = sshll.u32 %s830_s20, 4  ;;  %s749_s30 = int_to_ptr.hbm [resolvable:$true] %s748_s30  ;;  %s839_s17 = int_to_ptr.vmem [resolvable:$true] %s838_s17 }
  0x78   : > { %4678 = dma.hbm_to_vmem [thread:$0]  (!%p4676_p9), %s749_s30, 128, %s751_s8, %s737_s13, %s6700_s2, %s6700_s2, %s6699_s15  }
  0x79   : > { %s835_s29 = scalar_lea.hbm %s6725_s22, %s6724_s25  ;;  %850 = sbr.rel (%p5642_p3) target bundleno = 3589 (0xe05), region = 112 }
  0x7a   : > { %s836_s23 = sshll.u32 %s835_s29, 4  ;;  %s4135_s0 = sshll.u32 (!%p5642_p3), %s5843_s14, 3  ;;  %s837_s23 = int_to_ptr.hbm [resolvable:$true] %s836_s23 }
  0x7b   : > { %4690 = dma.hbm_to_vmem [thread:$0]  (!%p5695_p12), %s837_s23, 768, %s839_s17, %s5731_s9, %s6700_s2, %s6700_s2, %s6699_s15  }
  0x7c   : > { %s853_s10 = scalar_lea.sflag (!%p5642_p3), [#allocation3], %s5843_s14  ;;  %s5847_s8 = scalar_lea.vmem (!%p5642_p3), [#allocation2], %s4135_s0 }
  0x7e   : > { %5368 = dma.done.wait (%p5781_p7), %s853_s10, 128  }
  0x7f   : > { %5370 = vsyncadd (%p5781_p7), %s853_s10, 4294967168  ;;  %s6727_s18 = sld [smem:[#allocation28_spill]]  ;;  %s862_s2 = sand.u32 1, %s5634_s28  }
  0x80   : > { %s863_s3 = scalar_lea.sflag [#allocation6], %s862_s2 }
  0x85   : > { %s864_s9 = sand.u32 1, %s6727_s18  }
  0x86   : > { %s4136_s11 = sshll.u32 %s864_s9, 6 }
  0x87   : > { %s5855_s21 = scalar_lea.vmem [#allocation5], %s4136_s11 }
  0x88   : > { %5372 = dma.done.wait (%p5684_p11), %s863_s3, 2048  }
  0x89   : > { %5374 = vsyncadd (%p5684_p11), %s863_s3, 4294965248  ;;  %s4619_s26 = smul.u32 48, %s864_s9  ;;  %s5861_s30 = scalar_lea.vmem [#allocation7], %s4136_s11 }
  0x8a   : > { %s883_s12 = scalar_lea.sflag [#allocation9], %s862_s2 }
  0x8b   : > { %s5863_s19 = scalar_lea.vmem [#allocation8], %s4619_s26 }
  0x8c   : > { %5376 = dma.done.wait (%p5684_p11), %s883_s12, 1536  }
  0x8d   : > { %5378 = vsyncadd (%p5684_p11), %s883_s12, 4294965760  ;;  %s5869_s25 = scalar_lea.vmem [#allocation10], %s4619_s26  ;;  %p6729_p3 = scmp.eq.s32.totalorder %s5634_s28, 0 }
  0x8f   : > { %5380 = dma.done.wait (%p6729_p3), [#allocation12], 2048   ;;  %p6730_p12 = pmov %p6729_p3 }
  0x90   : > { %p6731_p0 = pmov %p6729_p3 }
  0x91   : > { %5382 = vsyncadd (%p6730_p12), [#allocation12], 4294965248 }
  0x92   : > { %5384 = dma.done.wait (%p6731_p0), [#allocation15], 2048   ;;  %p6732_p2 = pmov %p6731_p0 }
  0x93   : > { %p6733_p4 = pmov %p6731_p0 }
  0x94   : > { %5386 = vsyncadd (%p6732_p2), [#allocation15], 4294965248 }
  0x95   : > { %5388 = dma.done.wait (%p6733_p4), [#allocation18], 4096   ;;  %p6734_p5 = pmov %p6731_p0 }
  0x96   : > { %v4550_v0 = vld [vmem:[#allocation11 + $0x38] sm:$0xff]  ;;  %v4549_v1 = vld [vmem:[#allocation11 + $0x30] sm:$0xff]  ;;  %v4548_v2 = vld [vmem:[#allocation11 + $0x28] sm:$0xff]  ;;  %s6735_s16 = sld [smem:[#allocation48_spill]]  ;;  %s5449_s22 = smov 96   ;;  %vm1414_vm0 = vcmask 261120  }
  0x97   : > { %5390 = vsyncadd (%p6734_p5), [#allocation18], 4294963200  ;;  %1136 = vmatpush.bf16.msra.mxu0 %v4550_v0  ;;  %v4547_v3 = vld [vmem:[#allocation11 + $0x20] sm:$0xff]  ;;  %v4546_v4 = vld [vmem:[#allocation11 + $0x18] sm:$0xff]  ;;  %s5450_s29 = smov 64   ;;  %s5451_s20 = smov 32  }
  0x98   : > { %v4545_v5 = vld [vmem:[#allocation11 + $0x10] sm:$0xff]  ;;  %v4544_v6 = vld [vmem:[#allocation11 + $0x8] sm:$0xff]  ;;  %v4543_v7 = vld [vmem:[#allocation11] sm:$0xff]  ;;  %v5452_v21 = vmov 1983009808   ;;  %vm1171_vm1 = vcmask 1047556  }
  0x99   : > { %v4526_v8 = vld [vmem:[%s5847_s8] sm:$0xff]  ;;  %v4528_v15 = vld [vmem:[%s5855_s21 + $0x8] sm:$0xff]  ;;  %v4527_v19 = vld [vmem:[%s5855_s21] sm:$0xff]  ;;  %v1176_v22 = vunpack.c.l.s4 %v5452_v21  ;;  %v5453_v40 = vmov 1934713408   ;;  %s6736_s17 = sld [smem:[#allocation30_spill]] }
  0x9a   : > { %v4530_v16 = vld [vmem:[%s5855_s21 + $0x18] sm:$0xff]  ;;  %v1422_v17 = vsel %vm1414_vm0, %v4528_v15, 0  ;;  %v4529_v20 = vld [vmem:[%s5855_s21 + $0x10] sm:$0xff]  ;;  %v1419_v30 = vsel %vm1414_vm0, %v4527_v19, 0  ;;  %v1200_v41 = vunpack.c.l.s4 %v5453_v40  ;;  %s6737_s10 = sld [smem:[#allocation50_spill]]  ;;  %s3862_s0 = scalar_lea.sflag [#allocation4], %s5843_s14 }
  0x9b   : > { %1137 = vmatpush.bf16.msra.mxu0 %v4549_v1  ;;  %v1460_v18 = vsel %vm1414_vm0, %v4530_v16, 0  ;;  %1430 = vmatpush.bf16.xpose.msra.mxu1 %v1422_v17  ;;  %v1457_v31 = vsel %vm1414_vm0, %v4529_v20, 0  ;;  %v5898_v34 = vunpack.c.0.s8 %v1176_v22  ;;  %v4534_v0 = vld [vmem:[%s5855_s21 + $0x38] sm:$0xff]  ;;  %v4532_v1 = vld [vmem:[%s5855_s21 + $0x28] sm:$0xff]  ;;  %s6738_s15 = sld [smem:[#allocation51_spill]] }
  0x9c   : > { %v4876_v10 = vld [vmem:[%s6735_s16] ss:$0 sm:$0xff]  ;;  %1468 = vmatpush.bf16.xpose.msra.mxu3 %v1460_v18  ;;  %v5908_v51 = vunpack.c.0.s8 %v1200_v41  ;;  %s6739_s11 = sld [smem:[#allocation52_spill]] }
  0x9d   : > { %s6740_s26 = sld [smem:[#allocation54_spill]] }
  0x9e   : > { %s6754_s4 = sld [smem:[#allocation57_spill]] }
  0x9f   : > { %1138 = vmatpush.bf16.msra.mxu0 %v4548_v2  ;;  %s4145_s23 = sshll.u32 %s6736_s17, 4  ;;  %s6756_s13 = sld [smem:[#allocation60_spill]] }
  0xa0   : > { %s6758_s18 = sld [smem:[#allocation31_spill]] }
  0xa1   : > { %s6759_s3 = sld [smem:[#allocation63_spill]] }
  0xa2   : > { %s6760_s12 = sld [smem:[#allocation64_spill]] }
  0xa3   : > { %1139 = vmatpush.bf16.msra.mxu0 %v4547_v3  ;;  %1431 = vmatpush.bf16.xpose.msra.mxu1 %v1419_v30 }
  0xa4   : > { %1469 = vmatpush.bf16.xpose.msra.mxu3 %v1457_v31 }
  0xa6   : > { %s4520_s2 = sshll.u32 %s6758_s18, 2 }
  0xa7   : > { %1140 = vmatpush.bf16.msra.mxu0 %v4546_v4 }
  0xab   : > { %1141 = vmatpush.bf16.msra.mxu0 %v4545_v5 }
  0xaf   : > { %1142 = vmatpush.bf16.msra.mxu0 %v4544_v6 }
  0xb3   : > { %1143 = vmatpush.bf16.msra.mxu0 %v4543_v7 }
  0xb6   : > { %1144 = vmatmul.bf16.vlgmr.msra.gmra.mxu0 %v4526_v8  ;;  %v1536_v8 = vsel %vm1414_vm0, %v4534_v0, 0 }
  0xb7   : > { %1544 = vmatpush.bf16.xpose.msrb.mxu1 %v1536_v8 }
 0x133   : > { %v1145_v9 = vpop.f32.mrf.mxu0 }
 0x134   : > { %v1146_v12 = vadd.f32 %v4876_v10, %v1145_v9  ;;  %v1498_v9 = vsel %vm1414_vm0, %v4532_v1, 0 }
 0x135   : > { %1506 = vmatpush.bf16.xpose.msrb.mxu3 %v1498_v9 }
 0x136   : > { %v1173_v28 = vrot.slane %v1146_v12, 4 }
 0x13b   : > { %v1147_v11 = vpop.f32.mrf.mxu0 }
 0x13c   : > { %v1148_v13 = vadd.f32 %v4876_v10, %v1147_v11 }
 0x13e   : > { %v4826_v14 = vpack.i.bf16 %v1148_v13, %v1146_v12  ;;  %v1229_v27 = vrot.slane %v1148_v13, 4 }
 0x140   : > { %4827 = vrot.lane.b32.xlu1 %v4826_v14, %s5449_s22  ;;  %4817 = vrot.lane.b32.xlu0 %v4826_v14, %s5450_s29 }
 0x148   : > { %4822 = vrot.lane.b32.xlu0 %v4826_v14, %s5451_s20 }
 0x1b2   : > { %v4818_v23 = vpop.permute.xlu0 %4817  ;;  %v4828_v24 = vpop.permute.xlu1 %4827 }
 0x1b3   : > { %v4820_v25 = vunpack.i.h.bf16 %v4818_v23  ;;  %v4819_v26 = vunpack.i.l.bf16 %v4818_v23  ;;  %v4830_v32 = vunpack.i.h.bf16 %v4828_v24  ;;  %v4829_v33 = vunpack.i.l.bf16 %v4828_v24 }
 0x1b5   : > { %v1227_v29 = vrot.slane %v4820_v25, 4  ;;  %v1170_v35 = vrot.slane %v4819_v26, 4  ;;  %v1230_v36 = vsel %vm1171_vm1, %v4820_v25, %v1229_v27  ;;  %v1174_v37 = vsel %vm1171_vm1, %v4819_v26, %v1173_v28 }
 0x1b6   : > { %v1241_v42 = vrot.slane %v4830_v32, 4  ;;  %v1185_v43 = vrot.slane %v4829_v33, 4  ;;  %v1238_v44 = vperm.slane %v1230_v36, %v5898_v34  ;;  %v1182_v45 = vperm.slane %v1174_v37, %v5898_v34 }
 0x1b7   : > { %v1228_v38 = vsel %vm1171_vm1, %v1227_v29, %v1148_v13  ;;  %v1172_v39 = vsel %vm1171_vm1, %v1170_v35, %v1146_v12 }
 0x1b8   : > { %v1234_v47 = vperm.slane %v1228_v38, %v5898_v34  ;;  %v1178_v48 = vperm.slane %v1172_v39, %v5898_v34  ;;  %v1265_v56 = vrot.slane %v1238_v44, 4  ;;  %v1209_v57 = vrot.slane %v1182_v45, 4 }
 0x1ba   : > { %v4823_v46 = vpop.permute.xlu0 %4822  ;;  %v1253_v60 = vrot.slane %v1234_v47, 4  ;;  %v1197_v61 = vrot.slane %v1178_v48, 4 }
 0x1bb   : > { %v4825_v49 = vunpack.i.h.bf16 %v4823_v46  ;;  %v4824_v50 = vunpack.i.l.bf16 %v4823_v46 }
 0x1bd   : > { %v1239_v52 = vrot.slane %v4825_v49, 4  ;;  %v1242_v53 = vsel %vm1171_vm1, %v4825_v49, %v1241_v42  ;;  %v1183_v54 = vrot.slane %v4824_v50, 4  ;;  %v1186_v55 = vsel %vm1171_vm1, %v4824_v50, %v1185_v43  ;;  %v4533_v50 = vld [vmem:[%s5855_s21 + $0x30] sm:$0xff] }
 0x1be   : > { %v1250_v58 = vperm.slane %v1242_v53, %v5898_v34  ;;  %v1194_v59 = vperm.slane %v1186_v55, %v5898_v34  ;;  %v4531_v55 = vld [vmem:[%s5855_s21 + $0x20] sm:$0xff] }
 0x1bf   : > { %v1240_v62 = vsel %vm1171_vm1, %v1239_v52, %v4830_v32  ;;  %v1184_v63 = vsel %vm1171_vm1, %v1183_v54, %v4829_v33 }
 0x1c0   : > { %v1246_v2 = vperm.slane %v1240_v62, %v5898_v34  ;;  %v1263_v3 = vrot.slane %v1250_v58, 4  ;;  %v1190_v4 = vperm.slane %v1184_v63, %v5898_v34  ;;  %v1207_v5 = vrot.slane %v1194_v59, 4 }
 0x1c1   : > { %v1210_v6 = vsel %vm1171_vm1, %v1194_v59, %v1209_v57  ;;  %v1266_v7 = vsel %vm1171_vm1, %v1250_v58, %v1265_v56 }
 0x1c2   : > { %v1251_v10 = vrot.slane %v1246_v2, 4  ;;  %v1195_v11 = vrot.slane %v1190_v4, 4  ;;  %v1198_v12 = vsel %vm1171_vm1, %v1190_v4, %v1197_v61  ;;  %v1208_v13 = vsel %vm1171_vm1, %v1207_v5, %v1182_v45 }
 0x1c3   : > { %v1206_v14 = vperm.slane %v1198_v12, %v5908_v51  ;;  %v1214_v15 = vperm.slane %v1208_v13, %v5908_v51  ;;  %v1218_v16 = vperm.slane %v1210_v6, %v5908_v51  ;;  %v1254_v17 = vsel %vm1171_vm1, %v1246_v2, %v1253_v60 }
 0x1c4   : > { %v1196_v18 = vsel %vm1171_vm1, %v1195_v11, %v1178_v48  ;;  %v1252_v19 = vsel %vm1171_vm1, %v1251_v10, %v1234_v47  ;;  %v1262_v20 = vperm.slane %v1254_v17, %v5908_v51  ;;  %v1264_v21 = vsel %vm1171_vm1, %v1263_v3, %v1238_v44 }
 0x1c5   : > { %v1202_v22 = vperm.slane %v1196_v18, %v5908_v51  ;;  %v1221_v23 = vrot.slane %v1206_v14, 4  ;;  %v1223_v24 = vrot.slane %v1214_v15, 4  ;;  %v1225_v25 = vrot.slane %v1218_v16, 4 }
 0x1c6   : > { %v1258_v26 = vperm.slane %v1252_v19, %v5908_v51  ;;  %v1270_v27 = vperm.slane %v1264_v21, %v5908_v51  ;;  %v1274_v28 = vperm.slane %v1266_v7, %v5908_v51  ;;  %v1277_v29 = vrot.slane %v1262_v20, 4 }
 0x1c7   : > { %v1219_v30 = vrot.slane %v1202_v22, 4  ;;  %v1222_v31 = vsel %vm1171_vm1, 0.0, %v1221_v23  ;;  %v1224_v32 = vsel %vm1171_vm1, 0.0, %v1223_v24  ;;  %v1226_v33 = vsel %vm1171_vm1, 0.0, %v1225_v25 }
 0x1c8   : > { %v1275_v35 = vrot.slane %v1258_v26, 4  ;;  %v1278_v36 = vsel %vm1171_vm1, 0.0, %v1277_v29  ;;  %v1279_v37 = vrot.slane %v1270_v27, 4  ;;  %v1281_v38 = vrot.slane %v1274_v28, 4 }
 0x1c9   : > { %v1220_v39 = vsel %vm1171_vm1, 0.0, %v1219_v30  ;;  %v1288_v40 = vrot.slane %v1222_v31, 4  ;;  %v1299_v41 = vrot.slane %v1226_v33, 4  ;;  %v1342_v45 = vrot.slane %v1278_v36, 4 }
 0x1ca   : > { %v1276_v42 = vsel %vm1171_vm1, 0.0, %v1275_v35  ;;  %v1280_v43 = vsel %vm1171_vm1, 0.0, %v1279_v37  ;;  %v1282_v44 = vsel %vm1171_vm1, 0.0, %v1281_v38  ;;  %v1294_v46 = vsel %vm1171_vm1, %v1225_v25, %v1214_v15 }
 0x1cb   : > { %v1300_v47 = vsel %vm1171_vm1, %v1299_v41, %v1224_v32  ;;  %v1353_v48 = vrot.slane %v1282_v44, 4  ;;  %v1283_v49 = vsel %vm1171_vm1, %v1221_v23, %v1202_v22  ;;  %v1348_v52 = vsel %vm1171_vm1, %v1281_v38, %v1270_v27 }
 0x1cc   : > { %v1289_v53 = vsel %vm1171_vm1, %v1288_v40, %v1220_v39  ;;  %v1304_v54 = vperm.slane %v1300_v47, %v5898_v34  ;;  %v1337_v58 = vsel %vm1171_vm1, %v1277_v29, %v1258_v26  ;;  %v1343_v59 = vsel %vm1171_vm1, %v1342_v45, %v1276_v42 }
 0x1cd   : > { %v1354_v56 = vsel %vm1171_vm1, %v1353_v48, %v1280_v43  ;;  %v1293_v57 = vperm.slane %v1289_v53, %v5898_v34  ;;  %v1287_v60 = vperm.slane %v1283_v49, %v5898_v34  ;;  %v1298_v61 = vperm.slane %v1294_v46, %v5898_v34 }
 0x1ce   : > { %v1317_v62 = vrot.slane %v1304_v54, 4  ;;  %v1347_v63 = vperm.slane %v1343_v59, %v5898_v34  ;;  %v1341_v1 = vperm.slane %v1337_v58, %v5898_v34  ;;  %v1358_v2 = vperm.slane %v1354_v56, %v5898_v34 }
 0x1cf   : > { %v1305_v0 = vrot.slane %v1293_v57, 4  ;;  %v1533_v3 = vsel %vm1414_vm0, %v4533_v50, 0  ;;  %v1495_v6 = vsel %vm1414_vm0, %v4531_v55, 0  ;;  %v1352_v9 = vperm.slane %v1348_v52, %v5898_v34 }
 0x1d0   : > { %v1318_v4 = vsel %vm1171_vm1, %v1317_v62, %v1298_v61  ;;  %v1359_v5 = vrot.slane %v1347_v63, 4  ;;  %1545 = vmatpush.bf16.xpose.msrb.mxu1 %v1533_v3  ;;  %v1371_v10 = vrot.slane %v1358_v2, 4  ;;  %1507 = vmatpush.bf16.xpose.msrb.mxu3 %v1495_v6  ;;  %v1307_v11 = vrot.slane %v1287_v60, 4 }
 0x1d1   : > { %v1306_v7 = vsel %vm1171_vm1, %v1305_v0, %v1287_v60  ;;  %v1324_v8 = vperm.slane %v1318_v4, %v5908_v51  ;;  %v1319_v14 = vrot.slane %v1298_v61, 4  ;;  %v1361_v16 = vrot.slane %v1341_v1, 4 }
 0x1d2   : > { %v1312_v12 = vperm.slane %v1306_v7, %v5908_v51  ;;  %v1360_v13 = vsel %vm1171_vm1, %v1359_v5, %v1341_v1  ;;  %v1372_v18 = vsel %vm1171_vm1, %v1371_v10, %v1352_v9  ;;  %v1373_v27 = vrot.slane %v1352_v9, 4 }
 0x1d3   : > { %v1329_v15 = vrot.slane %v1324_v8, 4  ;;  %v1366_v17 = vperm.slane %v1360_v13, %v5908_v51  ;;  %v1378_v19 = vperm.slane %v1372_v18, %v5908_v51  ;;  %v1320_v23 = vsel %vm1171_vm1, %v1304_v54, %v1319_v14 }
 0x1d4   : > { %v1331_v20 = vrot.slane %v1312_v12, 4  ;;  %v1308_v30 = vsel %vm1171_vm1, %v1293_v57, %v1307_v11  ;;  %v1362_v31 = vsel %vm1171_vm1, %v1347_v63, %v1361_v16  ;;  %v1328_v35 = vperm.slane %v1320_v23, %v5908_v51 }
 0x1d5   : > { %v1330_v21 = vsel %vm1171_vm1, %v1329_v15, %v1312_v12  ;;  %v1385_v22 = vrot.slane %v1366_v17, 4  ;;  %v1383_v24 = vrot.slane %v1378_v19, 4  ;;  %v1374_v36 = vsel %vm1171_vm1, %v1358_v2, %v1373_v27 }
 0x1d6   : > { %v1391_v25 = vpack.c.bf16 %v1330_v21, %v1330_v21  ;;  %v1332_v26 = vsel %vm1171_vm1, %v1324_v8, %v1331_v20  ;;  %v1382_v40 = vperm.slane %v1374_v36, %v5908_v51  ;;  %v1316_v42 = vperm.slane %v1308_v30, %v5908_v51 }
 0x1d7   : > { %v1386_v28 = vsel %vm1171_vm1, %v1378_v19, %v1385_v22  ;;  %v1393_v29 = vpack.c.bf16 %v1332_v26, %v1332_v26  ;;  %v1384_v32 = vsel %vm1171_vm1, %v1383_v24, %v1366_v17  ;;  %v1370_v43 = vperm.slane %v1362_v31, %v5908_v51 }
 0x1d8   : > { %v1394_v33 = vpack.c.bf16 %v1386_v28, %v1386_v28  ;;  %v1392_v37 = vpack.c.bf16 %v1384_v32, %v1384_v32  ;;  %v1401_v38 = vunpack.c.l.b16 %v1391_v25  ;;  %v1333_v47 = vrot.slane %v1328_v35, 4 }
 0x1d9   : > { %v1440_v39 = vunpack.c.l.b16 %v1393_v29  ;;  %v1387_v48 = vrot.slane %v1382_v40, 4  ;;  %v1335_v49 = vrot.slane %v1316_v42, 4  ;;  %v1389_v50 = vrot.slane %v1370_v43, 4 }
 0x1da   : > { %v1441_v41 = vunpack.c.l.b16 %v1394_v33  ;;  %v1402_v44 = vunpack.c.l.b16 %v1392_v37  ;;  %v1334_v52 = vsel %vm1171_vm1, %v1333_v47, %v1316_v42  ;;  %v1018_v2 = vlaneseq }
 0x1db   : > { %v1388_v53 = vsel %vm1171_vm1, %v1387_v48, %v1370_v43  ;;  %v1336_v54 = vsel %vm1171_vm1, %v1328_v35, %v1335_v49  ;;  %v1390_v55 = vsel %vm1171_vm1, %v1382_v40, %v1389_v50  ;;  %v1395_v56 = vpack.c.bf16 %v1334_v52, %v1334_v52 }
 0x1dc   : > { %v1442_v45 = vpack.c.b16 %v1441_v41, %v1440_v39  ;;  %v1403_v46 = vpack.c.b16 %v1402_v44, %v1401_v38  ;;  %v1396_v57 = vpack.c.bf16 %v1388_v53, %v1388_v53  ;;  %v1397_v58 = vpack.c.bf16 %v1336_v54, %v1336_v54 }
 0x1dd   : > { %v1398_v59 = vpack.c.bf16 %v1390_v55, %v1390_v55  ;;  %v1478_v60 = vunpack.c.l.b16 %v1395_v56  ;;  %v1019_v3 = vshrl.u32 %v1018_v2, 7  ;;  %v1021_v4 = vstv %s4145_s23 }
 0x1de   : > { %4199 = vmatmul.msk.bf16.vlgmr.msra.gmra.mxu3 %vm1414_vm0, %v1442_v45  ;;  %4190 = vmatmul.msk.bf16.vlgmr.msra.gmra.mxu1 %vm1414_vm0, %v1403_v46  ;;  %v1479_v61 = vunpack.c.l.b16 %v1396_v57  ;;  %v1516_v62 = vunpack.c.l.b16 %v1397_v58  ;;  %v1025_v6 = vand.u32 127, %v1018_v2  ;;  %v5454_v8 = vmov 0.0  }
 0x1df   : > { %v1517_v63 = vunpack.c.l.b16 %v1398_v59  ;;  %v1022_v5 = vadd.s32 %v1021_v4, %v1019_v3  ;;  %v1020_v7 = vadd.s32 8, %v1019_v3 }
 0x1e0   : > { %v1480_v0 = vpack.c.b16 %v1479_v61, %v1478_v60 }
 0x1e1   : > { %v1518_v1 = vpack.c.b16 %v1517_v63, %v1516_v62  ;;  %vm1026_vm2 = vcmp.gt.s32.totalorder %v1025_v6, %v1022_v5  ;;  %v1023_v10 = vadd.s32 %v1021_v4, %v1020_v7 }
 0x1e2   : > { %v1028_v9 = vsel %vm1026_vm2, -1e+30, %v5454_v8 }
 0x1e3   : > { %vm1027_vm3 = vcmp.gt.s32.totalorder %v1025_v6, %v1023_v10 }
 0x1e4   : > { %v1029_v15 = vsel %vm1027_vm3, -1e+30, %v5454_v8 }
 0x1ee   : > { %4208 = vmatmul.msk.bf16.vlgmr.msrb.gmra.mxu3 %vm1414_vm0, %v1480_v0  ;;  %4217 = vmatmul.msk.bf16.vlgmr.msrb.gmra.mxu1 %vm1414_vm0, %v1518_v1 }
 0x25b   : > { %v1433_v11 = vpop.f32.mrf.mxu1 }
 0x25c   : > { %v1434_v12 = vadd.f32 %v1433_v11, %v1028_v9 }
 0x25e   : > { %v1552_v13 = vsel %vm1414_vm0, %v1434_v12, -inf }
 0x25f   : > { %1553 = vmax.xlane.f32.xlu1 %v1552_v13 }
 0x261   : > { %v1471_v14 = vpop.f32.mrf.mxu3 }
 0x262   : > { %v1472_v21 = vadd.f32 %v1471_v14, %v1028_v9 }
 0x263   : > { %v1435_v16 = vpop.f32.mrf.mxu1 }
 0x264   : > { %v1436_v17 = vadd.f32 %v1435_v16, %v1029_v15  ;;  %v1558_v23 = vsel %vm1414_vm0, %v1472_v21, -inf  ;;  %v4535_v16 = vld [vmem:[%s5861_s30] sm:$0xff] }
 0x266   : > { %v1555_v18 = vsel %vm1414_vm0, %v1436_v17, -inf }
 0x267   : > { %1556 = vmax.xlane.f32.xlu2 %v1555_v18 }
 0x269   : > { %v1473_v19 = vpop.f32.mrf.mxu3 }
 0x26a   : > { %v1474_v20 = vadd.f32 %v1473_v19, %v1029_v15 }
 0x26b   : > { %v1547_v24 = vpop.f32.mrf.mxu1 }
 0x26c   : > { %v1561_v22 = vsel %vm1414_vm0, %v1474_v20, -inf  ;;  %v1548_v25 = vadd.f32 %v1547_v24, %v1028_v9  ;;  %v4537_v24 = vld [vmem:[%s5861_s30 + $0x10] sm:$0xff] }
 0x26d   : > { %1562 = vmax.xlane.f32.xlu0 %v1561_v22 }
 0x26e   : > { %v1570_v27 = vsel %vm1414_vm0, %v1548_v25, -inf }
 0x26f   : > { %1559 = vmax.xlane.f32.xlu2 %v1558_v23 }
 0x271   : > { %v1509_v26 = vpop.f32.mrf.mxu3 }
 0x272   : > { %v1510_v28 = vadd.f32 %v1509_v26, %v1028_v9 }
 0x273   : > { %v1549_v33 = vpop.f32.mrf.mxu1 }
 0x274   : > { %v1564_v29 = vsel %vm1414_vm0, %v1510_v28, -inf  ;;  %v1550_v35 = vadd.f32 %v1549_v33, %v1029_v15 }
 0x276   : > { %v1573_v36 = vsel %vm1414_vm0, %v1550_v35, -inf }
 0x277   : > { %1571 = vmax.xlane.f32.xlu2 %v1570_v27 }
 0x279   : > { %v1511_v30 = vpop.f32.mrf.mxu3 }
 0x27a   : > { %v1512_v31 = vadd.f32 %v1511_v30, %v1029_v15  ;;  %v4536_v15 = vld [vmem:[%s5861_s30 + $0x8] sm:$0xff] }
 0x27b   : > { %1778 = vmatpush.bf16.msra.mxu2 %v4536_v15 }
 0x27c   : > { %v1567_v32 = vsel %vm1414_vm0, %v1512_v31, -inf }
 0x27f   : > { %1565 = vmax.xlane.f32.xlu2 %v1564_v29  ;;  %1779 = vmatpush.bf16.msra.mxu2 %v4535_v16  ;;  %v4540_v16 = vld [vmem:[%s5861_s30 + $0x28] sm:$0xff] }
 0x280   : > { %1846 = vmatpush.bf16.msrb.mxu0 %v4540_v16 }
 0x287   : > { %1568 = vmax.xlane.f32.xlu2 %v1567_v32 }
 0x28f   : > { %1574 = vmax.xlane.f32.xlu2 %v1573_v36 }
 0x2d2   : > { %v1554_v37 = vpop.xlane.xlu1 %1553 }
 0x2d3   : > { %v1576_v38 = vsub.f32 %v1434_v12, %v1554_v37 }
 0x2d5   : > { %v1584_v39 = vmul.f32 1.442695, %v1576_v38 }
 0x2d7   : > { %4887 = vpow2.f32 %v1584_v39 }
 0x2da   : > { %v1557_v40 = vpop.xlane.xlu2 %1556 }
 0x2db   : > { %v1577_v41 = vsub.f32 %v1436_v17, %v1557_v40 }
 0x2dd   : > { %v6003_v42 = vpop.eup %4887  ;;  %v1586_v43 = vmul.f32 1.442695, %v1577_v41 }
 0x2de   : > { %v1600_v44 = vsel %vm1414_vm0, %v6003_v42, 0.0 }
 0x2df   : > { %4889 = vpow2.f32 %v1586_v43  ;;  %1601 = vadd.xlane.f32.xlu2 %v1600_v44 }
 0x2e0   : > { %v1563_v45 = vpop.xlane.xlu0 %1562 }
 0x2e1   : > { %v1579_v46 = vsub.f32 %v1474_v20, %v1563_v45  ;;  %v4538_v20 = vld [vmem:[%s5861_s30 + $0x18] sm:$0xff] }
 0x2e2   : > { %v1560_v48 = vpop.xlane.xlu2 %1559  ;;  %1812 = vmatpush.bf16.msra.mxu3 %v4538_v20 }
 0x2e3   : > { %v1590_v47 = vmul.f32 1.442695, %v1579_v46  ;;  %v1578_v49 = vsub.f32 %v1472_v21, %v1560_v48 }
 0x2e5   : > { %4891 = vpow2.f32 %v1590_v47  ;;  %v6007_v50 = vpop.eup %4889  ;;  %v1588_v52 = vmul.f32 1.442695, %v1578_v49 }
 0x2e6   : > { %v1603_v53 = vsel %vm1414_vm0, %v6007_v50, 0.0  ;;  %1813 = vmatpush.bf16.msra.mxu3 %v4537_v24 }
 0x2e7   : > { %4893 = vpow2.f32 %v1588_v52  ;;  %1604 = vadd.xlane.f32.xlu1 %v1603_v53 }
 0x2ea   : > { %v1572_v55 = vpop.xlane.xlu2 %1571 }
 0x2eb   : > { %v6011_v54 = vpop.eup %4891  ;;  %v1582_v56 = vsub.f32 %v1548_v25, %v1572_v55 }
 0x2ec   : > { %v1609_v57 = vsel %vm1414_vm0, %v6011_v54, 0.0 }
 0x2ed   : > { %1610 = vadd.xlane.f32.xlu0 %v1609_v57  ;;  %v6015_v58 = vpop.eup %4893  ;;  %v1596_v59 = vmul.f32 1.442695, %v1582_v56 }
 0x2ee   : > { %v1606_v60 = vsel %vm1414_vm0, %v6015_v58, 0.0 }
 0x2ef   : > { %4895 = vpow2.f32 %v1596_v59  ;;  %1607 = vadd.xlane.f32.xlu2 %v1606_v60 }
 0x2f2   : > { %v1566_v61 = vpop.xlane.xlu2 %1565 }
 0x2f3   : > { %v1580_v62 = vsub.f32 %v1510_v28, %v1566_v61 }
 0x2f5   : > { %v6019_v63 = vpop.eup %4895  ;;  %v1592_v0 = vmul.f32 1.442695, %v1580_v62 }
 0x2f6   : > { %v1618_v1 = vsel %vm1414_vm0, %v6019_v63, 0.0 }
 0x2f7   : > { %4897 = vpow2.f32 %v1592_v0  ;;  %1619 = vadd.xlane.f32.xlu0 %v1618_v1 }
 0x2fa   : > { %v1569_v2 = vpop.xlane.xlu2 %1568 }
 0x2fb   : > { %v1581_v3 = vsub.f32 %v1512_v31, %v1569_v2 }
 0x2fd   : > { %v6023_v4 = vpop.eup %4897  ;;  %v1594_v5 = vmul.f32 1.442695, %v1581_v3 }
 0x2fe   : > { %v1612_v6 = vsel %vm1414_vm0, %v6023_v4, 0.0 }
 0x2ff   : > { %4899 = vpow2.f32 %v1594_v5  ;;  %1613 = vadd.xlane.f32.xlu1 %v1612_v6 }
 0x302   : > { %v1575_v7 = vpop.xlane.xlu2 %1574 }
 0x303   : > { %v1583_v8 = vsub.f32 %v1550_v35, %v1575_v7 }
 0x305   : > { %v6027_v9 = vpop.eup %4899  ;;  %v1598_v10 = vmul.f32 1.442695, %v1583_v8 }
 0x306   : > { %v1615_v11 = vsel %vm1414_vm0, %v6027_v9, 0.0 }
 0x307   : > { %4901 = vpow2.f32 %v1598_v10  ;;  %1616 = vadd.xlane.f32.xlu2 %v1615_v11 }
 0x30d   : > { %v6031_v12 = vpop.eup %4901 }
 0x30e   : > { %v1621_v13 = vsel %vm1414_vm0, %v6031_v12, 0.0 }
 0x30f   : > { %1622 = vadd.xlane.f32.xlu1 %v1621_v13 }
 0x352   : > { %v1602_v14 = vpop.xlane.xlu2 %1601 }
 0x353   : > { %4903 = vrcp.f32 %v1602_v14  ;;  %v1635_v27 = vand.u32 2147483648, %v1602_v14  ;;  %vm1629_vm5 = vweird.f32 %v1602_v14  ;;  %v1633_v30 = vand.u32 2147483647, %v1602_v14 }
 0x355   : > { %v1636_v36 = vor.u32 1.1754944e-38, %v1635_v27  ;;  %vm1634_vm8 = vcmp.eq.f32.partialorder %v1633_v30, 8.507059e+37 }
 0x359   : > { %v4904_v17 = vpop.eup %4903 }
 0x35a   : > { %v1625_v18 = vmul.f32 %v4904_v17, %v1602_v14  ;;  %v1605_v19 = vpop.xlane.xlu1 %1604  ;;  %vm1630_vm4 = vweird.f32 %v4904_v17 }
 0x35b   : > { %4905 = vrcp.f32 %v1605_v19  ;;  %vm1631_vm6 = vmor %vm1629_vm5, %vm1630_vm4  ;;  %v1648_v32 = vand.u32 2147483647, %v1605_v19  ;;  %v1650_v38 = vand.u32 2147483648, %v1605_v19  ;;  %vm1644_vm9 = vweird.f32 %v1605_v19 }
 0x35c   : > { %v1626_v21 = vsub.f32 1.0, %v1625_v18 }
 0x35d   : > { %vm1649_vm11 = vcmp.eq.f32.partialorder %v1648_v32, 8.507059e+37  ;;  %v1651_v45 = vor.u32 1.1754944e-38, %v1650_v38 }
 0x35e   : > { %v1627_v22 = vmul.f32 %v4904_v17, %v1626_v21  ;;  %v4539_v21 = vld [vmem:[%s5861_s30 + $0x20] sm:$0xff] }
 0x35f   : > { %1847 = vmatpush.bf16.msrb.mxu0 %v4539_v21 }
 0x360   : > { %v1611_v23 = vpop.xlane.xlu0 %1610  ;;  %v1628_v26 = vadd.f32 %v4904_v17, %v1627_v22 }
 0x361   : > { %4907 = vrcp.f32 %v1611_v23  ;;  %v4906_v25 = vpop.eup %4905  ;;  %v1680_v46 = vand.u32 2147483648, %v1611_v23  ;;  %v1678_v52 = vand.u32 2147483647, %v1611_v23  ;;  %vm1674_vm13 = vweird.f32 %v1611_v23 }
 0x362   : > { %v1640_v28 = vmul.f32 %v4906_v25, %v1605_v19  ;;  %v1608_v29 = vpop.xlane.xlu2 %1607  ;;  %v1632_v33 = vsel %vm1631_vm6, %v4904_v17, %v1628_v26  ;;  %vm1645_vm7 = vweird.f32 %v4906_v25 }
 0x363   : > { %4909 = vrcp.f32 %v1608_v29  ;;  %v1637_v41 = vsel %vm1634_vm8, %v1636_v36, %v1632_v33  ;;  %vm1646_vm10 = vmor %vm1644_vm9, %vm1645_vm7  ;;  %v1665_v59 = vand.u32 2147483648, %v1608_v29  ;;  %v1681_v62 = vor.u32 1.1754944e-38, %v1680_v46 }
 0x364   : > { %v1641_v31 = vsub.f32 1.0, %v1640_v28  ;;  %v1638_v53 = vmul.f32 %v6003_v42, %v1637_v41  ;;  %v1663_v1 = vand.u32 2147483647, %v1608_v29  ;;  %vm1679_vm2 = vcmp.eq.f32.partialorder %v1678_v52, 8.507059e+37 }
 0x365   : > { %vm1659_vm3 = vweird.f32 %v1608_v29  ;;  %v1666_v8 = vor.u32 1.1754944e-38, %v1665_v59 }
 0x366   : > { %v1642_v37 = vmul.f32 %v4906_v25, %v1641_v31  ;;  %v1744_v3 = vpack.c.bf16 %v1638_v53, %v1638_v53  ;;  %vm1664_vm5 = vcmp.eq.f32.partialorder %v1663_v1, 8.507059e+37 }
 0x367   : > { %v4908_v35 = vpop.eup %4907 }
 0x368   : > { %v1670_v39 = vmul.f32 %v4908_v35, %v1611_v23  ;;  %v1643_v40 = vadd.f32 %v4906_v25, %v1642_v37  ;;  %vm1675_vm12 = vweird.f32 %v4908_v35  ;;  %v1754_v15 = vunpack.c.l.b16 %v1744_v3  ;;  %v4542_v23 = vld [vmem:[%s5861_s30 + $0x38] sm:$0xff] }
 0x369   : > { %v4910_v43 = vpop.eup %4909  ;;  %vm1676_vm14 = vmor %vm1674_vm13, %vm1675_vm12  ;;  %1880 = vmatpush.bf16.msra.mxu1 %v4542_v23 }
 0x36a   : > { %v1671_v44 = vsub.f32 1.0, %v1670_v39  ;;  %v1655_v47 = vmul.f32 %v4910_v43, %v1608_v29  ;;  %v1647_v48 = vsel %vm1646_vm10, %v4906_v25, %v1643_v40  ;;  %v6040_v60 = vpop.xlane.xlu0 %1619  ;;  %vm1660_vm15 = vweird.f32 %v4910_v43 }
 0x36b   : > { %v1652_v56 = vsel %vm1649_vm11, %v1651_v45, %v1647_v48  ;;  %4911 = vrcp.f32 %v6040_v60  ;;  %vm1661_vm4 = vmor %vm1659_vm3, %vm1660_vm15  ;;  %vm1719_vm12 = vweird.f32 %v6040_v60  ;;  %v1723_v52 = vand.u32 2147483647, %v6040_v60 }
 0x36c   : > { %v1672_v49 = vmul.f32 %v4908_v35, %v1671_v44  ;;  %v1656_v55 = vsub.f32 1.0, %v1655_v47  ;;  %v1653_v61 = vmul.f32 %v6007_v50, %v1652_v56  ;;  %v1725_v47 = vand.u32 2147483648, %v6040_v60 }
 0x36d   : > { %vm1724_vm3 = vcmp.eq.f32.partialorder %v1723_v52, 8.507059e+37 }
 0x36e   : > { %v1673_v57 = vadd.f32 %v4908_v35, %v1672_v49  ;;  %v1657_v0 = vmul.f32 %v4910_v43, %v1656_v55  ;;  %v1745_v5 = vpack.c.bf16 %v1653_v61, %v1653_v61  ;;  %v1726_v61 = vor.u32 1.1754944e-38, %v1725_v47 }
 0x370   : > { %v1677_v2 = vsel %vm1676_vm14, %v4908_v35, %v1673_v57  ;;  %v1658_v6 = vadd.f32 %v4910_v43, %v1657_v0  ;;  %v1755_v50 = vunpack.c.l.b16 %v1745_v5 }
 0x371   : > { %v1682_v42 = vsel %vm1679_vm2, %v1681_v62, %v1677_v2  ;;  %v4912_v19 = vpop.eup %4911 }
 0x372   : > { %v1683_v7 = vmul.f32 %v6011_v54, %v1682_v42  ;;  %v1662_v10 = vsel %vm1661_vm4, %v4910_v43, %v1658_v6  ;;  %v1614_v11 = vpop.xlane.xlu1 %1613  ;;  %v1756_v18 = vpack.c.b16 %v1755_v50, %v1754_v15  ;;  %v1715_v25 = vmul.f32 %v4912_v19, %v6040_v60 }
 0x373   : > { %v1667_v14 = vsel %vm1664_vm5, %v1666_v8, %v1662_v10  ;;  %4913 = vrcp.f32 %v1614_v11  ;;  %v1695_v32 = vand.u32 2147483648, %v1614_v11  ;;  %vm1689_vm7 = vweird.f32 %v1614_v11 }
 0x374   : > { %v1747_v13 = vpack.c.bf16 %v1683_v7, %v1683_v7  ;;  %v1668_v17 = vmul.f32 %v6015_v58, %v1667_v14  ;;  %4226 = vmatmul.msk.bf16.vlgmr.msra.gmra.mxu2 %vm1414_vm0, %v1756_v18  ;;  %v4541_v58 = vld [vmem:[%s5861_s30 + $0x30] sm:$0xff]  ;;  %v1716_v30 = vsub.f32 1.0, %v1715_v25  ;;  %v1693_v35 = vand.u32 2147483647, %v1614_v11 }
 0x375   : > { %1881 = vmatpush.bf16.msra.mxu1 %v4541_v58  ;;  %v1696_v41 = vor.u32 1.1754944e-38, %v1695_v32  ;;  %vm1720_vm10 = vweird.f32 %v4912_v19 }
 0x376   : > { %v1789_v54 = vunpack.c.l.b16 %v1747_v13  ;;  %v1746_v20 = vpack.c.bf16 %v1668_v17, %v1668_v17  ;;  %v1717_v37 = vmul.f32 %v4912_v19, %v1716_v30  ;;  %vm1694_vm9 = vcmp.eq.f32.partialorder %v1693_v35, 8.507059e+37  ;;  %vm1721_vm13 = vmor %vm1719_vm12, %vm1720_vm10 }
 0x378   : > { %v1788_v22 = vunpack.c.l.b16 %v1746_v20  ;;  %v1718_v44 = vadd.f32 %v4912_v19, %v1717_v37 }
 0x379   : > { %v4914_v24 = vpop.eup %4913 }
 0x37a   : > { %v1685_v26 = vmul.f32 %v4914_v24, %v1614_v11  ;;  %v1617_v27 = vpop.xlane.xlu2 %1616  ;;  %v1790_v28 = vpack.c.b16 %v1789_v54, %v1788_v22  ;;  %vm1690_vm6 = vweird.f32 %v4914_v24  ;;  %v1722_v57 = vsel %vm1721_vm13, %v4912_v19, %v1718_v44 }
 0x37b   : > { %4915 = vrcp.f32 %v1617_v27  ;;  %vm1691_vm8 = vmor %vm1689_vm7, %vm1690_vm6  ;;  %v1710_v46 = vand.u32 2147483648, %v1617_v27  ;;  %v1708_v49 = vand.u32 2147483647, %v1617_v27  ;;  %vm1704_vm14 = vweird.f32 %v1617_v27 }
 0x37c   : > { %v1686_v29 = vsub.f32 1.0, %v1685_v26  ;;  %4235 = vmatmul.msk.bf16.vlgmr.msra.gmra.mxu3 %vm1414_vm0, %v1790_v28  ;;  %v1727_v2 = vsel %vm1724_vm3, %v1726_v61, %v1722_v57  ;;  %vm2783_vm3 = vcmask 195584  }
 0x37d   : > { %v1711_v59 = vor.u32 1.1754944e-38, %v1710_v46  ;;  %vm1709_vm2 = vcmp.eq.f32.partialorder %v1708_v49, 8.507059e+37  ;;  %v1728_v8 = vmul.f32 %v6019_v63, %v1727_v2 }
 0x37e   : > { %v1687_v31 = vmul.f32 %v4914_v24, %v1686_v29 }
 0x37f   : > { %v1750_v17 = vpack.c.bf16 %v1728_v8, %v1728_v8 }
 0x380   : > { %v1688_v33 = vadd.f32 %v4914_v24, %v1687_v31 }
 0x381   : > { %v4916_v36 = vpop.eup %4915  ;;  %v1856_v19 = vunpack.c.l.b16 %v1750_v17 }
 0x382   : > { %v1692_v38 = vsel %vm1691_vm8, %v4914_v24, %v1688_v33  ;;  %v1700_v39 = vmul.f32 %v4916_v36, %v1617_v27  ;;  %v1623_v40 = vpop.xlane.xlu1 %1622  ;;  %vm1705_vm11 = vweird.f32 %v4916_v36  ;;  %vm2134_vm8 = vcmask 523264  }
 0x383   : > { %4917 = vrcp.f32 %v1623_v40  ;;  %v1697_v45 = vsel %vm1694_vm9, %v1696_v41, %v1692_v38  ;;  %vm1706_vm15 = vmor %vm1704_vm14, %vm1705_vm11  ;;  %v1740_v42 = vand.u32 2147483648, %v1623_v40  ;;  %v1738_v7 = vand.u32 2147483647, %v1623_v40 }
 0x384   : > { %v1701_v43 = vsub.f32 1.0, %v1700_v39  ;;  %v1698_v55 = vmul.f32 %v6023_v4, %v1697_v45  ;;  %vm1734_vm5 = vweird.f32 %v1623_v40  ;;  %vm2137_vm9 = vcmask 785408  }
 0x385   : > { %v1741_v13 = vor.u32 1.1754944e-38, %v1740_v42  ;;  %vm1739_vm7 = vcmp.eq.f32.partialorder %v1738_v7, 8.507059e+37 }
 0x386   : > { %v1702_v48 = vmul.f32 %v4916_v36, %v1701_v43  ;;  %v1748_v60 = vpack.c.bf16 %v1698_v55, %v1698_v55 }
 0x388   : > { %v1703_v53 = vadd.f32 %v4916_v36, %v1702_v48  ;;  %v1822_v10 = vunpack.c.l.b16 %v1748_v60  ;;  %v4558_v48 = vld [vmem:[#allocation13 + $0x38] sm:$0xff] }
 0x389   : > { %v4918_v56 = vpop.eup %4917  ;;  %2209 = vmatpush.bf16.msrb.mxu2 %v4558_v48 }
 0x38a   : > { %v1707_v62 = vsel %vm1706_vm15, %v4916_v36, %v1703_v53  ;;  %v1730_v0 = vmul.f32 %v4918_v56, %v1623_v40  ;;  %vm1735_vm4 = vweird.f32 %v4918_v56 }
 0x38b   : > { %v1712_v1 = vsel %vm1709_vm2, %v1711_v59, %v1707_v62  ;;  %vm1736_vm6 = vmor %vm1734_vm5, %vm1735_vm4  ;;  %vm3001_vm4 = vcmask 1043456  }
 0x38c   : > { %v1731_v3 = vsub.f32 1.0, %v1730_v0  ;;  %v1713_v5 = vmul.f32 %v6027_v9, %v1712_v1 }
 0x38e   : > { %v1732_v6 = vmul.f32 %v4918_v56, %v1731_v3  ;;  %v1749_v4 = vpack.c.bf16 %v1713_v5, %v1713_v5 }
 0x390   : > { %v1733_v50 = vadd.f32 %v4918_v56, %v1732_v6  ;;  %v1823_v11 = vunpack.c.l.b16 %v1749_v4 }
 0x392   : > { %v1737_v14 = vsel %vm1736_vm6, %v4918_v56, %v1733_v50  ;;  %v1824_v15 = vpack.c.b16 %v1823_v11, %v1822_v10 }
 0x393   : > { %v1742_v16 = vsel %vm1739_vm7, %v1741_v13, %v1737_v14 }
 0x394   : > { %v1743_v9 = vmul.f32 %v6031_v12, %v1742_v16  ;;  %4244 = vmatmul.msk.bf16.vlgmr.msrb.gmra.mxu0 %vm1414_vm0, %v1824_v15 }
 0x396   : > { %v1751_v18 = vpack.c.bf16 %v1743_v9, %v1743_v9 }
 0x398   : > { %v1857_v54 = vunpack.c.l.b16 %v1751_v18 }
 0x39a   : > { %v1858_v20 = vpack.c.b16 %v1857_v54, %v1856_v19 }
 0x39c   : > { %4253 = vmatmul.msk.bf16.vlgmr.msra.gmra.mxu1 %vm1414_vm0, %v1858_v20 }
 0x3f7   : > { %v1781_v63 = vpop.f32.mrf.mxu2 }
 0x3f8   : > { %v1890_v23 = vrot.slane %v1781_v63, 4 }
 0x3ff   : > { %v1815_v24 = vpop.f32.mrf.mxu3  ;;  %v1783_v26 = vpop.f32.mrf.mxu2 }
 0x400   : > { %v1902_v28 = vrot.slane %v1815_v24, 4  ;;  %v1946_v58 = vrot.slane %v1783_v26, 4 }
 0x407   : > { %v1817_v45 = vpop.f32.mrf.mxu3 }
 0x408   : > { %v1958_v61 = vrot.slane %v1817_v45, 4 }
 0x411   : > { %v1849_v21 = vpop.f32.mrf.mxu0 }
 0x412   : > { %v1888_v22 = vrot.slane %v1849_v21, 4  ;;  %v1891_v25 = vsel %vm1171_vm1, %v1849_v21, %v1890_v23 }
 0x413   : > { %v1899_v12 = vperm.slane %v1891_v25, %v5898_v34 }
 0x414   : > { %v1889_v27 = vsel %vm1171_vm1, %v1888_v22, %v1781_v63 }
 0x415   : > { %v1895_v29 = vperm.slane %v1889_v27, %v5898_v34  ;;  %v1926_v38 = vrot.slane %v1899_v12, 4 }
 0x417   : > { %v1914_v41 = vrot.slane %v1895_v29, 4 }
 0x419   : > { %v1851_v30 = vpop.f32.mrf.mxu0  ;;  %v1883_v31 = vpop.f32.mrf.mxu1 }
 0x41a   : > { %v1944_v32 = vrot.slane %v1851_v30, 4  ;;  %v1900_v33 = vrot.slane %v1883_v31, 4  ;;  %v1903_v35 = vsel %vm1171_vm1, %v1883_v31, %v1902_v28  ;;  %v1947_v36 = vsel %vm1171_vm1, %v1851_v30, %v1946_v58 }
 0x41b   : > { %v1911_v37 = vperm.slane %v1903_v35, %v5898_v34  ;;  %v1955_v46 = vperm.slane %v1947_v36, %v5898_v34 }
 0x41c   : > { %v1945_v39 = vsel %vm1171_vm1, %v1944_v32, %v1783_v26  ;;  %v1901_v40 = vsel %vm1171_vm1, %v1900_v33, %v1815_v24 }
 0x41d   : > { %v1907_v43 = vperm.slane %v1901_v40, %v5898_v34  ;;  %v1924_v44 = vrot.slane %v1911_v37, 4  ;;  %v1927_v47 = vsel %vm1171_vm1, %v1911_v37, %v1926_v38  ;;  %v1951_v49 = vperm.slane %v1945_v39, %v5898_v34 }
 0x41e   : > { %v1935_v59 = vperm.slane %v1927_v47, %v5908_v51  ;;  %v1982_v42 = vrot.slane %v1955_v46, 4 }
 0x41f   : > { %v1912_v52 = vrot.slane %v1907_v43, 4  ;;  %v1915_v53 = vsel %vm1171_vm1, %v1907_v43, %v1914_v41  ;;  %v1925_v55 = vsel %vm1171_vm1, %v1924_v44, %v1899_v12  ;;  %v1970_v60 = vrot.slane %v1951_v49, 4 }
 0x420   : > { %v1923_v56 = vperm.slane %v1915_v53, %v5908_v51  ;;  %v1931_v57 = vperm.slane %v1925_v55, %v5908_v51  ;;  %v1942_v5 = vrot.slane %v1935_v59, 4 }
 0x421   : > { %v1913_v62 = vsel %vm1171_vm1, %v1912_v52, %v1895_v29  ;;  %v1885_v0 = vpop.f32.mrf.mxu1 }
 0x422   : > { %v1919_v1 = vperm.slane %v1913_v62, %v5908_v51  ;;  %v1938_v2 = vrot.slane %v1923_v56, 4  ;;  %v1940_v3 = vrot.slane %v1931_v57, 4  ;;  %v1956_v6 = vrot.slane %v1885_v0, 4 }
 0x423   : > { %v1959_v7 = vsel %vm1171_vm1, %v1885_v0, %v1958_v61  ;;  %v1943_v10 = vsel %vm1171_vm1, 0.0, %v1942_v5  ;;  %v2011_v14 = vsel %vm1171_vm1, %v1942_v5, %v1931_v57 }
 0x424   : > { %v1936_v4 = vrot.slane %v1919_v1, 4  ;;  %v1939_v8 = vsel %vm1171_vm1, 0.0, %v1938_v2  ;;  %v1941_v50 = vsel %vm1171_vm1, 0.0, %v1940_v3  ;;  %v2000_v11 = vsel %vm1171_vm1, %v1938_v2, %v1919_v1 }
 0x425   : > { %v2005_v13 = vrot.slane %v1939_v8, 4  ;;  %v2016_v15 = vrot.slane %v1943_v10, 4  ;;  %v2015_v16 = vperm.slane %v2011_v14, %v5898_v34  ;;  %v1957_v17 = vsel %vm1171_vm1, %v1956_v6, %v1817_v45 }
 0x426   : > { %v1967_v9 = vperm.slane %v1959_v7, %v5898_v34  ;;  %v1937_v18 = vsel %vm1171_vm1, 0.0, %v1936_v4  ;;  %v1963_v54 = vperm.slane %v1957_v17, %v5898_v34  ;;  %v2004_v20 = vperm.slane %v2000_v11, %v5898_v34 }
 0x427   : > { %v2017_v19 = vsel %vm1171_vm1, %v2016_v15, %v1941_v50  ;;  %v2006_v63 = vsel %vm1171_vm1, %v2005_v13, %v1937_v18  ;;  %v2036_v22 = vrot.slane %v2015_v16, 4 }
 0x428   : > { %v2021_v21 = vperm.slane %v2017_v19, %v5898_v34  ;;  %v1980_v23 = vrot.slane %v1967_v9, 4  ;;  %v1983_v24 = vsel %vm1171_vm1, %v1967_v9, %v1982_v42  ;;  %v1968_v25 = vrot.slane %v1963_v54, 4 }
 0x429   : > { %v1971_v26 = vsel %vm1171_vm1, %v1963_v54, %v1970_v60  ;;  %v1991_v27 = vperm.slane %v1983_v24, %v5908_v51  ;;  %v2010_v28 = vperm.slane %v2006_v63, %v5898_v34  ;;  %v2024_v29 = vrot.slane %v2004_v20, 4 }
 0x42a   : > { %v1979_v12 = vperm.slane %v1971_v26, %v5908_v51  ;;  %v1981_v58 = vsel %vm1171_vm1, %v1980_v23, %v1955_v46  ;;  %v2037_v30 = vsel %vm1171_vm1, %v2021_v21, %v2036_v22  ;;  %v1969_v31 = vsel %vm1171_vm1, %v1968_v25, %v1951_v49 }
 0x42b   : > { %v1987_v32 = vperm.slane %v1981_v58, %v5908_v51  ;;  %v1998_v33 = vrot.slane %v1991_v27, 4  ;;  %v1975_v35 = vperm.slane %v1969_v31, %v5908_v51  ;;  %v2025_v37 = vsel %vm1171_vm1, %v2010_v28, %v2024_v29  ;;  %v4556_v31 = vld [vmem:[#allocation13 + $0x28] sm:$0xff] }
 0x42c   : > { %v1994_v36 = vrot.slane %v1979_v12, 4  ;;  %v2045_v38 = vperm.slane %v2037_v30, %v5908_v51  ;;  %v2022_v43 = vrot.slane %v2010_v28, 4  ;;  %v2033_v53 = vperm.slane %v2025_v37, %v5908_v51  ;;  %v4557_v30 = vld [vmem:[#allocation13 + $0x30] sm:$0xff]  ;;  %v4551_v37 = vld [vmem:[#allocation13] sm:$0xff] }
 0x42d   : > { %v1996_v39 = vrot.slane %v1987_v32, 4  ;;  %v1999_v40 = vsel %vm1171_vm1, 0.0, %v1998_v33  ;;  %v2065_v41 = vsel %vm1171_vm1, %v1998_v33, %v1987_v32  ;;  %v1992_v44 = vrot.slane %v1975_v35, 4  ;;  %2210 = vmatpush.bf16.msrb.mxu2 %v4557_v30  ;;  %v4555_v32 = vld [vmem:[#allocation13 + $0x20] sm:$0xff]  ;;  %v4554_v33 = vld [vmem:[#allocation13 + $0x18] sm:$0xff] }
 0x42e   : > { %v1995_v45 = vsel %vm1171_vm1, 0.0, %v1994_v36  ;;  %v2054_v46 = vsel %vm1171_vm1, %v1994_v36, %v1975_v35  ;;  %v2069_v47 = vperm.slane %v2065_v41, %v5898_v34  ;;  %v2070_v52 = vrot.slane %v1999_v40, 4  ;;  %v4553_v35 = vld [vmem:[#allocation13 + $0x10] sm:$0xff]  ;;  %v4552_v36 = vld [vmem:[#allocation13 + $0x8] sm:$0xff] }
 0x42f   : > { %v1997_v48 = vsel %vm1171_vm1, 0.0, %v1996_v39  ;;  %v2059_v49 = vrot.slane %v1995_v45, 4  ;;  %v1993_v56 = vsel %vm1171_vm1, 0.0, %v1992_v44  ;;  %v2058_v57 = vperm.slane %v2054_v46, %v5898_v34 }
 0x430   : > { %v2090_v55 = vrot.slane %v2069_v47, 4  ;;  %v2071_v59 = vsel %vm1171_vm1, %v2070_v52, %v1997_v48  ;;  %v2023_v62 = vsel %vm1171_vm1, %v2022_v43, %v2004_v20  ;;  %v2050_v3 = vrot.slane %v2045_v38, 4 }
 0x431   : > { %v2060_v61 = vsel %vm1171_vm1, %v2059_v49, %v1993_v56  ;;  %v2075_v0 = vperm.slane %v2071_v59, %v5898_v34  ;;  %v2078_v2 = vrot.slane %v2058_v57, 4  ;;  %v2052_v5 = vrot.slane %v2033_v53, 4  ;;  %2211 = vmatpush.bf16.msrb.mxu2 %v4556_v31  ;;  %v1013_v59 = vld [vmem:[%s5847_s8] sm:$0xff]   ;;  %s6757_s8 = sld [smem:[#allocation62_spill]] }
 0x432   : > { %v2064_v1 = vperm.slane %v2060_v61, %v5898_v34  ;;  %v2029_v60 = vperm.slane %v2023_v62, %v5908_v51  ;;  %v2034_v42 = vrot.slane %v2021_v21, 4  ;;  %v2051_v20 = vsel %vm1171_vm1, %v2050_v3, %v2033_v53  ;;  %v4877_v61 = vld [vmem:[%s6737_s10] ss:$0 sm:$0xff] }
 0x433   : > { %v2091_v7 = vsel %vm1171_vm1, %v2075_v0, %v2090_v55  ;;  %v2088_v8 = vrot.slane %v2075_v0, 4  ;;  %v2053_v63 = vsel %vm1171_vm1, %v2045_v38, %v2052_v5  ;;  %v1015_v62 = vunpack.c.l.bf16 %v1013_v59 }
 0x434   : > { %v2079_v6 = vsel %vm1171_vm1, %v2064_v1, %v2078_v2  ;;  %v2076_v4 = vrot.slane %v2064_v1, 4  ;;  %v2099_v10 = vperm.slane %v2091_v7, %v5908_v51  ;;  %v2035_v11 = vsel %vm1171_vm1, %v2034_v42, %v2015_v16 }
 0x435   : > { %v2087_v50 = vperm.slane %v2079_v6, %v5908_v51  ;;  %v2041_v13 = vperm.slane %v2035_v11, %v5908_v51  ;;  %v2048_v14 = vrot.slane %v2029_v60, 4  ;;  %v2089_v17 = vsel %vm1171_vm1, %v2088_v8, %v2069_v47  ;;  %2212 = vmatpush.bf16.msrb.mxu2 %v4555_v32 }
 0x436   : > { %v2077_v15 = vsel %vm1171_vm1, %v2076_v4, %v2058_v57  ;;  %v2104_v9 = vrot.slane %v2099_v10, 4  ;;  %v2095_v54 = vperm.slane %v2089_v17, %v5908_v51  ;;  %v1016_v3 = vunpack.c.h.bf16 %v1013_v59 }
 0x437   : > { %v2106_v18 = vrot.slane %v2087_v50, 4  ;;  %v2083_v19 = vperm.slane %v2077_v15, %v5908_v51  ;;  %v2046_v21 = vrot.slane %v2041_v13, 4  ;;  %v2049_v28 = vsel %vm1171_vm1, %v2041_v13, %v2048_v14 }
 0x438   : > { %v2105_v16 = vsel %vm1171_vm1, %v2104_v9, %v2087_v50  ;;  %v2100_v23 = vrot.slane %v2095_v54, 4  ;;  %v5455_v6 = vmov 128.0  }
 0x439   : > { %v2107_v22 = vsel %vm1171_vm1, %v2099_v10, %v2106_v18  ;;  %v2102_v24 = vrot.slane %v2083_v19, 4  ;;  %v4836_v25 = vpack.i.bf16 %v2105_v16, %v2051_v20  ;;  %v2047_v27 = vsel %vm1171_vm1, %v2046_v21, %v2029_v60  ;;  %2213 = vmatpush.bf16.msrb.mxu2 %v4554_v33  ;;  %v4574_v20 = vld [vmem:[#allocation14 + $0x38] sm:$0xff]  ;;  %v4572_v21 = vld [vmem:[#allocation14 + $0x28] sm:$0xff]  ;;  %v4571_v16 = vld [vmem:[#allocation14 + $0x20] sm:$0xff] }
 0x43a   : > { %v4841_v26 = vpack.i.bf16 %v2107_v22, %v2053_v63  ;;  %v2101_v58 = vsel %vm1171_vm1, %v2100_v23, %v2083_v19  ;;  %4919 = vrcp.f32 %v5455_v6  ;;  %2377 = vmatpush.bf16.msrb.mxu3 %v4574_v20  ;;  %v4573_v63 = vld [vmem:[#allocation14 + $0x30] sm:$0xff]  ;;  %v4570_v22 = vld [vmem:[#allocation14 + $0x18] sm:$0xff] }
 0x43b   : > { %v2103_v12 = vsel %vm1171_vm1, %v2095_v54, %v2102_v24  ;;  %4837 = vrot.lane.b32.xlu0 %v4836_v25, %s5450_s29  ;;  %v4569_v24 = vld [vmem:[#allocation14 + $0x10] sm:$0xff] }
 0x43c   : > { %4842 = vrot.lane.b32.xlu1 %v4841_v26, %s5449_s22  ;;  %v4831_v29 = vpack.i.bf16 %v2103_v12, %v2049_v28  ;;  %v4567_v12 = vld [vmem:[#allocation14] sm:$0xff] }
 0x43d   : > { %2214 = vmatpush.bf16.msrb.mxu2 %v4553_v35 }
 0x43e   : > { %4832 = vrot.lane.b32.xlu2 %v4831_v29, %s5451_s20  ;;  %2378 = vmatpush.bf16.msrb.mxu3 %v4573_v63 }
 0x440   : > { %v4920_v7 = vpop.eup %4919 }
 0x441   : > { %2215 = vmatpush.bf16.msrb.mxu2 %v4552_v36  ;;  %v2230_v4 = vmul.f32 128.0, %v4920_v7  ;;  %vm2234_vm10 = vweird.f32 %v4920_v7 }
 0x442   : > { %2379 = vmatpush.bf16.msrb.mxu3 %v4572_v21 }
 0x443   : > { %v2231_v8 = vsub.f32 1.0, %v2230_v4 }
 0x445   : > { %2216 = vmatpush.bf16.msrb.mxu2 %v4551_v37  ;;  %v2232_v50 = vmul.f32 %v4920_v7, %v2231_v8 }
 0x446   : > { %2380 = vmatpush.bf16.msrb.mxu3 %v4571_v16 }
 0x447   : > { %v2233_v10 = vadd.f32 %v4920_v7, %v2232_v50 }
 0x449   : > { %v6155_v11 = vsel %vm2234_vm10, %v4920_v7, %v2233_v10 }
 0x44a   : > { %2381 = vmatpush.bf16.msrb.mxu3 %v4570_v22 }
 0x44e   : > { %2382 = vmatpush.bf16.msrb.mxu3 %v4569_v24 }
 0x498   : > { %v4833_v38 = vpop.permute.xlu2 %4832 }
 0x499   : > { %v4835_v39 = vunpack.i.h.bf16 %v4833_v38  ;;  %v4834_v40 = vunpack.i.l.bf16 %v4833_v38 }
 0x49b   : > { %v2132_v48 = vsel %vm1414_vm0, %v2047_v27, %v4834_v40  ;;  %v2133_v49 = vsel %vm1414_vm0, %v2101_v58, %v4835_v39  ;;  %v4568_v27 = vld [vmem:[#allocation14 + $0x8] sm:$0xff] }
 0x49c   : > { %2383 = vmatpush.bf16.msrb.mxu3 %v4568_v27 }
 0x4a0   : > { %2384 = vmatpush.bf16.msrb.mxu3 %v4567_v12 }
 0x4ad   : > { %v4838_v41 = vpop.permute.xlu0 %4837 }
 0x4ae   : > { %v4843_v43 = vpop.permute.xlu1 %4842  ;;  %v4840_v44 = vunpack.i.h.bf16 %v4838_v41  ;;  %v4839_v45 = vunpack.i.l.bf16 %v4838_v41 }
 0x4af   : > { %v4845_v46 = vunpack.i.h.bf16 %v4843_v43  ;;  %v4844_v47 = vunpack.i.l.bf16 %v4843_v43 }
 0x4b0   : > { %v2135_v52 = vsel %vm2134_vm8, %v2132_v48, %v4839_v45  ;;  %v2136_v53 = vsel %vm2134_vm8, %v2133_v49, %v4840_v44  ;;  %v4878_v45 = vld [vmem:[%s6738_s15] ss:$0 sm:$0xff]  ;;  %s4519_s15 = sshll.u32 %s6736_s17, 1 }
 0x4b1   : > { %v2138_v55 = vsel %vm2137_vm9, %v2135_v52, %v4844_v47  ;;  %v2139_v56 = vsel %vm2137_vm9, %v2136_v53, %v4845_v46  ;;  %v4879_v52 = vld [vmem:[%s6739_s11] ss:$0 sm:$0xff]  ;;  %s3873_s21 = sadd.s32 %s4520_s2, %s4519_s15 }
 0x4b2   : > { %v2140_v57 = vpack.c.bf16 %v2139_v56, %v2138_v55  ;;  %s4521_s17 = sshll.u32 %s3873_s21, 3 }
 0x4b4   : > { %2217 = vmatmul.bf16.vlgmr.msrb.gmra.mxu2 %v2140_v57 }
 0x537   : > { %v2218_v0 = vpop.f32.mrf.mxu2 }
 0x538   : > { %v2219_v1 = vadd.f32 %v4877_v61, %v2218_v0 }
 0x53a   : > { %v2223_v2 = vadd.f32 %v2219_v1, %v1015_v62 }
 0x53c   : > { %2225 = vadd.xlane.f32.xlu0 %v2223_v2 }
 0x53f   : > { %v2220_v5 = vpop.f32.mrf.mxu2 }
 0x540   : > { %v2221_v60 = vadd.f32 %v4877_v61, %v2220_v5  ;;  %v4880_v61 = vld [vmem:[%s6740_s26] ss:$0 sm:$0xff] }
 0x542   : > { %v2224_v42 = vadd.f32 %v2221_v60, %v1016_v3  ;;  %v2287_v3 = vld [vmem:[%s5863_s19 + $0x8] sm:$0xf]  ;;  %v2290_v60 = vld [vmem:[%s5863_s19 + $0x14] sm:$0xf] }
 0x543   : > { %v2649_v5 = vunpack.c.l.b16 %v2287_v3  ;;  %v2685_v6 = vunpack.c.l.b16 %v2290_v60 }
 0x544   : > { %2227 = vadd.xlane.f32.xlu2 %v2224_v42 }
 0x545   : > { %v2687_v8 = vpack.c.b16 %v2685_v6, %v2685_v6 }
 0x5af   : > { %v2226_v13 = vpop.xlane.xlu0 %2225 }
 0x5b0   : > { %v2236_v14 = vmul.f32 %v6155_v11, %v2226_v13  ;;  %v2695_v13 = vsel %vm1414_vm0, %v2687_v8, 0 }
 0x5b1   : > { %2703 = vmatpush.bf16.xpose.msrb.mxu1 %v2695_v13 }
 0x5b2   : > { %v2238_v15 = vsub.f32 %v2223_v2, %v2236_v14  ;;  %v4559_v14 = vld [vmem:[%s5863_s19] sm:$0xff] }
 0x5b4   : > { %v2240_v17 = vmul.f32 %v2238_v15, %v2238_v15 }
 0x5b6   : > { %2242 = vadd.xlane.f32.xlu1 %v2240_v17 }
 0x5b7   : > { %v2228_v9 = vpop.xlane.xlu2 %2227 }
 0x5b8   : > { %v2237_v18 = vmul.f32 %v6155_v11, %v2228_v9 }
 0x5ba   : > { %v2239_v19 = vsub.f32 %v2224_v42, %v2237_v18  ;;  %v2651_v42 = vpack.c.b16 %v2649_v5, %v2649_v5 }
 0x5bc   : > { %v2241_v54 = vmul.f32 %v2239_v19, %v2239_v19  ;;  %v2659_v4 = vsel %vm1414_vm0, %v2651_v42, 0 }
 0x5bd   : > { %2667 = vmatpush.bf16.xpose.msra.mxu0 %v2659_v4 }
 0x5be   : > { %2244 = vadd.xlane.f32.xlu0 %v2241_v54  ;;  %v2656_v54 = vsel %vm1414_vm0, %v4559_v14, 0 }
 0x5c5   : > { %2668 = vmatpush.bf16.xpose.msra.mxu0 %v2656_v54 }
 0x629   : > { %v2243_v23 = vpop.xlane.xlu1 %2242 }
 0x62a   : > { %v2246_v25 = vmul.f32 %v2243_v23, %v6155_v11 }
 0x62c   : > { %v2248_v26 = vadd.f32 1e-05, %v2246_v25 }
 0x62e   : > { %4921 = vrsqrt.f32 %v2248_v26  ;;  %vm2256_vm12 = vweird.f32 %v2248_v26 }
 0x631   : > { %v2245_v28 = vpop.xlane.xlu0 %2244 }
 0x632   : > { %v2247_v58 = vmul.f32 %v2245_v28, %v6155_v11 }
 0x634   : > { %v4922_v29 = vpop.eup %4921  ;;  %v2249_v30 = vadd.f32 1e-05, %v2247_v58 }
 0x635   : > { %v2251_v31 = vmul.f32 %v4922_v29, %v2248_v26  ;;  %vm2257_vm11 = vweird.f32 %v4922_v29 }
 0x636   : > { %4923 = vrsqrt.f32 %v2249_v30  ;;  %vm2258_vm13 = vmor %vm2256_vm12, %vm2257_vm11  ;;  %vm2266_vm15 = vweird.f32 %v2249_v30 }
 0x637   : > { %v2252_v32 = vmul.f32 %v4922_v29, %v2251_v31 }
 0x639   : > { %v2253_v33 = vmul.f32 0.5, %v2252_v32 }
 0x63b   : > { %v2254_v35 = vsub.f32 1.5, %v2253_v33 }
 0x63c   : > { %v4924_v36 = vpop.eup %4923 }
 0x63d   : > { %v2255_v37 = vmul.f32 %v4922_v29, %v2254_v35  ;;  %v2261_v38 = vmul.f32 %v4924_v36, %v2249_v30  ;;  %vm2267_vm14 = vweird.f32 %v4924_v36 }
 0x63e   : > { %vm2268_vm2 = vmor %vm2266_vm15, %vm2267_vm14 }
 0x63f   : > { %v2262_v39 = vmul.f32 %v4924_v36, %v2261_v38  ;;  %v2259_v40 = vsel %vm2258_vm13, %v4922_v29, %v2255_v37 }
 0x640   : > { %v2270_v44 = vmul.f32 %v2259_v40, %v2238_v15  ;;  %v4560_v15 = vld [vmem:[%s5863_s19 + $0xc] sm:$0xff] }
 0x641   : > { %v2263_v41 = vmul.f32 0.5, %v2262_v39  ;;  %v2692_v24 = vsel %vm1414_vm0, %v4560_v15, 0  ;;  %v2293_v15 = vld [vmem:[%s5863_s19 + $0x20] sm:$0xf] }
 0x642   : > { %v2276_v49 = vmul.f32 %v4878_v45, %v2270_v44  ;;  %2704 = vmatpush.bf16.xpose.msrb.mxu1 %v2692_v24 }
 0x643   : > { %v2264_v43 = vsub.f32 1.5, %v2263_v41 }
 0x644   : > { %v6167_v55 = vadd.f32 %v4879_v52, %v2276_v49 }
 0x645   : > { %v2265_v46 = vmul.f32 %v4924_v36, %v2264_v43 }
 0x647   : > { %v2269_v47 = vsel %vm2268_vm2, %v4924_v36, %v2265_v46 }
 0x648   : > { %v2271_v48 = vmul.f32 %v2269_v47, %v2239_v19 }
 0x64a   : > { %v2277_v53 = vmul.f32 %v4878_v45, %v2271_v48 }
 0x64c   : > { %v6169_v56 = vadd.f32 %v4879_v52, %v2277_v53 }
 0x64e   : > { %v2284_v57 = vpack.c.bf16 %v6169_v56, %v6167_v55 }
 0x650   : > { %2385 = vmatmul.bf16.vlgmr.msrb.gmra.mxu3 %v2284_v57 }
 0x6d3   : > { %v2386_v59 = vpop.f32.mrf.mxu3 }
 0x6d4   : > { %v2387_v0 = vadd.f32 %v4880_v61, %v2386_v59 }
 0x6d6   : > { %v2413_v23 = vrot.slane %v2387_v0, 4 }
 0x6db   : > { %v2388_v62 = vpop.f32.mrf.mxu3 }
 0x6dc   : > { %v2389_v1 = vadd.f32 %v4880_v61, %v2388_v62 }
 0x6de   : > { %v4856_v2 = vpack.i.bf16 %v2389_v1, %v2387_v0  ;;  %v2469_v22 = vrot.slane %v2389_v1, 4 }
 0x6e0   : > { %4857 = vrot.lane.b32.xlu0 %v4856_v2, %s5451_s20  ;;  %4852 = vrot.lane.b32.xlu1 %v4856_v2, %s5450_s29 }
 0x6e1   : > { %4847 = vrot.lane.b32.xlu2 %v4856_v2, %s5449_s22 }
 0x73b   : > { %v4848_v7 = vpop.permute.xlu2 %4847 }
 0x73c   : > { %v4850_v50 = vunpack.i.h.bf16 %v4848_v7  ;;  %v4849_v10 = vunpack.i.l.bf16 %v4848_v7 }
 0x73e   : > { %v2481_v17 = vrot.slane %v4850_v50, 4  ;;  %v2425_v9 = vrot.slane %v4849_v10, 4 }
 0x752   : > { %v4858_v18 = vpop.permute.xlu0 %4857  ;;  %v4853_v19 = vpop.permute.xlu1 %4852 }
 0x753   : > { %v4860_v20 = vunpack.i.h.bf16 %v4858_v18  ;;  %v4859_v63 = vunpack.i.l.bf16 %v4858_v18  ;;  %v4855_v21 = vunpack.i.h.bf16 %v4853_v19  ;;  %v4854_v16 = vunpack.i.l.bf16 %v4853_v19 }
 0x755   : > { %v2479_v25 = vrot.slane %v4860_v20, 4  ;;  %v2423_v26 = vrot.slane %v4859_v63, 4  ;;  %v2426_v27 = vsel %vm1171_vm1, %v4859_v63, %v2425_v9  ;;  %v2482_v28 = vsel %vm1171_vm1, %v4860_v20, %v2481_v17 }
 0x756   : > { %v2434_v12 = vperm.slane %v2426_v27, %v5898_v34  ;;  %v2490_v58 = vperm.slane %v2482_v28, %v5898_v34  ;;  %v2467_v29 = vrot.slane %v4855_v21, 4  ;;  %v2470_v30 = vsel %vm1171_vm1, %v4855_v21, %v2469_v22 }
 0x757   : > { %v2424_v31 = vsel %vm1171_vm1, %v2423_v26, %v4849_v10  ;;  %v2480_v32 = vsel %vm1171_vm1, %v2479_v25, %v4850_v50  ;;  %v2478_v33 = vperm.slane %v2470_v30, %v5898_v34  ;;  %v2411_v35 = vrot.slane %v4854_v16, 4 }
 0x758   : > { %v2430_v36 = vperm.slane %v2424_v31, %v5898_v34  ;;  %v2447_v37 = vrot.slane %v2434_v12, 4  ;;  %v2486_v38 = vperm.slane %v2480_v32, %v5898_v34  ;;  %v2503_v39 = vrot.slane %v2490_v58, 4 }
 0x759   : > { %v2468_v40 = vsel %vm1171_vm1, %v2467_v29, %v2389_v1  ;;  %v2505_v41 = vrot.slane %v2478_v33, 4  ;;  %v2412_v43 = vsel %vm1171_vm1, %v2411_v35, %v2387_v0  ;;  %v2414_v44 = vsel %vm1171_vm1, %v4854_v16, %v2413_v23 }
 0x75a   : > { %v2435_v45 = vrot.slane %v2430_v36, 4  ;;  %v2491_v46 = vrot.slane %v2486_v38, 4  ;;  %v2474_v47 = vperm.slane %v2468_v40, %v5898_v34  ;;  %v2418_v48 = vperm.slane %v2412_v43, %v5898_v34 }
 0x75b   : > { %v2422_v49 = vperm.slane %v2414_v44, %v5898_v34  ;;  %v2504_v52 = vsel %vm1171_vm1, %v2503_v39, %v2478_v33  ;;  %v2506_v53 = vsel %vm1171_vm1, %v2490_v58, %v2505_v41  ;;  %v2721_v16 = vunpack.c.l.b16 %v2293_v15 }
 0x75c   : > { %v2493_v57 = vrot.slane %v2474_v47, 4  ;;  %v2436_v59 = vsel %vm1171_vm1, %v2435_v45, %v2418_v48  ;;  %v2437_v61 = vrot.slane %v2418_v48, 4  ;;  %v2492_v62 = vsel %vm1171_vm1, %v2491_v46, %v2474_v47 }
 0x75d   : > { %v2442_v0 = vperm.slane %v2436_v59, %v5908_v51  ;;  %v2448_v1 = vsel %vm1171_vm1, %v2447_v37, %v2422_v49  ;;  %v2449_v2 = vrot.slane %v2422_v49, 4  ;;  %v2498_v3 = vperm.slane %v2492_v62, %v5908_v51  ;;  %v2296_v37 = vld [vmem:[%s5863_s19 + $0x2c] sm:$0xf] }
 0x75e   : > { %v2438_v5 = vsel %vm1171_vm1, %v2430_v36, %v2437_v61  ;;  %v2454_v60 = vperm.slane %v2448_v1, %v5908_v51  ;;  %v2494_v42 = vsel %vm1171_vm1, %v2486_v38, %v2493_v57  ;;  %v2510_v6 = vperm.slane %v2504_v52, %v5908_v51 }
 0x75f   : > { %v2446_v7 = vperm.slane %v2438_v5, %v5908_v51  ;;  %v2450_v4 = vsel %vm1171_vm1, %v2434_v12, %v2449_v2  ;;  %v2502_v8 = vperm.slane %v2494_v42, %v5908_v51  ;;  %v2459_v10 = vrot.slane %v2442_v0, 4  ;;  %v4561_v42 = vld [vmem:[%s5863_s19 + $0x18] sm:$0xff] }
 0x760   : > { %v2458_v50 = vperm.slane %v2450_v4, %v5908_v51  ;;  %v2463_v13 = vrot.slane %v2454_v60, 4  ;;  %v2514_v14 = vperm.slane %v2506_v53, %v5908_v51  ;;  %v2515_v9 = vrot.slane %v2498_v3, 4 }
 0x761   : > { %v2461_v17 = vrot.slane %v2446_v7, 4  ;;  %v2517_v18 = vrot.slane %v2502_v8, 4  ;;  %v2519_v54 = vrot.slane %v2510_v6, 4  ;;  %v2460_v22 = vsel %vm1171_vm1, 0.0, %v2459_v10 }
 0x762   : > { %v2465_v19 = vrot.slane %v2458_v50, 4  ;;  %v2521_v20 = vrot.slane %v2514_v14, 4  ;;  %v2464_v23 = vsel %vm1171_vm1, 0.0, %v2463_v13  ;;  %v2516_v26 = vsel %vm1171_vm1, 0.0, %v2515_v9 }
 0x763   : > { %v2462_v63 = vsel %vm1171_vm1, 0.0, %v2461_v17  ;;  %v2518_v21 = vsel %vm1171_vm1, 0.0, %v2517_v18  ;;  %v2523_v27 = vsel %vm1171_vm1, %v2461_v17, %v2442_v0  ;;  %v2520_v58 = vsel %vm1171_vm1, 0.0, %v2519_v54 }
 0x764   : > { %v2466_v24 = vsel %vm1171_vm1, 0.0, %v2465_v19  ;;  %v2528_v25 = vrot.slane %v2462_v63, 4  ;;  %v2582_v12 = vrot.slane %v2518_v21, 4  ;;  %v2522_v29 = vsel %vm1171_vm1, 0.0, %v2521_v20  ;;  %v4562_v63 = vld [vmem:[%s5863_s19 + $0x24] sm:$0xff]  ;;  %s6753_s19 = sld [smem:[#allocation56_spill]] }
 0x765   : > { %v2539_v28 = vrot.slane %v2466_v24, 4  ;;  %v2534_v31 = vsel %vm1171_vm1, %v2465_v19, %v2454_v60  ;;  %v2577_v35 = vsel %vm1171_vm1, %v2517_v18, %v2498_v3  ;;  %v2527_v38 = vperm.slane %v2523_v27, %v5898_v34 }
 0x766   : > { %v2529_v30 = vsel %vm1171_vm1, %v2528_v25, %v2460_v22  ;;  %v2583_v36 = vsel %vm1171_vm1, %v2582_v12, %v2516_v26  ;;  %v2588_v41 = vsel %vm1171_vm1, %v2521_v20, %v2510_v6  ;;  %v2538_v43 = vperm.slane %v2534_v31, %v5898_v34 }
 0x767   : > { %v2533_v32 = vperm.slane %v2529_v30, %v5898_v34  ;;  %v2540_v33 = vsel %vm1171_vm1, %v2539_v28, %v2464_v23  ;;  %v2587_v40 = vperm.slane %v2583_v36, %v5898_v34  ;;  %v2593_v45 = vrot.slane %v2522_v29, 4 }
 0x768   : > { %v2544_v39 = vperm.slane %v2540_v33, %v5898_v34  ;;  %v2723_v46 = vpack.c.b16 %v2721_v16, %v2721_v16  ;;  %v2581_v48 = vperm.slane %v2577_v35, %v5898_v34  ;;  %v2757_v52 = vunpack.c.l.b16 %v2296_v37 }
 0x769   : > { %v2545_v44 = vrot.slane %v2533_v32, 4  ;;  %v2599_v49 = vrot.slane %v2587_v40, 4  ;;  %v2592_v53 = vperm.slane %v2588_v41, %v5898_v34  ;;  %v2594_v57 = vsel %vm1171_vm1, %v2593_v45, %v2520_v58 }
 0x76a   : > { %v2557_v47 = vrot.slane %v2544_v39, 4  ;;  %v2731_v61 = vsel %vm1414_vm0, %v2723_v46, 0  ;;  %v2598_v62 = vperm.slane %v2594_v57, %v5898_v34  ;;  %v2759_v60 = vpack.c.b16 %v2757_v52, %v2757_v52 }
 0x76b   : > { %v2546_v59 = vsel %vm1171_vm1, %v2545_v44, %v2527_v38  ;;  %v2600_v2 = vsel %vm1171_vm1, %v2599_v49, %v2581_v48  ;;  %2739 = vmatpush.bf16.xpose.msrb.mxu0 %v2731_v61  ;;  %v2547_v6 = vrot.slane %v2527_v38, 4  ;;  %v2601_v7 = vrot.slane %v2581_v48, 4 }
 0x76c   : > { %v2552_v0 = vperm.slane %v2546_v59, %v5908_v51  ;;  %v2558_v1 = vsel %vm1171_vm1, %v2557_v47, %v2538_v43  ;;  %v2606_v5 = vperm.slane %v2600_v2, %v5908_v51  ;;  %v2611_v4 = vrot.slane %v2598_v62, 4 }
 0x76d   : > { %v2564_v3 = vperm.slane %v2558_v1, %v5908_v51  ;;  %v2767_v13 = vsel %vm1414_vm0, %v2759_v60, 0  ;;  %v2559_v14 = vrot.slane %v2538_v43, 4  ;;  %v2613_v15 = vrot.slane %v2592_v53, 4 }
 0x76e   : > { %v2571_v8 = vrot.slane %v2552_v0, 4  ;;  %v2625_v10 = vrot.slane %v2606_v5, 4  ;;  %v2612_v17 = vsel %vm1171_vm1, %v2611_v4, %v2592_v53  ;;  %2775 = vmatpush.bf16.xpose.msra.mxu1 %v2767_v13  ;;  %v2728_v20 = vsel %vm1414_vm0, %v4561_v42, 0 }
 0x76f   : > { %v2569_v50 = vrot.slane %v2564_v3, 4  ;;  %v2618_v19 = vperm.slane %v2612_v17, %v5908_v51  ;;  %v2548_v16 = vsel %vm1171_vm1, %v2533_v32, %v2547_v6  ;;  %v2602_v22 = vsel %vm1171_vm1, %v2587_v40, %v2601_v7 }
 0x770   : > { %v2572_v9 = vsel %vm1171_vm1, %v2564_v3, %v2571_v8  ;;  %v2560_v27 = vsel %vm1171_vm1, %v2544_v39, %v2559_v14  ;;  %v2614_v28 = vsel %vm1171_vm1, %v2598_v62, %v2613_v15  ;;  %v2764_v58 = vsel %vm1414_vm0, %v4562_v63, 0 }
 0x771   : > { %v2570_v18 = vsel %vm1171_vm1, %v2569_v50, %v2552_v0  ;;  %v2633_v54 = vpack.c.bf16 %v2572_v9, %v2572_v9  ;;  %v2623_v23 = vrot.slane %v2618_v19, 4  ;;  %v2626_v24 = vsel %vm1171_vm1, %v2618_v19, %v2625_v10 }
 0x772   : > { %v2631_v21 = vpack.c.bf16 %v2570_v18, %v2570_v18  ;;  %v2634_v25 = vpack.c.bf16 %v2626_v24, %v2626_v24  ;;  %v2556_v29 = vperm.slane %v2548_v16, %v5908_v51  ;;  %v2610_v30 = vperm.slane %v2602_v22, %v5908_v51 }
 0x773   : > { %v2677_v26 = vunpack.c.l.b16 %v2633_v54  ;;  %2740 = vmatpush.bf16.xpose.msrb.mxu0 %v2728_v20  ;;  %v2624_v12 = vsel %vm1171_vm1, %v2623_v23, %v2606_v5  ;;  %v2568_v35 = vperm.slane %v2560_v27, %v5908_v51  ;;  %v2622_v36 = vperm.slane %v2614_v28, %v5908_v51 }
 0x774   : > { %v2632_v31 = vpack.c.bf16 %v2624_v12, %v2624_v12  ;;  %v2641_v32 = vunpack.c.l.b16 %v2631_v21  ;;  %v2678_v33 = vunpack.c.l.b16 %v2634_v25  ;;  %v2575_v39 = vrot.slane %v2556_v29, 4 }
 0x775   : > { %v2629_v40 = vrot.slane %v2610_v30, 4  ;;  %v2573_v43 = vrot.slane %v2568_v35, 4  ;;  %v2627_v44 = vrot.slane %v2622_v36, 4 }
 0x776   : > { %v2642_v37 = vunpack.c.l.b16 %v2632_v31  ;;  %v2679_v38 = vpack.c.b16 %v2678_v33, %v2677_v26  ;;  %2776 = vmatpush.bf16.xpose.msra.mxu1 %v2764_v58  ;;  %v2576_v45 = vsel %vm1171_vm1, %v2568_v35, %v2575_v39 }
 0x777   : > { %v2630_v46 = vsel %vm1171_vm1, %v2622_v36, %v2629_v40  ;;  %v2574_v47 = vsel %vm1171_vm1, %v2573_v43, %v2556_v29  ;;  %v2628_v48 = vsel %vm1171_vm1, %v2627_v44, %v2610_v30  ;;  %v2637_v49 = vpack.c.bf16 %v2576_v45, %v2576_v45 }
 0x778   : > { %v2643_v41 = vpack.c.b16 %v2642_v37, %v2641_v32  ;;  %4327 = vmatmul.msk.bf16.vlgmr.msrb.gmra.mxu1 %vm1414_vm0, %v2679_v38  ;;  %v2638_v52 = vpack.c.bf16 %v2630_v46, %v2630_v46  ;;  %v2635_v53 = vpack.c.bf16 %v2574_v47, %v2574_v47  ;;  %v2636_v57 = vpack.c.bf16 %v2628_v48, %v2628_v48 }
 0x779   : > { %v2749_v59 = vunpack.c.l.b16 %v2637_v49 }
 0x77a   : > { %4322 = vmatmul.msk.bf16.vlgmr.msra.gmra.mxu0 %vm1414_vm0, %v2643_v41  ;;  %v2750_v61 = vunpack.c.l.b16 %v2638_v52  ;;  %v2713_v62 = vunpack.c.l.b16 %v2635_v53  ;;  %v2714_v0 = vunpack.c.l.b16 %v2636_v57 }
 0x77c   : > { %v2751_v1 = vpack.c.b16 %v2750_v61, %v2749_v59  ;;  %v2715_v2 = vpack.c.b16 %v2714_v0, %v2713_v62  ;;  %v2299_v0 = vld [vmem:[%s5869_s25 + $0x8] sm:$0xf] }
 0x788   : > { %4337 = vmatmul.msk.bf16.vlgmr.msra.gmra.mxu1 %vm1414_vm0, %v2751_v1  ;;  %v2994_v1 = vunpack.c.l.b16 %v2299_v0 }
 0x78a   : > { %4332 = vmatmul.msk.bf16.vlgmr.msrb.gmra.mxu0 %vm1414_vm0, %v2715_v2  ;;  %v2302_v2 = vld [vmem:[%s5869_s25 + $0x14] sm:$0xf] }
 0x7f5   : > { %v2706_v3 = vpop.f32.mrf.mxu1 }
 0x7f6   : > { %v2790_v5 = vsel %vm2783_vm3, %v2706_v3, -inf }
 0x7f7   : > { %v2670_v60 = vpop.f32.mrf.mxu0  ;;  %2791 = vmax.xlane.f32.xlu1 %v2790_v5  ;;  %v3029_v5 = vunpack.c.l.b16 %v2302_v2 }
 0x7f8   : > { %v2784_v42 = vsel %vm2783_vm3, %v2670_v60, -inf }
 0x7f9   : > { %2785 = vmax.xlane.f32.xlu2 %v2784_v42 }
 0x7fd   : > { %v2708_v6 = vpop.f32.mrf.mxu1 }
 0x7fe   : > { %v2793_v7 = vsel %vm2783_vm3, %v2708_v6, -inf }
 0x7ff   : > { %v2672_v4 = vpop.f32.mrf.mxu0 }
 0x800   : > { %v2787_v8 = vsel %vm2783_vm3, %v2672_v4, -inf }
 0x801   : > { %2788 = vmax.xlane.f32.xlu0 %v2787_v8  ;;  %2794 = vmax.xlane.f32.xlu2 %v2793_v7  ;;  %v4563_v8 = vld [vmem:[%s5869_s25] sm:$0xff] }
 0x805   : > { %v2778_v50 = vpop.f32.mrf.mxu1 }
 0x806   : > { %v2802_v10 = vsel %vm2783_vm3, %v2778_v50, -inf }
 0x807   : > { %v2742_v13 = vpop.f32.mrf.mxu0 }
 0x808   : > { %v2796_v14 = vsel %vm2783_vm3, %v2742_v13, -inf }
 0x809   : > { %2797 = vmax.xlane.f32.xlu0 %v2796_v14  ;;  %2803 = vmax.xlane.f32.xlu2 %v2802_v10 }
 0x80d   : > { %v2780_v15 = vpop.f32.mrf.mxu1 }
 0x80e   : > { %v2805_v17 = vsel %vm2783_vm3, %v2780_v15, -inf }
 0x80f   : > { %v2744_v9 = vpop.f32.mrf.mxu0 }
 0x810   : > { %v2799_v18 = vsel %vm2783_vm3, %v2744_v9, -inf }
 0x811   : > { %2800 = vmax.xlane.f32.xlu1 %v2799_v18  ;;  %2806 = vmax.xlane.f32.xlu0 %v2805_v17 }
 0x86a   : > { %v2792_v19 = vpop.xlane.xlu1 %2791 }
 0x86b   : > { %v2810_v54 = vsub.f32 %v2706_v3, %v2792_v19  ;;  %v2996_v3 = vpack.c.b16 %v2994_v1, %v2994_v1 }
 0x86c   : > { %v2786_v20 = vpop.xlane.xlu2 %2785 }
 0x86d   : > { %v2808_v63 = vsub.f32 %v2670_v60, %v2786_v20  ;;  %v2820_v21 = vmul.f32 1.442695, %v2810_v54  ;;  %v3003_v42 = vsel %vm3001_vm4, %v2996_v3, 0 }
 0x86e   : > { %3011 = vmatpush.bf16.msra.mxu2 %v3003_v42 }
 0x86f   : > { %v2816_v16 = vmul.f32 1.442695, %v2808_v63  ;;  %4925 = vpow2.f32 %v2820_v21  ;;  %v2305_v21 = vld [vmem:[%s5869_s25 + $0x20] sm:$0xf] }
 0x871   : > { %4927 = vpow2.f32 %v2816_v16 }
 0x872   : > { %3012 = vmatpush.bf16.msra.mxu2 %v4563_v8 }
 0x874   : > { %v2789_v22 = vpop.xlane.xlu0 %2788  ;;  %v2795_v23 = vpop.xlane.xlu2 %2794 }
 0x875   : > { %v6287_v24 = vpop.eup %4925  ;;  %v2809_v25 = vsub.f32 %v2672_v4, %v2789_v22  ;;  %v2811_v26 = vsub.f32 %v2708_v6, %v2795_v23  ;;  %v3031_v6 = vpack.c.b16 %v3029_v5, %v3029_v5 }
 0x876   : > { %v2838_v27 = vsel %vm2783_vm3, %v6287_v24, 0.0 }
 0x877   : > { %v6291_v28 = vpop.eup %4927  ;;  %v2818_v12 = vmul.f32 1.442695, %v2809_v25  ;;  %v2822_v58 = vmul.f32 1.442695, %v2811_v26  ;;  %2839 = vadd.xlane.f32.xlu0 %v2838_v27  ;;  %v3037_v4 = vsel %vm3001_vm4, %v3031_v6, 0 }
 0x878   : > { %v2832_v29 = vsel %vm2783_vm3, %v6291_v28, 0.0  ;;  %3045 = vmatpush.bf16.msra.mxu3 %v3037_v4  ;;  %v2308_v25 = vld [vmem:[%s5869_s25 + $0x2c] sm:$0xf] }
 0x879   : > { %4929 = vpow2.f32 %v2818_v12  ;;  %2833 = vadd.xlane.f32.xlu1 %v2832_v29  ;;  %v3063_v12 = vunpack.c.l.b16 %v2305_v21 }
 0x87a   : > { %4931 = vpow2.f32 %v2822_v58 }
 0x87c   : > { %v2798_v30 = vpop.xlane.xlu0 %2797  ;;  %v2804_v31 = vpop.xlane.xlu2 %2803 }
 0x87d   : > { %v2812_v32 = vsub.f32 %v2742_v13, %v2798_v30  ;;  %v2814_v33 = vsub.f32 %v2778_v50, %v2804_v31  ;;  %v4564_v50 = vld [vmem:[%s5869_s25 + $0xc] sm:$0xff]  ;;  %v3097_v31 = vunpack.c.l.b16 %v2308_v25 }
 0x87e   : > { %3046 = vmatpush.bf16.msra.mxu3 %v4564_v50 }
 0x87f   : > { %v6295_v35 = vpop.eup %4929  ;;  %v2824_v36 = vmul.f32 1.442695, %v2812_v32  ;;  %v2828_v37 = vmul.f32 1.442695, %v2814_v33  ;;  %v3099_v1 = vpack.c.b16 %v3097_v31, %v3097_v31 }
 0x880   : > { %v6297_v38 = vpop.eup %4931  ;;  %v2835_v39 = vsel %vm2783_vm3, %v6295_v35, 0.0 }
 0x881   : > { %4933 = vpow2.f32 %v2824_v36  ;;  %2836 = vadd.xlane.f32.xlu2 %v2835_v39  ;;  %v2841_v40 = vsel %vm2783_vm3, %v6297_v38, 0.0 }
 0x882   : > { %4935 = vpow2.f32 %v2828_v37  ;;  %2842 = vadd.xlane.f32.xlu1 %v2841_v40 }
 0x884   : > { %v2801_v41 = vpop.xlane.xlu1 %2800  ;;  %v2807_v43 = vpop.xlane.xlu0 %2806 }
 0x885   : > { %v2813_v44 = vsub.f32 %v2744_v9, %v2801_v41  ;;  %v2815_v45 = vsub.f32 %v2780_v15, %v2807_v43 }
 0x887   : > { %v6303_v46 = vpop.eup %4933  ;;  %v2826_v47 = vmul.f32 1.442695, %v2813_v44  ;;  %v2830_v48 = vmul.f32 1.442695, %v2815_v45 }
 0x888   : > { %v6305_v49 = vpop.eup %4935  ;;  %v2844_v52 = vsel %vm2783_vm3, %v6303_v46, 0.0 }
 0x889   : > { %4937 = vpow2.f32 %v2826_v47  ;;  %2845 = vadd.xlane.f32.xlu2 %v2844_v52  ;;  %v2850_v53 = vsel %vm2783_vm3, %v6305_v49, 0.0 }
 0x88a   : > { %4939 = vpow2.f32 %v2830_v48  ;;  %2851 = vadd.xlane.f32.xlu1 %v2850_v53 }
 0x88f   : > { %v6311_v57 = vpop.eup %4937 }
 0x890   : > { %v6313_v59 = vpop.eup %4939  ;;  %v2847_v61 = vsel %vm2783_vm3, %v6311_v57, 0.0 }
 0x891   : > { %2848 = vadd.xlane.f32.xlu0 %v2847_v61  ;;  %v2853_v62 = vsel %vm2783_vm3, %v6313_v59, 0.0  ;;  %v3065_v61 = vpack.c.b16 %v3063_v12, %v3063_v12 }
 0x892   : > { %2854 = vadd.xlane.f32.xlu2 %v2853_v62 }
 0x893   : > { %v3071_v4 = vsel %vm3001_vm4, %v3065_v61, 0 }
 0x894   : > { %3079 = vmatpush.bf16.msra.mxu0 %v3071_v4 }
 0x8ea   : > { %v2840_v60 = vpop.xlane.xlu0 %2839 }
 0x8eb   : > { %4941 = vrcp.f32 %v2840_v60  ;;  %v2895_v20 = vand.u32 2147483647, %v2840_v60  ;;  %v2897_v63 = vand.u32 2147483648, %v2840_v60  ;;  %vm2891_vm7 = vweird.f32 %v2840_v60 }
 0x8ec   : > { %v2834_v7 = vpop.xlane.xlu1 %2833 }
 0x8ed   : > { %4943 = vrcp.f32 %v2834_v7  ;;  %v2865_v22 = vand.u32 2147483647, %v2834_v7  ;;  %v2867_v23 = vand.u32 2147483648, %v2834_v7  ;;  %vm2861_vm10 = vweird.f32 %v2834_v7 }
 0x8ee   : > { %vm6337_vm12 = vcmp.eq.f32.partialorder %v2895_v20, 8.507059e+37  ;;  %v2898_v39 = vor.u32 1.1754944e-38, %v2897_v63 }
 0x8ef   : > { %vm6345_vm14 = vcmp.eq.f32.partialorder %v2865_v22, 8.507059e+37  ;;  %v2868_v37 = vor.u32 1.1754944e-38, %v2867_v23 }
 0x8f1   : > { %v4942_v10 = vpop.eup %4941 }
 0x8f2   : > { %v2887_v13 = vmul.f32 %v4942_v10, %v2840_v60  ;;  %vm2892_vm5 = vweird.f32 %v4942_v10 }
 0x8f3   : > { %v4944_v14 = vpop.eup %4943  ;;  %vm6333_vm11 = vmor %vm2891_vm7, %vm2892_vm5 }
 0x8f4   : > { %v2857_v15 = vmul.f32 %v4944_v14, %v2834_v7  ;;  %v2888_v17 = vsub.f32 1.0, %v2887_v13  ;;  %v6325_v9 = vpop.xlane.xlu2 %2836  ;;  %vm2862_vm6 = vweird.f32 %v4944_v14 }
 0x8f5   : > { %4945 = vrcp.f32 %v6325_v9  ;;  %v6328_v18 = vpop.xlane.xlu1 %2842  ;;  %vm6341_vm13 = vmor %vm2861_vm10, %vm2862_vm6  ;;  %v2880_v52 = vand.u32 2147483647, %v6325_v9  ;;  %v2882_v53 = vand.u32 2147483648, %v6325_v9  ;;  %vm2876_vm2 = vweird.f32 %v6325_v9 }
 0x8f6   : > { %v2858_v19 = vsub.f32 1.0, %v2857_v15  ;;  %v2889_v54 = vmul.f32 %v4942_v10, %v2888_v17  ;;  %4947 = vrcp.f32 %v6328_v18  ;;  %v2912_v0 = vand.u32 2147483648, %v6328_v18  ;;  %v4565_v15 = vld [vmem:[%s5869_s25 + $0x18] sm:$0xff] }
 0x8f7   : > { %v2910_v42 = vand.u32 2147483647, %v6328_v18  ;;  %v2883_v7 = vor.u32 1.1754944e-38, %v2882_v53  ;;  %vm2906_vm6 = vweird.f32 %v6328_v18  ;;  %vm2881_vm10 = vcmp.eq.f32.partialorder %v2880_v52, 8.507059e+37  ;;  %3080 = vmatpush.bf16.msra.mxu0 %v4565_v15 }
 0x8f8   : > { %v2859_v16 = vmul.f32 %v4944_v14, %v2858_v19  ;;  %v2890_v26 = vadd.f32 %v4942_v10, %v2889_v54 }
 0x8fa   : > { %v2860_v27 = vadd.f32 %v4944_v14, %v2859_v16  ;;  %v2894_v44 = vsel %vm6333_vm11, %v4942_v10, %v2890_v26 }
 0x8fb   : > { %v4946_v58 = vpop.eup %4945  ;;  %v2899_v3 = vsel %vm6337_vm12, %v2898_v39, %v2894_v44  ;;  %vm2911_vm12 = vcmp.eq.f32.partialorder %v2910_v42, 8.507059e+37 }
 0x8fc   : > { %v4948_v32 = vpop.eup %4947  ;;  %v2872_v40 = vmul.f32 %v4946_v58, %v6325_v9  ;;  %v6350_v41 = vpop.xlane.xlu2 %2845  ;;  %v2864_v43 = vsel %vm6341_vm13, %v4944_v14, %v2860_v27  ;;  %vm2877_vm15 = vweird.f32 %v4946_v58  ;;  %v2900_v10 = vmul.f32 %v6287_v24, %v2899_v3 }
 0x8fd   : > { %v2902_v45 = vmul.f32 %v4948_v32, %v6328_v18  ;;  %4949 = vrcp.f32 %v6350_v41  ;;  %v6358_v47 = vpop.xlane.xlu1 %2851  ;;  %v2869_v2 = vsel %vm6345_vm14, %v2868_v37, %v2864_v43  ;;  %vm2907_vm5 = vweird.f32 %v4948_v32  ;;  %vm2878_vm7 = vmor %vm2876_vm2, %vm2877_vm15 }
 0x8fe   : > { %v2873_v48 = vsub.f32 1.0, %v2872_v40  ;;  %4951 = vrcp.f32 %v6358_v47  ;;  %v2870_v50 = vmul.f32 %v6291_v28, %v2869_v2  ;;  %v3105_v14 = vsel %vm3001_vm4, %v3099_v1, 0  ;;  %vm2908_vm11 = vmor %vm2906_vm6, %vm2907_vm5  ;;  %v4566_v28 = vld [vmem:[%s5869_s25 + $0x24] sm:$0xff] }
 0x8ff   : > { %v2903_v62 = vsub.f32 1.0, %v2902_v45  ;;  %v2913_v9 = vor.u32 1.1754944e-38, %v2912_v0  ;;  %3113 = vmatpush.bf16.msrb.mxu1 %v3105_v14  ;;  %v2978_v26 = vpack.c.bf16 %v2900_v10, %v2900_v10  ;;  %vm2921_vm13 = vweird.f32 %v6350_v41 }
 0x900   : > { %v2874_v5 = vmul.f32 %v4946_v58, %v2873_v48  ;;  %v2976_v25 = vpack.c.bf16 %v2870_v50, %v2870_v50  ;;  %v2957_v48 = vand.u32 2147483648, %v6358_v47  ;;  %vm2951_vm2 = vweird.f32 %v6358_v47 }
 0x901   : > { %v2904_v60 = vmul.f32 %v4948_v32, %v2903_v62  ;;  %v3021_v39 = vunpack.c.l.b16 %v2978_v26  ;;  %v2955_v53 = vand.u32 2147483647, %v6358_v47 }
 0x902   : > { %v2875_v6 = vadd.f32 %v4946_v58, %v2874_v5  ;;  %v2986_v37 = vunpack.c.l.b16 %v2976_v25 }
 0x903   : > { %v6372_v8 = vpop.eup %4949  ;;  %v2905_v13 = vadd.f32 %v4948_v32, %v2904_v60  ;;  %3114 = vmatpush.bf16.msrb.mxu1 %v4566_v28 }
 0x904   : > { %v2879_v17 = vsel %vm2878_vm7, %v4946_v58, %v2875_v6  ;;  %v2917_v18 = vmul.f32 %v6372_v8, %v6350_v41  ;;  %v6381_v19 = vpop.xlane.xlu0 %2848  ;;  %v4952_v54 = vpop.eup %4951  ;;  %vm2922_vm4 = vweird.f32 %v6372_v8 }
 0x905   : > { %v2884_v24 = vsel %vm2881_vm10, %v2883_v7, %v2879_v17  ;;  %v2909_v20 = vsel %vm2908_vm11, %v4948_v32, %v2905_v13  ;;  %4953 = vrcp.f32 %v6381_v19  ;;  %v6385_v63 = vpop.xlane.xlu2 %2854  ;;  %v2947_v23 = vmul.f32 %v4952_v54, %v6358_v47  ;;  %vm6399_vm14 = vmor %vm2921_vm13, %vm2922_vm4 }
 0x906   : > { %v2885_v21 = vmul.f32 %v6295_v35, %v2884_v24  ;;  %v2914_v16 = vsel %vm2911_vm12, %v2913_v9, %v2909_v20  ;;  %v2918_v22 = vsub.f32 1.0, %v2917_v18  ;;  %4955 = vrcp.f32 %v6385_v63 }
 0x907   : > { %v2915_v27 = vmul.f32 %v6297_v38, %v2914_v16  ;;  %v2948_v29 = vsub.f32 1.0, %v2947_v23  ;;  %v2927_v35 = vand.u32 2147483648, %v6350_v41  ;;  %v2925_v38 = vand.u32 2147483647, %v6350_v41 }
 0x908   : > { %v2977_v12 = vpack.c.bf16 %v2885_v21, %v2885_v21  ;;  %v2919_v58 = vmul.f32 %v6372_v8, %v2918_v22  ;;  %vm2952_vm15 = vweird.f32 %v4952_v54  ;;  %v2942_v60 = vand.u32 2147483648, %v6381_v19 }
 0x909   : > { %v2979_v30 = vpack.c.bf16 %v2915_v27, %v2915_v27  ;;  %v2949_v33 = vmul.f32 %v4952_v54, %v2948_v29  ;;  %v2928_v52 = vor.u32 1.1754944e-38, %v2927_v35  ;;  %vm2926_vm5 = vcmp.eq.f32.partialorder %v2925_v38, 8.507059e+37  ;;  %vm6410_vm6 = vmor %vm2951_vm2, %vm2952_vm15 }
 0x90a   : > { %v2987_v31 = vunpack.c.l.b16 %v2977_v12  ;;  %v2920_v32 = vadd.f32 %v6372_v8, %v2919_v58  ;;  %v2958_v47 = vor.u32 1.1754944e-38, %v2957_v48  ;;  %v2940_v7 = vand.u32 2147483647, %v6381_v19 }
 0x90b   : > { %v4954_v36 = vpop.eup %4953  ;;  %v3022_v40 = vunpack.c.l.b16 %v2979_v30  ;;  %v2950_v45 = vadd.f32 %v4952_v54, %v2949_v33  ;;  %vm2956_vm10 = vcmp.eq.f32.partialorder %v2955_v53, 8.507059e+37  ;;  %vm2936_vm11 = vweird.f32 %v6381_v19 }
 0x90c   : > { %v2924_v44 = vsel %vm6399_vm14, %v6372_v8, %v2920_v32  ;;  %v2932_v41 = vmul.f32 %v4954_v36, %v6381_v19  ;;  %v2988_v61 = vpack.c.b16 %v2987_v31, %v2986_v37  ;;  %v4956_v62 = vpop.eup %4955  ;;  %vm2937_vm7 = vweird.f32 %v4954_v36 }
 0x90d   : > { %v3023_v2 = vpack.c.b16 %v3022_v40, %v3021_v39  ;;  %v2929_v3 = vsel %vm2926_vm5, %v2928_v52, %v2924_v44  ;;  %v2954_v5 = vsel %vm6410_vm6, %v4952_v54, %v2950_v45  ;;  %v2962_v42 = vmul.f32 %v4956_v62, %v6385_v63  ;;  %vm2938_vm12 = vmor %vm2936_vm11, %vm2937_vm7 }
 0x90e   : > { %v2933_v1 = vsub.f32 1.0, %v2932_v41  ;;  %4342 = vmatmul.msk.bf16.vlgmr.msra.gmra.mxu2 %vm2783_vm3, %v2988_v61  ;;  %v2930_v8 = vmul.f32 %v6303_v46, %v2929_v3  ;;  %v2959_v50 = vsel %vm2956_vm10, %v2958_v47, %v2954_v5  ;;  %v2972_v13 = vand.u32 2147483648, %v6385_v63 }
 0x90f   : > { %4347 = vmatmul.msk.bf16.vlgmr.msra.gmra.mxu3 %vm2783_vm3, %v3023_v2  ;;  %v2963_v4 = vsub.f32 1.0, %v2962_v42  ;;  %v2943_v14 = vor.u32 1.1754944e-38, %v2942_v60  ;;  %vm2967_vm4 = vweird.f32 %v4956_v62  ;;  %v2970_v17 = vand.u32 2147483647, %v6385_v63 }
 0x910   : > { %v2934_v6 = vmul.f32 %v4954_v36, %v2933_v1  ;;  %vm2941_vm13 = vcmp.eq.f32.partialorder %v2940_v7, 8.507059e+37  ;;  %v2960_v18 = vmul.f32 %v6305_v49, %v2959_v50  ;;  %vm2966_vm14 = vweird.f32 %v6385_v63 }
 0x911   : > { %v2964_v15 = vmul.f32 %v4956_v62, %v2963_v4  ;;  %v2980_v19 = vpack.c.bf16 %v2930_v8, %v2930_v8  ;;  %vm2968_vm15 = vmor %vm2966_vm14, %vm2967_vm4  ;;  %v2973_v24 = vor.u32 1.1754944e-38, %v2972_v13  ;;  %vm2971_vm2 = vcmp.eq.f32.partialorder %v2970_v17, 8.507059e+37 }
 0x912   : > { %v2935_v10 = vadd.f32 %v4954_v36, %v2934_v6  ;;  %v2982_v22 = vpack.c.bf16 %v2960_v18, %v2960_v18 }
 0x913   : > { %v2965_v54 = vadd.f32 %v4956_v62, %v2964_v15  ;;  %v3055_v25 = vunpack.c.l.b16 %v2980_v19 }
 0x914   : > { %v2939_v9 = vsel %vm2938_vm12, %v4954_v36, %v2935_v10  ;;  %v3089_v12 = vunpack.c.l.b16 %v2982_v22 }
 0x915   : > { %v2944_v28 = vsel %vm2941_vm13, %v2943_v14, %v2939_v9  ;;  %v2969_v20 = vsel %vm2968_vm15, %v4956_v62, %v2965_v54 }
 0x916   : > { %v2945_v46 = vmul.f32 %v6311_v57, %v2944_v28  ;;  %v2974_v16 = vsel %vm2971_vm2, %v2973_v24, %v2969_v20 }
 0x917   : > { %v2975_v23 = vmul.f32 %v6313_v59, %v2974_v16 }
 0x918   : > { %v2981_v21 = vpack.c.bf16 %v2945_v46, %v2945_v46 }
 0x919   : > { %v2983_v27 = vpack.c.bf16 %v2975_v23, %v2975_v23 }
 0x91a   : > { %v3056_v26 = vunpack.c.l.b16 %v2981_v21 }
 0x91b   : > { %v3090_v58 = vunpack.c.l.b16 %v2983_v27 }
 0x91c   : > { %v3057_v49 = vpack.c.b16 %v3056_v26, %v3055_v25 }
 0x91d   : > { %v3091_v63 = vpack.c.b16 %v3090_v58, %v3089_v12 }
 0x91e   : > { %4352 = vmatmul.msk.bf16.vlgmr.msra.gmra.mxu0 %vm2783_vm3, %v3057_v49 }
 0x91f   : > { %4357 = vmatmul.msk.bf16.vlgmr.msrb.gmra.mxu1 %vm2783_vm3, %v3091_v63 }
 0x991   : > { %v3014_v57 = vpop.f32.mrf.mxu2 }
 0x992   : > { %v3123_v29 = vrot.slane %v3014_v57, 4  ;;  %v3048_v30 = vpop.f32.mrf.mxu3 }
 0x993   : > { %v3135_v38 = vrot.slane %v3048_v30, 4 }
 0x999   : > { %v3016_v44 = vpop.f32.mrf.mxu2 }
 0x99a   : > { %v3179_v62 = vrot.slane %v3016_v44, 4  ;;  %v3050_v42 = vpop.f32.mrf.mxu3 }
 0x99b   : > { %v3082_v35 = vpop.f32.mrf.mxu0  ;;  %v3191_v9 = vrot.slane %v3050_v42, 4 }
 0x99c   : > { %v3121_v31 = vrot.slane %v3082_v35, 4  ;;  %v3124_v32 = vsel %vm1171_vm1, %v3082_v35, %v3123_v29  ;;  %v3116_v36 = vpop.f32.mrf.mxu1 }
 0x99d   : > { %v3132_v59 = vperm.slane %v3124_v32, %v5898_v34  ;;  %v3133_v40 = vrot.slane %v3116_v36, 4  ;;  %v3136_v43 = vsel %vm1171_vm1, %v3116_v36, %v3135_v38 }
 0x99e   : > { %v3122_v33 = vsel %vm1171_vm1, %v3121_v31, %v3014_v57  ;;  %v3144_v45 = vperm.slane %v3136_v43, %v5898_v34 }
 0x99f   : > { %v3128_v37 = vperm.slane %v3122_v33, %v5898_v34  ;;  %v3159_v39 = vrot.slane %v3132_v59, 4  ;;  %v3134_v41 = vsel %vm1171_vm1, %v3133_v40, %v3048_v30 }
 0x9a0   : > { %v3140_v52 = vperm.slane %v3134_v41, %v5898_v34  ;;  %v3157_v53 = vrot.slane %v3144_v45, 4 }
 0x9a1   : > { %v3147_v48 = vrot.slane %v3128_v37, 4  ;;  %v3160_v61 = vsel %vm1171_vm1, %v3144_v45, %v3159_v39 }
 0x9a2   : > { %v3168_v0 = vperm.slane %v3160_v61, %v5908_v51  ;;  %v3145_v2 = vrot.slane %v3140_v52, 4  ;;  %v3158_v5 = vsel %vm1171_vm1, %v3157_v53, %v3132_v59 }
 0x9a3   : > { %v3084_v1 = vpop.f32.mrf.mxu0  ;;  %v3148_v3 = vsel %vm1171_vm1, %v3140_v52, %v3147_v48  ;;  %v3164_v6 = vperm.slane %v3158_v5, %v5908_v51 }
 0x9a4   : > { %v3177_v60 = vrot.slane %v3084_v1, 4  ;;  %v3156_v47 = vperm.slane %v3148_v3, %v5908_v51  ;;  %v3175_v7 = vrot.slane %v3168_v0, 4  ;;  %v3180_v4 = vsel %vm1171_vm1, %v3084_v1, %v3179_v62  ;;  %v3118_v19 = vpop.f32.mrf.mxu1 }
 0x9a5   : > { %v3146_v8 = vsel %vm1171_vm1, %v3145_v2, %v3128_v37  ;;  %v3188_v10 = vperm.slane %v3180_v4, %v5898_v34  ;;  %v3173_v15 = vrot.slane %v3164_v6, 4  ;;  %v3189_v27 = vrot.slane %v3118_v19, 4 }
 0x9a6   : > { %v3178_v50 = vsel %vm1171_vm1, %v3177_v60, %v3016_v44  ;;  %v3152_v13 = vperm.slane %v3146_v8, %v5908_v51  ;;  %v3171_v14 = vrot.slane %v3156_v47, 4  ;;  %v3176_v17 = vsel %vm1171_vm1, 0.0, %v3175_v7 }
 0x9a7   : > { %v3244_v18 = vsel %vm1171_vm1, %v3175_v7, %v3164_v6  ;;  %v3249_v28 = vrot.slane %v3176_v17, 4  ;;  %v3184_v54 = vperm.slane %v3178_v50, %v5898_v34  ;;  %v3174_v20 = vsel %vm1171_vm1, 0.0, %v3173_v15 }
 0x9a8   : > { %v3169_v46 = vrot.slane %v3152_v13, 4  ;;  %v3172_v24 = vsel %vm1171_vm1, 0.0, %v3171_v14  ;;  %v3233_v21 = vsel %vm1171_vm1, %v3171_v14, %v3152_v13  ;;  %v3248_v22 = vperm.slane %v3244_v18, %v5898_v34 }
 0x9a9   : > { %v3238_v16 = vrot.slane %v3172_v24, 4  ;;  %v3250_v23 = vsel %vm1171_vm1, %v3249_v28, %v3174_v20  ;;  %v3215_v25 = vrot.slane %v3188_v10, 4  ;;  %v3192_v49 = vsel %vm1171_vm1, %v3118_v19, %v3191_v9 }
 0x9aa   : > { %v3254_v26 = vperm.slane %v3250_v23, %v5898_v34  ;;  %v3170_v12 = vsel %vm1171_vm1, 0.0, %v3169_v46  ;;  %v3203_v58 = vrot.slane %v3184_v54, 4  ;;  %v3200_v63 = vperm.slane %v3192_v49, %v5898_v34 }
 0x9ab   : > { %v3237_v57 = vperm.slane %v3233_v21, %v5898_v34  ;;  %v3239_v29 = vsel %vm1171_vm1, %v3238_v16, %v3170_v12  ;;  %v3269_v30 = vrot.slane %v3248_v22, 4  ;;  %v3190_v35 = vsel %vm1171_vm1, %v3189_v27, %v3050_v42 }
 0x9ac   : > { %v3243_v31 = vperm.slane %v3239_v29, %v5898_v34  ;;  %v3267_v32 = vrot.slane %v3254_v26, 4  ;;  %v3196_v38 = vperm.slane %v3190_v35, %v5898_v34  ;;  %v3213_v59 = vrot.slane %v3200_v63, 4 }
 0x9ad   : > { %v3216_v33 = vsel %vm1171_vm1, %v3200_v63, %v3215_v25  ;;  %v3257_v36 = vrot.slane %v3237_v57, 4  ;;  %v3270_v0 = vsel %vm1171_vm1, %v3254_v26, %v3269_v30 }
 0x9ae   : > { %v3224_v37 = vperm.slane %v3216_v33, %v5908_v51  ;;  %v3255_v39 = vrot.slane %v3243_v31, 4  ;;  %v3201_v40 = vrot.slane %v3196_v38, 4  ;;  %v3204_v43 = vsel %vm1171_vm1, %v3196_v38, %v3203_v58 }
 0x9af   : > { %v3214_v44 = vsel %vm1171_vm1, %v3213_v59, %v3188_v10  ;;  %v3258_v45 = vsel %vm1171_vm1, %v3243_v31, %v3257_v36  ;;  %v3212_v48 = vperm.slane %v3204_v43, %v5908_v51  ;;  %v3268_v53 = vsel %vm1171_vm1, %v3267_v32, %v3248_v22 }
 0x9b0   : > { %v3220_v41 = vperm.slane %v3214_v44, %v5908_v51  ;;  %v3231_v52 = vrot.slane %v3224_v37, 4  ;;  %v3202_v61 = vsel %vm1171_vm1, %v3201_v40, %v3184_v54  ;;  %v3266_v62 = vperm.slane %v3258_v45, %v5908_v51  ;;  %v4582_v45 = vld [vmem:[#allocation16 + $0x38] sm:$0xff] }
 0x9b1   : > { %v3208_v1 = vperm.slane %v3202_v61, %v5908_v51  ;;  %v3227_v2 = vrot.slane %v3212_v48, 4  ;;  %v3256_v47 = vsel %vm1171_vm1, %v3255_v39, %v3237_v57  ;;  %v3274_v6 = vperm.slane %v3268_v53, %v5908_v51  ;;  %3440 = vmatpush.bf16.msrb.mxu2 %v4582_v45  ;;  %v4581_v48 = vld [vmem:[#allocation16 + $0x30] sm:$0xff]  ;;  %v4578_v53 = vld [vmem:[#allocation16 + $0x18] sm:$0xff] }
 0x9b2   : > { %v3229_v3 = vrot.slane %v3220_v41, 4  ;;  %v3232_v5 = vsel %vm1171_vm1, 0.0, %v3231_v52  ;;  %v3298_v60 = vsel %vm1171_vm1, %v3231_v52, %v3220_v41  ;;  %v3278_v15 = vperm.slane %v3270_v0, %v5908_v51  ;;  %v4580_v41 = vld [vmem:[#allocation16 + $0x28] sm:$0xff]  ;;  %v4579_v52 = vld [vmem:[#allocation16 + $0x20] sm:$0xff]  ;;  %v4577_v61 = vld [vmem:[#allocation16 + $0x10] sm:$0xff] }
 0x9b3   : > { %v3303_v42 = vrot.slane %v3232_v5, 4  ;;  %v3225_v7 = vrot.slane %v3208_v1, 4  ;;  %v3228_v4 = vsel %vm1171_vm1, 0.0, %v3227_v2  ;;  %v3287_v50 = vsel %vm1171_vm1, %v3227_v2, %v3208_v1  ;;  %v4575_v0 = vld [vmem:[#allocation16] sm:$0xff]  ;;  %v4416_v45 = vld [vmem:[#allocation17 + $0x30] sm:$0xf] }
 0x9b4   : > { %v3230_v8 = vsel %vm1171_vm1, 0.0, %v3229_v3  ;;  %v3292_v10 = vrot.slane %v3228_v4, 4  ;;  %v3302_v13 = vperm.slane %v3298_v60, %v5898_v34  ;;  %v3291_v18 = vperm.slane %v3287_v50, %v5898_v34 }
 0x9b5   : > { %v3304_v14 = vsel %vm1171_vm1, %v3303_v42, %v3230_v8  ;;  %v3226_v9 = vsel %vm1171_vm1, 0.0, %v3225_v7  ;;  %v3262_v19 = vperm.slane %v3256_v47, %v5908_v51  ;;  %v3279_v46 = vrot.slane %v3274_v6, 4  ;;  %3441 = vmatpush.bf16.msrb.mxu2 %v4581_v48  ;;  %v4590_v48 = vld [vmem:[#allocation17 + $0x34] sm:$0xf0] }
 0x9b6   : > { %v3308_v17 = vperm.slane %v3304_v14, %v5898_v34  ;;  %v3323_v28 = vrot.slane %v3302_v13, 4  ;;  %v3293_v54 = vsel %vm1171_vm1, %v3292_v10, %v3226_v9  ;;  %v3311_v20 = vrot.slane %v3291_v18, 4 }
 0x9b7   : > { %v3297_v24 = vperm.slane %v3293_v54, %v5898_v34  ;;  %v3283_v16 = vrot.slane %v3278_v15, 4  ;;  %v3285_v23 = vrot.slane %v3266_v62, 4  ;;  %v3280_v25 = vsel %vm1171_vm1, %v3279_v46, %v3262_v19 }
 0x9b8   : > { %v3321_v21 = vrot.slane %v3308_v17, 4  ;;  %v3324_v22 = vsel %vm1171_vm1, %v3308_v17, %v3323_v28  ;;  %v3281_v30 = vrot.slane %v3262_v19, 4  ;;  %v4881_v17 = vld [vmem:[%s6753_s19] ss:$0 sm:$0xff]  ;;  %s4144_s19 = sshll.u32 %s5843_s14, 4 }
 0x9b9   : > { %v3312_v26 = vsel %vm1171_vm1, %v3297_v24, %v3311_v20  ;;  %v3332_v27 = vperm.slane %v3324_v22, %v5908_v51  ;;  %v3309_v49 = vrot.slane %v3297_v24, 4  ;;  %v3284_v32 = vsel %vm1171_vm1, %v3283_v16, %v3266_v62  ;;  %3442 = vmatpush.bf16.msrb.mxu2 %v4580_v41  ;;  %v4576_v62 = vld [vmem:[#allocation16 + $0x8] sm:$0xff]  ;;  %v4589_v41 = vld [vmem:[#allocation17 + $0x34] sm:$0xf] }
 0x9ba   : > { %v3322_v12 = vsel %vm1171_vm1, %v3321_v21, %v3302_v13  ;;  %v3320_v58 = vperm.slane %v3312_v26, %v5908_v51  ;;  %v3286_v59 = vsel %vm1171_vm1, %v3278_v15, %v3285_v23  ;;  %v3282_v43 = vsel %vm1171_vm1, %v3274_v6, %v3281_v30  ;;  %v4598_v26 = vld [vmem:[#allocation17 + $0x74] sm:$0xf0]  ;;  %v4442_v30 = vld [vmem:[#allocation17 + $0x68] sm:$0xf0] }
 0x9bb   : > { %v3328_v63 = vperm.slane %v3322_v12, %v5908_v51  ;;  %v3337_v34 = vrot.slane %v3332_v27, 4  ;;  %v3310_v57 = vsel %vm1171_vm1, %v3309_v49, %v3291_v18  ;;  %v4450_v12 = vld [vmem:[#allocation17 + $0x78] sm:$0xf0] }
 0x9bc   : > { %v3339_v29 = vrot.slane %v3320_v58, 4  ;;  %v3316_v35 = vperm.slane %v3310_v57, %v5908_v51  ;;  %v4595_v57 = vld [vmem:[#allocation17 + $0x64] sm:$0xf] }
 0x9bd   : > { %v3333_v31 = vrot.slane %v3328_v63, 4  ;;  %v3338_v38 = vsel %vm1171_vm1, %v3337_v34, %v3320_v58  ;;  %3443 = vmatpush.bf16.msrb.mxu2 %v4579_v52  ;;  %v4596_v34 = vld [vmem:[#allocation17 + $0x64] sm:$0xf0]  ;;  %v4417_v52 = vor.u32 %v4590_v48, %v4416_v45  ;;  %v4609_v45 = vld [vmem:[#allocation19 + $0x50] sm:$0xff]  ;;  %v4602_v48 = vld [vmem:[#allocation19 + $0x18] sm:$0xff] }
 0x9be   : > { %v4866_v33 = vpack.i.bf16 %v3338_v38, %v3284_v32  ;;  %v3340_v36 = vsel %vm1171_vm1, %v3332_v27, %v3339_v29  ;;  %v3335_v37 = vrot.slane %v3316_v35, 4  ;;  %v4597_v27 = vld [vmem:[#allocation17 + $0x74] sm:$0xf]  ;;  %v4594_v32 = vld [vmem:[#allocation17 + $0x54] sm:$0xf0] }
 0x9bf   : > { %v3334_v39 = vsel %vm1171_vm1, %v3333_v31, %v3316_v35  ;;  %v4871_v40 = vpack.i.bf16 %v3340_v36, %v3286_v59  ;;  %v4453_v58 = vor.u32 %v4597_v27, %v4450_v12  ;;  %v4445_v35 = vor.u32 %v4595_v57, %v4442_v30  ;;  %v4432_v31 = vld [vmem:[#allocation17 + $0x50] sm:$0xf]  ;;  %v4593_v38 = vld [vmem:[#allocation17 + $0x54] sm:$0xf] }
 0x9c0   : > { %4867 = vrot.lane.b32.xlu1 %v4866_v33, %s5450_s29  ;;  %v3336_v51 = vsel %vm1171_vm1, %v3328_v63, %v3335_v37  ;;  %v4440_v63 = vld [vmem:[#allocation17 + $0x60] sm:$0xf]  ;;  %v4433_v59 = vor.u32 %v4594_v32, %v4432_v31  ;;  %v4434_v33 = vld [vmem:[#allocation17 + $0x58] sm:$0xf0]  ;;  %v4882_v32 = vld [vmem:[%s6754_s4] ss:$0 sm:$0xff] }
 0x9c1   : > { %4872 = vrot.lane.b32.xlu2 %v4871_v40, %s5449_s22  ;;  %v4861_v44 = vpack.i.bf16 %v3336_v51, %v3282_v43  ;;  %3444 = vmatpush.bf16.msrb.mxu2 %v4578_v53  ;;  %v4441_v29 = vor.u32 %v4596_v34, %v4440_v63  ;;  %v4437_v36 = vor.u32 %v4593_v38, %v4434_v33  ;;  %v4424_v37 = vld [vmem:[#allocation17 + $0x40] sm:$0xf]  ;;  %v4591_v40 = vld [vmem:[#allocation17 + $0x44] sm:$0xf]  ;;  %v4426_v51 = vld [vmem:[#allocation17 + $0x48] sm:$0xf0] }
 0x9c2   : > { %3625 = vmatpush.bf16.msrb.mxu0 %v4453_v58  ;;  %v4418_v53 = vld [vmem:[#allocation17 + $0x38] sm:$0xf0]  ;;  %s6755_s29 = sld [smem:[#allocation58_spill]] }
 0x9c3   : > { %4862 = vrot.lane.b32.xlu0 %v4861_v44, %s5451_s20  ;;  %v4429_v44 = vor.u32 %v4591_v40, %v4426_v51  ;;  %s6761_s4 = sld [smem:[#allocation65_spill]] }
 0x9c5   : > { %3445 = vmatpush.bf16.msrb.mxu2 %v4577_v61  ;;  %v4421_v61 = vor.u32 %v4589_v41, %v4418_v53  ;;  %v4601_v41 = vld [vmem:[#allocation19 + $0x10] sm:$0xff]  ;;  %v4600_v53 = vld [vmem:[#allocation19 + $0x8] sm:$0xff] }
 0x9c6   : > { %3626 = vmatpush.bf16.msrb.mxu0 %v4445_v35 }
 0x9c9   : > { %3446 = vmatpush.bf16.msrb.mxu2 %v4576_v62  ;;  %v4408_v62 = vld [vmem:[#allocation17 + $0x20] sm:$0xf]  ;;  %s6762_s16 = smov %s6761_s4  ;;  %s3875_s22 = scalar_lea.hbm %s6761_s4, %s4521_s17 }
 0x9ca   : > { %3627 = vmatpush.bf16.msrb.mxu0 %v4437_v36  ;;  %s5315_s2 = scalar_lea.hbm %s6762_s16, 64 }
 0x9cd   : > { %3447 = vmatpush.bf16.msrb.mxu2 %v4575_v0  ;;  %v4588_v0 = vld [vmem:[#allocation17 + $0x24] sm:$0xf0] }
 0x9ce   : > { %3628 = vmatpush.bf16.msrb.mxu0 %v4429_v44  ;;  %v4603_v44 = vld [vmem:[#allocation19 + $0x20] sm:$0xff] }
 0x9d2   : > { %3629 = vmatpush.bf16.msrb.mxu0 %v4421_v61  ;;  %v4599_v61 = vld [vmem:[#allocation19] sm:$0xff] }
 0xa1b   : > { %v4873_v2 = vpop.permute.xlu2 %4872 }
 0xa1c   : > { %v4875_v6 = vunpack.i.h.bf16 %v4873_v2  ;;  %v4874_v7 = vunpack.i.l.bf16 %v4873_v2  ;;  %v4409_v2 = vor.u32 %v4588_v0, %v4408_v62  ;;  %v3525_v62 = vld [vmem:[%s6756_s13] sm:$0x3]  ;;  %s3878_s13 = sshll.u32 %s3875_s22, 4  ;;  %s3879_s13 = int_to_ptr.hbm [resolvable:$true] %s3878_s13 }
 0xa1d   : > { %s5309_s10 = sshra.s32 %s3879_s13, 4  ;;  %s5310_s10 = int_to_ptr.hbm [resolvable:$true] %s5309_s10 }
 0xa1e   : > { %p5316_p10 = scmp.lt.s32.totalorder %s5310_s10, %s6762_s16 }
 0xa32   : > { %v4868_v1 = vpop.permute.xlu1 %4867 }
 0xa33   : > { %v4870_v42 = vunpack.i.h.bf16 %v4868_v1  ;;  %v4869_v47 = vunpack.i.l.bf16 %v4868_v1  ;;  %v4587_v1 = vld [vmem:[#allocation17 + $0x24] sm:$0xf] }
 0xa35   : > { %v4863_v3 = vpop.permute.xlu0 %4862 }
 0xa36   : > { %v4865_v5 = vunpack.i.h.bf16 %v4863_v3  ;;  %v4864_v60 = vunpack.i.l.bf16 %v4863_v3  ;;  %v4410_v3 = vld [vmem:[#allocation17 + $0x28] sm:$0xf0] }
 0xa38   : > { %v3365_v4 = vsel %vm1414_vm0, %v3280_v25, %v4864_v60  ;;  %v3366_v8 = vsel %vm1414_vm0, %v3334_v39, %v4865_v5  ;;  %v4592_v39 = vld [vmem:[#allocation17 + $0x44] sm:$0xf0]  ;;  %v4413_v5 = vor.u32 %v4587_v1, %v4410_v3  ;;  %v4400_v60 = vld [vmem:[#allocation17 + $0x10] sm:$0xf]  ;;  %v3528_v1 = vperm.slane %v3525_v62, 1 }
 0xa39   : > { %v3367_v50 = vsel %vm2134_vm8, %v3365_v4, %v4869_v47  ;;  %v3368_v10 = vsel %vm2134_vm8, %v3366_v8, %v4870_v42  ;;  %v4425_v43 = vor.u32 %v4592_v39, %v4424_v37  ;;  %v4586_v42 = vld [vmem:[#allocation17 + $0x14] sm:$0xf0]  ;;  %v4585_v47 = vld [vmem:[#allocation17 + $0x14] sm:$0xf]  ;;  %v4402_v4 = vld [vmem:[#allocation17 + $0x18] sm:$0xf0] }
 0xa3a   : > { %v3369_v13 = vsel %vm2137_vm9, %v3367_v50, %v4874_v7  ;;  %v3370_v14 = vsel %vm2137_vm9, %v3368_v10, %v4875_v6  ;;  %3630 = vmatpush.bf16.msrb.mxu0 %v4413_v5  ;;  %v4401_v7 = vor.u32 %v4586_v42, %v4400_v60  ;;  %v4392_v8 = vld [vmem:[#allocation17] sm:$0xf]  ;;  %v4584_v50 = vld [vmem:[#allocation17 + $0x4] sm:$0xf0]  ;;  %v4883_v37 = vld [vmem:[%s6755_s29] ss:$0 sm:$0xff] }
 0xa3b   : > { %v3371_v15 = vpack.c.bf16 %v3370_v14, %v3369_v13  ;;  %v4405_v13 = vor.u32 %v4585_v47, %v4402_v4  ;;  %v4583_v14 = vld [vmem:[#allocation17 + $0x4] sm:$0xf]  ;;  %v3527_v60 = vperm.slane %v3525_v62, 0  ;;  %s1009_s29 = scalar_lea.vmem [#allocation20], %s4144_s19 }
 0xa3c   : > { %s3876_s23 = sshll.u32 %s1009_s29, 4  ;;  %s3877_s23 = int_to_ptr.vmem [resolvable:$true] %s3876_s23 }
 0xa3d   : > { %3448 = vmatmul.bf16.vlgmr.msrb.gmra.mxu2 %v3371_v15  ;;  %v4394_v15 = vld [vmem:[#allocation17 + $0x8] sm:$0xf0] }
 0xa3e   : > { %3631 = vmatpush.bf16.msrb.mxu0 %v4405_v13 }
 0xac0   : > { %v3449_v9 = vpop.f32.mrf.mxu2 }
 0xac1   : > { %v3450_v18 = vadd.f32 %v4881_v17, %v3449_v9 }
 0xac3   : > { %v3454_v28 = vadd.f32 %v3450_v18, %v6167_v55  ;;  %v4397_v18 = vor.u32 %v4583_v14, %v4394_v15  ;;  %v4884_v15 = vld [vmem:[%s6757_s8] ss:$0 sm:$0xff]  ;;  %s5311_s8 = scalar_lea.hbm %s5310_s10, 16 }
 0xac4   : > { %p5312_p11 = scmp.ne.s32.totalorder %s5310_s10, %s5311_s8  ;;  %p5317_p1 = scmp.lt.s32.totalorder %s5315_s2, %s5311_s8 }
 0xac5   : > { %3456 = vadd.xlane.f32.xlu0 %v3454_v28  ;;  %3632 = vmatpush.bf16.msrb.mxu0 %v4397_v18 }
 0xac6   : > { %p5313_p7 = pnand %p5312_p11, %p5788_p13  ;;  %p5318_p9 = por %p5317_p1, %p5316_p10 }
 0xac8   : > { %v3451_v54 = vpop.f32.mrf.mxu2  ;;  %p5314_p8 = pneg %p5313_p7 }
 0xac9   : > { %v3452_v19 = vadd.f32 %v4881_v17, %v3451_v54  ;;  %v4393_v17 = vor.u32 %v4584_v50, %v4392_v8  ;;  %v4606_v54 = vld [vmem:[#allocation19 + $0x38] sm:$0xff] }
 0xaca   : > { %3777 = vmatpush.bf16.msra.mxu1 %v4606_v54  ;;  %p5319_p3 = pnand %p5318_p9, %p5314_p8 }
 0xacb   : > { %v3455_v46 = vadd.f32 %v3452_v19, %v6169_v56  ;;  %v4448_v56 = vld [vmem:[#allocation17 + $0x70] sm:$0xf] }
 0xacc   : > { %v4449_v49 = vor.u32 %v4598_v26, %v4448_v56  ;;  %v4604_v56 = vld [vmem:[#allocation19 + $0x28] sm:$0xff] }
 0xacd   : > { %3458 = vadd.xlane.f32.xlu1 %v3455_v46 }
 0xace   : > { %3611 = vmatpush.bf16.msrb.mxu3 %v4449_v49  ;;  %v4611_v49 = vld [vmem:[#allocation19 + $0x60] sm:$0xff] }
 0xad2   : > { %3612 = vmatpush.bf16.msrb.mxu3 %v4441_v29 }
 0xad6   : > { %3613 = vmatpush.bf16.msrb.mxu3 %v4433_v59 }
 0xada   : > { %3614 = vmatpush.bf16.msrb.mxu3 %v4425_v43 }
 0xade   : > { %3615 = vmatpush.bf16.msrb.mxu3 %v4417_v52  ;;  %v4607_v52 = vld [vmem:[#allocation19 + $0x40] sm:$0xff] }
 0xae2   : > { %3616 = vmatpush.bf16.msrb.mxu3 %v4409_v2 }
 0xae6   : > { %3617 = vmatpush.bf16.msrb.mxu3 %v4401_v7 }
 0xaea   : > { %3618 = vmatpush.bf16.msrb.mxu3 %v4393_v17 }
 0xb38   : > { %v3457_v24 = vpop.xlane.xlu0 %3456 }
 0xb39   : > { %v3460_v20 = vmul.f32 %v3457_v24, %v6155_v11  ;;  %v4613_v24 = vld [vmem:[#allocation19 + $0x70] sm:$0xff] }
 0xb3b   : > { %v6526_v21 = vsub.f32 %v3454_v28, %v3460_v20  ;;  %v4614_v28 = vld [vmem:[#allocation19 + $0x78] sm:$0xff]  ;;  %v4605_v20 = vld [vmem:[#allocation19 + $0x30] sm:$0xff] }
 0xb3c   : > { %3791 = vmatpush.bf16.msra.mxu2 %v4614_v28  ;;  %3778 = vmatpush.bf16.msra.mxu1 %v4605_v20 }
 0xb3d   : > { %v3464_v16 = vmul.f32 %v6526_v21, %v6526_v21 }
 0xb3f   : > { %3466 = vadd.xlane.f32.xlu2 %v3464_v16 }
 0xb40   : > { %v3459_v22 = vpop.xlane.xlu1 %3458  ;;  %3792 = vmatpush.bf16.msra.mxu2 %v4613_v24  ;;  %3779 = vmatpush.bf16.msra.mxu1 %v4604_v56 }
 0xb41   : > { %v3461_v23 = vmul.f32 %v3459_v22, %v6155_v11 }
 0xb43   : > { %v6531_v25 = vsub.f32 %v3455_v46, %v3461_v23 }
 0xb44   : > { %3780 = vmatpush.bf16.msra.mxu1 %v4603_v44 }
 0xb45   : > { %v3465_v55 = vmul.f32 %v6531_v25, %v6531_v25 }
 0xb47   : > { %3468 = vadd.xlane.f32.xlu0 %v3465_v55  ;;  %v4612_v55 = vld [vmem:[#allocation19 + $0x68] sm:$0xff] }
 0xb48   : > { %3793 = vmatpush.bf16.msra.mxu2 %v4612_v55  ;;  %3781 = vmatpush.bf16.msra.mxu1 %v4602_v48 }
 0xb4c   : > { %3794 = vmatpush.bf16.msra.mxu2 %v4611_v49  ;;  %3782 = vmatpush.bf16.msra.mxu1 %v4601_v41 }
 0xb50   : > { %3783 = vmatpush.bf16.msra.mxu1 %v4600_v53 }
 0xb54   : > { %3784 = vmatpush.bf16.msra.mxu1 %v4599_v61 }
 0xbb2   : > { %v3467_v6 = vpop.xlane.xlu2 %3466 }
 0xbb3   : > { %v3470_v10 = vmul.f32 %v3467_v6, %v6155_v11 }
 0xbb5   : > { %v3472_v9 = vadd.f32 1e-05, %v3470_v10 }
 0xbb7   : > { %4957 = vrsqrt.f32 %v3472_v9  ;;  %vm3480_vm1 = vweird.f32 %v3472_v9 }
 0xbba   : > { %v3469_v19 = vpop.xlane.xlu0 %3468 }
 0xbbb   : > { %v3471_v46 = vmul.f32 %v3469_v19, %v6155_v11 }
 0xbbd   : > { %v4958_v16 = vpop.eup %4957  ;;  %v3473_v22 = vadd.f32 1e-05, %v3471_v46 }
 0xbbe   : > { %v3475_v23 = vmul.f32 %v4958_v16, %v3472_v9  ;;  %vm3481_vm0 = vweird.f32 %v4958_v16 }
 0xbbf   : > { %4959 = vrsqrt.f32 %v3473_v22  ;;  %vm3482_vm8 = vmor %vm3480_vm1, %vm3481_vm0  ;;  %vm3490_vm3 = vweird.f32 %v3473_v22 }
 0xbc0   : > { %v3476_v26 = vmul.f32 %v4958_v16, %v3475_v23 }
 0xbc2   : > { %v3477_v27 = vmul.f32 0.5, %v3476_v26 }
 0xbc4   : > { %v3478_v12 = vsub.f32 1.5, %v3477_v27 }
 0xbc5   : > { %v4960_v58 = vpop.eup %4959 }
 0xbc6   : > { %v3479_v63 = vmul.f32 %v4958_v16, %v3478_v12  ;;  %v3485_v34 = vmul.f32 %v4960_v58, %v3473_v22  ;;  %vm3491_vm9 = vweird.f32 %v4960_v58 }
 0xbc7   : > { %vm3492_vm5 = vmor %vm3490_vm3, %vm3491_vm9 }
 0xbc8   : > { %v3486_v57 = vmul.f32 %v4960_v58, %v3485_v34  ;;  %v3483_v29 = vsel %vm3482_vm8, %v4958_v16, %v3479_v63 }
 0xbc9   : > { %v3494_v31 = vmul.f32 %v3483_v29, %v6526_v21  ;;  %v4610_v21 = vld [vmem:[#allocation19 + $0x58] sm:$0xff] }
 0xbca   : > { %v3487_v30 = vmul.f32 0.5, %v3486_v57  ;;  %3795 = vmatpush.bf16.msra.mxu2 %v4610_v21 }
 0xbcb   : > { %v3500_v36 = vmul.f32 %v4882_v32, %v3494_v31 }
 0xbcc   : > { %v3488_v35 = vsub.f32 1.5, %v3487_v30 }
 0xbcd   : > { %v3506_v40 = vadd.f32 %v4883_v37, %v3500_v36 }
 0xbce   : > { %v3489_v38 = vmul.f32 %v4960_v58, %v3488_v35  ;;  %3796 = vmatpush.bf16.msra.mxu2 %v4609_v45 }
 0xbd0   : > { %v3493_v59 = vsel %vm3492_vm5, %v4960_v58, %v3489_v38 }
 0xbd1   : > { %v3495_v33 = vmul.f32 %v3493_v59, %v6531_v25  ;;  %v4608_v25 = vld [vmem:[#allocation19 + $0x48] sm:$0xff] }
 0xbd2   : > { %3797 = vmatpush.bf16.msra.mxu2 %v4608_v25 }
 0xbd3   : > { %v3501_v39 = vmul.f32 %v4882_v32, %v3495_v33 }
 0xbd5   : > { %v3507_v43 = vadd.f32 %v4883_v37, %v3501_v39  ;;  %v4885_v39 = vld [vmem:[%s6759_s3] ss:$0 sm:$0xff] }
 0xbd6   : > { %3798 = vmatpush.bf16.msra.mxu2 %v4607_v52 }
 0xbd7   : > { %v3508_v51 = vpack.c.bf16 %v3507_v43, %v3506_v40 }
 0xbd9   : > { %3619 = vmatmul.bf16.vlgmr.msrb.gmra.mxu3 %v3508_v51  ;;  %3633 = vmatmul.bf16.vlgmr.msrb.gmra.mxu0 %v3508_v51 }
 0xc56   : > { %v3634_v0 = vpop.f32.mrf.mxu0 }
 0xc57   : > { %v3635_v3 = vadd.f32 %v3634_v0, %v3528_v1 }
 0xc59   : > { %v3640_v47 = vmax.f32 %v3635_v3, 0.0 }
 0xc5c   : > { %v3620_v2 = vpop.f32.mrf.mxu3 }
 0xc5d   : > { %v3621_v7 = vadd.f32 %v3620_v2, %v3527_v60 }
 0xc5e   : > { %v3636_v5 = vpop.f32.mrf.mxu0 }
 0xc5f   : > { %v3637_v42 = vadd.f32 %v3636_v5, %v3528_v1  ;;  %v3639_v10 = vmax.f32 %v3621_v7, 0.0 }
 0xc61   : > { %v3642_v6 = vmax.f32 %v3637_v42, 0.0 }
 0xc63   : > { %v3644_v4 = vpack.c.bf16 %v3642_v6, %v3640_v47 }
 0xc64   : > { %v3622_v8 = vpop.f32.mrf.mxu3 }
 0xc65   : > { %v3623_v50 = vadd.f32 %v3622_v8, %v3527_v60  ;;  %3799 = vmatmul.bf16.vlgmr.msra.gmra.mxu2 %v3644_v4 }
 0xc67   : > { %v3641_v13 = vmax.f32 %v3623_v50, 0.0 }
 0xc69   : > { %v3643_v14 = vpack.c.bf16 %v3641_v13, %v3639_v10 }
 0xc6b   : > { %3785 = vmatmul.bf16.vlgmr.msra.gmra.mxu1 %v3643_v14 }
 0xce8   : > { %v3786_v17 = vpop.f32.mrf.mxu1  ;;  %v3800_v9 = vpop.f32.mrf.mxu2 }
 0xce9   : > { %v3787_v18 = vadd.f32 %v4884_v15, %v3786_v17 }
 0xceb   : > { %v3801_v28 = vadd.f32 %v3800_v9, %v3787_v18 }
 0xced   : > { %v3805_v54 = vadd.f32 %v3801_v28, %v3506_v40 }
 0xcef   : > { %3807 = vadd.xlane.f32.xlu1 %v3805_v54 }
 0xcf0   : > { %v3788_v19 = vpop.f32.mrf.mxu1  ;;  %v3802_v24 = vpop.f32.mrf.mxu2 }
 0xcf1   : > { %v3789_v46 = vadd.f32 %v4884_v15, %v3788_v19 }
 0xcf3   : > { %v3803_v20 = vadd.f32 %v3802_v24, %v3789_v46 }
 0xcf5   : > { %v3806_v16 = vadd.f32 %v3803_v20, %v3507_v43  ;;  %v4886_v43 = vld [vmem:[%s6760_s12] ss:$0 sm:$0xff] }
 0xcf7   : > { %3809 = vadd.xlane.f32.xlu2 %v3806_v16 }
 0xd62   : > { %v3808_v22 = vpop.xlane.xlu1 %3807 }
 0xd63   : > { %v3811_v23 = vmul.f32 %v3808_v22, %v6155_v11 }
 0xd65   : > { %v3813_v55 = vsub.f32 %v3805_v54, %v3811_v23 }
 0xd67   : > { %v3815_v56 = vmul.f32 %v3813_v55, %v3813_v55 }
 0xd69   : > { %3817 = vadd.xlane.f32.xlu0 %v3815_v56 }
 0xd6a   : > { %v3810_v26 = vpop.xlane.xlu2 %3809 }
 0xd6b   : > { %v3812_v27 = vmul.f32 %v3810_v26, %v6155_v11 }
 0xd6d   : > { %v3814_v49 = vsub.f32 %v3806_v16, %v3812_v27 }
 0xd6f   : > { %v3816_v12 = vmul.f32 %v3814_v49, %v3814_v49 }
 0xd71   : > { %3819 = vadd.xlane.f32.xlu1 %v3816_v12 }
 0xddc   : > { %v3818_v58 = vpop.xlane.xlu0 %3817 }
 0xddd   : > { %v3821_v63 = vmul.f32 %v3818_v58, %v6155_v11 }
 0xddf   : > { %v3823_v34 = vadd.f32 1e-05, %v3821_v63 }
 0xde1   : > { %4961 = vrsqrt.f32 %v3823_v34  ;;  %vm3831_vm7 = vweird.f32 %v3823_v34 }
 0xde4   : > { %v3820_v57 = vpop.xlane.xlu1 %3819 }
 0xde5   : > { %v3822_v29 = vmul.f32 %v3820_v57, %v6155_v11 }
 0xde7   : > { %v4962_v30 = vpop.eup %4961  ;;  %v3824_v35 = vadd.f32 1e-05, %v3822_v29 }
 0xde8   : > { %v3826_v31 = vmul.f32 %v4962_v30, %v3823_v34  ;;  %vm3832_vm6 = vweird.f32 %v4962_v30 }
 0xde9   : > { %4963 = vrsqrt.f32 %v3824_v35  ;;  %vm3833_vm10 = vmor %vm3831_vm7, %vm3832_vm6  ;;  %vm3841_vm12 = vweird.f32 %v3824_v35 }
 0xdea   : > { %v3827_v32 = vmul.f32 %v4962_v30, %v3826_v31 }
 0xdec   : > { %v3828_v38 = vmul.f32 0.5, %v3827_v32 }
 0xdee   : > { %v3829_v59 = vsub.f32 1.5, %v3828_v38 }
 0xdef   : > { %v4964_v33 = vpop.eup %4963 }
 0xdf0   : > { %v3830_v36 = vmul.f32 %v4962_v30, %v3829_v59  ;;  %v3836_v37 = vmul.f32 %v4964_v33, %v3824_v35  ;;  %vm3842_vm11 = vweird.f32 %v4964_v33 }
 0xdf1   : > { %vm3843_vm4 = vmor %vm3841_vm12, %vm3842_vm11 }
 0xdf2   : > { %v3834_v11 = vsel %vm3833_vm10, %v4962_v30, %v3830_v36  ;;  %v3837_v40 = vmul.f32 %v4964_v33, %v3836_v37 }
 0xdf3   : > { %v3845_v51 = vmul.f32 %v3834_v11, %v3813_v55 }
 0xdf4   : > { %v3838_v21 = vmul.f32 0.5, %v3837_v40 }
 0xdf5   : > { %v3851_v44 = vmul.f32 %v4885_v39, %v3845_v51 }
 0xdf6   : > { %v3839_v45 = vsub.f32 1.5, %v3838_v21 }
 0xdf7   : > { %v3857_v48 = vadd.f32 %v4886_v43, %v3851_v44 }
 0xdf8   : > { %v3840_v25 = vmul.f32 %v4964_v33, %v3839_v45 }
 0xdf9   : > { %3859 = vst [vmem:[%s1009_s29] sm:$0xff] %v3857_v48 }
 0xdfa   : > { %v3844_v41 = vsel %vm3843_vm4, %v4964_v33, %v3840_v25 }
 0xdfb   : > { %v3846_v52 = vmul.f32 %v3844_v41, %v3814_v49 }
 0xdfd   : > { %v3852_v53 = vmul.f32 %v4885_v39, %v3846_v52 }
 0xdff   : > { %v3858_v61 = vadd.f32 %v4886_v43, %v3852_v53 }
 0xe01   : > { %3860 = vst [vmem:[%s1009_s29 + $0x8] sm:$0xff] %v3858_v61 }
 0xe02   : > { %5322 = shalt.err (!%p5319_p3)
}
 0xe03   : > { %s5456_s14 = smov 128   ;;  %s5457_s3 = smov 8  }
 0xe04   : > { %4654 = dma.vmem_to_hbm [thread:$0]  (%p5788_p13), %s3877_s23, 256, %s3879_s13, %s3862_s0, %s5456_s14, %s5456_s14, %s5457_s3  }
 0xe05 PF: > { %s6764_s21 = sld [smem:[#allocation29_spill]]  ;;  %p4708_p12 = scmp.ge.s32.totalorder %s5437_s7, 2 }
 0xe07   : > { %p4692_p0 = pnand %p4708_p12, %p5792_p6 }
 0xe09   : > { %p4693_p2 = pneg %p4692_p0 }
 0xe0b   : > { %s3893_s30 = sand.u32 1, %s6764_s21  }
 0xe0c   : > { %s3894_s12 = scalar_lea.sflag [#allocation4], %s3893_s30 }
 0xe0d   : > { %5392 = dma.done.wait (%p4693_p2), %s3894_s12, 256  }
 0xe0e   : > { %5394 = vsyncadd (%p4693_p2), %s3894_s12, 4294967040  ;;  %s48_s7 = sadd.s32 1, %s5437_s7   ;;  %s6766_s4 = sld [smem:[#allocation28_spill]] }
 0xe0f   : > { %p45_p4 = scmp.ge.s32.totalorder %s48_s7, 6   ;;  %s6767_s19 = sld [smem:[#allocation40_spill]] }
 0xe10   : > { %s6768_s17 = sld [smem:[#allocation41_spill]]  ;;  %s6771_s30 = smov %s5405_s24 }
 0xe11   : > { %s6769_s28 = sld [smem:[#allocation36_spill]]  ;;  %s6773_s25 = smov %s5413_s5 }
 0xe12   : > { %s6770_s22 = sld [smem:[#allocation37_spill]]  ;;  %s6774_s5 = smov %s5417_s1 }
 0xe13   : > { %s6776_s26 = smov %s5429_s6  ;;  %s6777_s2 = smov %s5433_s27 }
 0xe14   :  { %47 = sbr.rel (!%p45_p4) target bundleno = 41 (0x29), region = 229 }
 0xe15   : > { %s6772_s24 = smov %s6767_s19 }
 0xe16   : > { %s6775_s1 = smov %s6768_s17 }
 0xe17   : > { %s6778_s6 = smov %s6769_s28 }
 0xe18   : > { %s6779_s27 = smov %s6770_s22 }
 0xe19   :  { %3900 = vsyncpa [#allocation3], 1 }
 0xe1a   :  { %3902 = vsyncpa [#allocation3 + $0x1], 1 }
 0xe1b   :  { %3903 = vsyncpa [#allocation6], 1 }
 0xe1c   :  { %3905 = vsyncpa [#allocation6 + $0x1], 1 }
 0xe1d   :  { %3906 = vsyncpa [#allocation9], 1 }
 0xe1e   :  { %3908 = vsyncpa [#allocation9 + $0x1], 1 }
 0xe1f   :  { %3909 = vsyncpa [#allocation12], 1 }
 0xe20   :  { %3910 = vsyncpa [#allocation15], 1 }
 0xe21   :  { %3911 = vsyncpa [#allocation18], 1 }
 0xe22   :  { %3912 = vsyncpa [#allocation4], 1 }
 0xe23   :  { %3914 = vsyncpa [#allocation4 + $0x1], 1 }

</bundles_post_ra>
